<compile_context>
chip_gen: v5e
topology: v5e:2x2
jax: 0.10.0
libtpu: 0.0.40
codegen_flags: <defaults>
</compile_context>

<pallas_src>
import numpy as np
import jax
import jax.numpy as jnp
from jax.experimental import pallas as pl
from jax.experimental.pallas import tpu as pltpu


# ---------------------------------------------------------------------------
# Host-side constant builders (pool / upsample operators in factored form).
# ---------------------------------------------------------------------------
def _round_up(n, m):
    return ((n + m - 1) // m) * m


def _pool_windows(in_size, out_size):
    """adaptive_avg_pool1d windows: [start, end) per output cell."""
    return [((i * in_size) // out_size, -(((-(i + 1)) * in_size) // out_size))
            for i in range(out_size)]


def _branch_operators(H, W, gh, gw):
    """Binary pool-sum matrix P [G,S], window counts [G], one-hot upsample U [S,G]."""
    S = H * W
    G = gh * gw
    wins_h = _pool_windows(H, gh)
    wins_w = _pool_windows(W, gw)
    P = np.zeros((G, S), np.float32)
    cnt = np.zeros((G,), np.float32)
    for a, (h0, h1) in enumerate(wins_h):
        for b, (w0, w1) in enumerate(wins_w):
            g = a * gw + b
            for h in range(h0, h1):
                P[g, h * W + w0:h * W + w1] = 1.0
            cnt[g] = float((h1 - h0) * (w1 - w0))
    # F.interpolate(mode='nearest') legacy floor semantics
    src_h = [min((d * gh) // H, gh - 1) for d in range(H)]
    src_w = [min((d * gw) // W, gw - 1) for d in range(W)]
    U = np.zeros((S, G), np.float32)
    for h in range(H):
        for w in range(W):
            U[h * W + w, src_h[h] * gw + src_w[w]] = 1.0
    return P, cnt, U


def _build_spatial_constants(H, W, branch_grids):
    """Channel-major constants: P^T [S,G], 1/cnt [1,G], U^T [G,S], bsel [G,4]."""
    S = H * W
    Ps, cnts, Us = [], [], []
    for gh, gw in branch_grids:
        P, c, U = _branch_operators(H, W, gh, gw)
        Ps.append(P)
        cnts.append(c)
        Us.append(U)
    gpads = tuple(_round_up(p.shape[0], 8) for p in Ps)
    Gtot = sum(gpads)
    Pt = np.zeros((S, Gtot), np.float32)
    invc = np.zeros((1, Gtot), np.float32)
    Ut = np.zeros((Gtot, S), np.float32)
    bsel_t = np.zeros((Gtot, len(Ps)), np.float32)
    off = 0
    for i, (P, c, U, gp) in enumerate(zip(Ps, cnts, Us, gpads)):
        g = P.shape[0]
        Pt[:, off:off + g] = P.T
        invc[0, off:off + g] = 1.0 / c
        Ut[off:off + g, :] = U.T
        bsel_t[off:off + g, i] = 1.0           # padded rows stay 0 -> inert
        off += gp
    return Pt, invc, Ut, bsel_t, gpads


def _pick_tile(S, ts_max=2048):
    """Largest multiple of 128 dividing S (<= ts_max); fallback = whole S."""
    if S <= ts_max:
        return S
    ts = (min(ts_max, S) // 128) * 128
    while ts >= 128:
        if S % ts == 0:
            return ts
        ts -= 128
    return S


def _vmem_estimate(S, TS, nS, Cin, Ch, Cout, G):
    def lane(n):
        return _round_up(max(n, 1), 128)
    est = 0
    est += 2 * Cin * TS * 4                      # x block, double-buffered, f32
    est += 2 * Cout * TS * 4                     # out block, double-buffered, f32
    est += 2 * nS * TS * lane(G) * 2             # P^T resident (bf16, lane padded)
    est += 2 * nS * G * lane(TS) * 2             # U^T resident
    est += nS * Ch * lane(TS) * 2                # r scratch (bf16)
    est += Ch * lane(G) * 4 + (Ch + Cout) * lane(G) * 2   # pooled scratches
    est += 2 * 2 * (8 * Ch * Ch + Ch * Cin + Cout * Ch + 8 * Ch)  # weights
    return est


# ---------------------------------------------------------------------------
# Fused SCE kernel (single pallas_call, phase axis fuses the two passes).
# ---------------------------------------------------------------------------
def _make_sce_kernel(gpads):
    nb = len(gpads)

    def kernel(x_ref, pt_ref, ut_ref, invc_ref, bsel_ref,
               w_red_ref, b_red_ref, w_spp_ref, b_spp_ref,
               w_att1_ref, b_att1_ref, w_att2_ref, w_out_ref, b_out_ref,
               o_ref,
               r_scr, pool_acc, att1_scr, cwout_scr):
        f32, bf16 = jnp.float32, jnp.bfloat16
        p = pl.program_id(1)
        s = pl.program_id(2)
        n_s = pl.num_programs(2)

        # ---- phase 0: reduce conv, pooled sums, pooled-domain convs -------
        @pl.when(p == 0)
        def _phase0():
            x_bf = x_ref[0].astype(bf16)                               # (Cin, TS)
            r = jnp.maximum(
                jnp.dot(w_red_ref[...], x_bf, preferred_element_type=f32)
                + b_red_ref[...], 0.0)                                 # (Ch, TS)
            r_bf = r.astype(bf16)
            r_scr[s] = r_bf                                            # keep r in VMEM

            @pl.when(s == 0)
            def _():
                pool_acc[...] = jnp.zeros_like(pool_acc)

            # binary pool sums now, 1/count at the end (exact in bf16)
            pool_acc[...] += jnp.dot(r_bf, pt_ref[s],
                                     preferred_element_type=f32)       # (Ch, G)

            @pl.when(s == n_s - 1)
            def _epilogue():
                pooled = (pool_acc[...] * invc_ref[...]).astype(bf16)   # (Ch, G)
                b_spp = b_spp_ref[...]                                  # (Ch, 4)
                off = 0
                for i in range(nb):
                    gp = gpads[i]
                    blk = pooled[:, off:off + gp]                       # (Ch, gp)
                    c = jnp.maximum(
                        jnp.dot(w_spp_ref[i], blk, preferred_element_type=f32)
                        + b_spp[:, i:i + 1], 0.0)                       # spp_i + ReLU
                    c_bf = c.astype(bf16)
                    # attention conv1, block i (bias added once in phase 1)
                    att1_scr[:, off:off + gp] = jnp.dot(
                        w_att1_ref[i], c_bf,
                        preferred_element_type=f32).astype(bf16)
                    # fold the context through the output conv: W_out @ C_i
                    cwout_scr[:, off:off + gp] = jnp.dot(
                        w_out_ref[...], c_bf,
                        preferred_element_type=f32).astype(bf16)
                    off += gp

        # ---- phase 1: attention + fused residual / output conv ------------
        @pl.when(p == 1)
        def _phase1():
            r_bf = r_scr[s]                                             # (Ch, TS)
            ut = ut_ref[s]                                              # (G, TS) one-hot
            att_h = jnp.maximum(
                jnp.dot(att1_scr[...], ut, preferred_element_type=f32)
                + b_att1_ref[...], 0.0)                                 # (Ch, TS)
            att = (jax.nn.sigmoid(
                jnp.dot(w_att2_ref[...], att_h.astype(bf16),
                        preferred_element_type=f32)) + 1.0).astype(bf16)  # (4, TS)
            # att_exp[g, t] = att[branch(g), t] (exact: one-hot bsel rows)
            att_exp = jnp.dot(bsel_ref[...], att,
                              preferred_element_type=f32).astype(bf16)    # (G, TS)
            w_sel = ut * att_exp                                        # masked upsample
            out = jnp.dot(w_out_ref[...], r_bf, preferred_element_type=f32)
            out = out + jnp.dot(cwout_scr[...], w_sel,
                                preferred_element_type=f32)
            o_ref[0] = jnp.maximum(out + b_out_ref[...], 0.0).astype(o_ref.dtype)

    return kernel


# ---------------------------------------------------------------------------
# Wrapper
# ---------------------------------------------------------------------------
def sce_forward(x_nchw, params, grids=(6, 3, 2, 1), ts_max=2048):
    N, Cin, H, W = x_nchw.shape
    S = H * W
    Ch = params["w_red"].shape[1]
    Cout = params["w_out"].shape[1]

    ar = W / H
    branch_grids = [(g, max(1, round(ar * g))) for g in grids]
    Pt_np, invc_np, Ut_np, bsel_np, gpads = _build_spatial_constants(
        H, W, branch_grids)
    G = Pt_np.shape[1]

    # spatial tile: as big as the VMEM budget allows (amortise grid-step cost)
    TS = _pick_tile(S, ts_max)
    while TS > 128 and _vmem_estimate(S, TS, S // TS, Cin, Ch, Cout, G) > (48 << 20):
        nt = _pick_tile(S, TS // 2)
        if nt >= TS:
            break
        TS = nt
    nS = S // TS
    est = _vmem_estimate(S, TS, nS, Cin, Ch, Cout, G)
    vmem_limit = int(min(64 << 20, max(32 << 20, int(1.4 * est) + (2 << 20))))

    bf16, f32 = jnp.bfloat16, jnp.float32

    # NCHW input used directly as (N, Cin, S): free reshape, no relayout pass;
    # the kernel casts to bf16 on the fly (f32 DMA < wrapper-cast round trip).
    x = x_nchw.reshape(N, Cin, S)

    # Spatial operators, pre-split per s tile so the kernel indexes the leading
    # axis dynamically (binary / one-hot -> exact in bf16).
    pt = jnp.asarray(Pt_np.reshape(nS, TS, G), bf16)
    ut = jnp.asarray(np.transpose(Ut_np.reshape(G, nS, TS), (1, 0, 2)), bf16)
    invc = jnp.asarray(invc_np, f32)                     # (1, G)
    bsel = jnp.asarray(bsel_np, bf16)                    # (G, 4)

    # Weights in output-major (Cout, Cin) form for channel-major matmuls.
    w_red = jnp.asarray(params["w_red"]).T.astype(bf16)                 # (Ch, Cin)
    b_red = jnp.asarray(params["b_red"]).reshape(1, Ch).T.astype(f32)   # (Ch, 1)
    w_spp = jnp.transpose(jnp.asarray(params["w_spp"]), (0, 2, 1)).astype(bf16)
    b_spp = jnp.asarray(params["b_spp"]).T.astype(f32)                  # (Ch, 4)
    w_att1 = jnp.transpose(jnp.asarray(params["w_att1"]), (0, 2, 1)).astype(bf16)
    b_att1 = jnp.asarray(params["b_att1"]).reshape(1, Ch).T.astype(f32)
    w_att2 = jnp.asarray(params["w_att2"]).T.astype(bf16)               # (4, Ch)
    w_out = jnp.asarray(params["w_out"]).T.astype(bf16)                 # (Cout, Ch)
    b_out = jnp.asarray(params["b_out"]).reshape(1, Cout).T.astype(f32)

    # index maps: grid = (n, phase, s)
    x_map = lambda n, p, s: (n, 0, s + p * (nS - 1 - s))   # phase 1: stay on last tile
    out_map = lambda n, p, s: (n, 0, s * p)                # written only in phase 1
    c2 = lambda n, p, s: (0, 0)
    c3 = lambda n, p, s: (0, 0, 0)

    in_specs = [
        pl.BlockSpec((1, Cin, TS), x_map),     # x (NCHW, flattened spatial)
        pl.BlockSpec((nS, TS, G), c3),         # P^T  (resident)
        pl.BlockSpec((nS, G, TS), c3),         # U^T  (resident)
        pl.BlockSpec((1, G), c2),              # 1 / window counts
        pl.BlockSpec((G, 4), c2),              # branch selector (one-hot rows)
        pl.BlockSpec((Ch, Cin), c2),           # W_red^T
        pl.BlockSpec((Ch, 1), c2),             # b_red
        pl.BlockSpec((4, Ch, Ch), c3),         # W_spp^T
        pl.BlockSpec((Ch, 4), c2),             # b_spp
        pl.BlockSpec((4, Ch, Ch), c3),         # W_att1^T
        pl.BlockSpec((Ch, 1), c2),             # b_att1
        pl.BlockSpec((4, Ch), c2),             # W_att2^T
        pl.BlockSpec((Cout, Ch), c2),          # W_out^T
        pl.BlockSpec((Cout, 1), c2),           # b_out
    ]
    out_specs = pl.BlockSpec((1, Cout, TS), out_map)
    scratch_shapes = [
        pltpu.VMEM((nS, Ch, TS), bf16),        # r (whole image for current n)
        pltpu.VMEM((Ch, G), f32),              # pooled-sum accumulator
        pltpu.VMEM((Ch, G), bf16),             # att-conv1 of pooled context
        pltpu.VMEM((Cout, G), bf16),           # W_out @ pooled context (folded)
    ]

    flops = (2 * N * S * Ch * (Cin + 2 * G)            # reduce conv + pool + att_h
             + 2 * N * S * 4 * (Ch + G)                # att conv2 + branch select
             + 2 * N * S * Cout * (Ch + G)             # fused residual/out conv
             + 2 * N * G * Ch * (2 * Ch + Cout))       # pooled-domain convs
    bytes_accessed = (N * S * Cin * 4 + N * S * Cout * 4
                      + 2 * S * G * 2
                      + 2 * (8 * Ch * Ch + Ch * Cin + Cout * Ch + 8 * Ch))

    out = pl.pallas_call(
        _make_sce_kernel(gpads),
        out_shape=jax.ShapeDtypeStruct((N, Cout, S), f32),
        grid_spec=pltpu.PrefetchScalarGridSpec(
            num_scalar_prefetch=0,
            grid=(N, 2, nS),
            in_specs=in_specs,
            out_specs=out_specs,
            scratch_shapes=scratch_shapes,
        ),
        compiler_params=pltpu.CompilerParams(
            dimension_semantics=("parallel", "arbitrary", "arbitrary"),
            vmem_limit_bytes=vmem_limit),
        cost_estimate=pl.CostEstimate(flops=int(flops),
                                      transcendentals=int(4 * N * S),
                                      bytes_accessed=int(bytes_accessed)),
    )(x, pt, ut, invc, bsel,
      w_red, b_red, w_spp, b_spp, w_att1, b_att1, w_att2, w_out, b_out)

    # (N, Cout, H*W) -> NCHW is a free reshape (no relayout pass).
    return out.reshape(N, Cout, H, W)


# ---------------------------------------------------------------------------
# Pure-JAX f32 reference (tolerance check) and parameter construction.
# ---------------------------------------------------------------------------
def sce_reference(x_nchw, params, grids=(6, 3, 2, 1)):
    N, Cin, H, W = x_nchw.shape
    x = jnp.transpose(x_nchw, (0, 2, 3, 1))
    r = jax.nn.relu(jnp.einsum("nhwc,cd->nhwd", x, params["w_red"])
                    + params["b_red"][0])
    ar = W / H
    ups = []
    for i, g in enumerate(grids):
        gh, gw = g, max(1, round(ar * g))
        wins_h, wins_w = _pool_windows(H, gh), _pool_windows(W, gw)
        pooled = jnp.stack([
            jnp.stack([r[:, h0:h1, w0:w1, :].mean(axis=(1, 2))
                       for (w0, w1) in wins_w], axis=1)
            for (h0, h1) in wins_h], axis=1)                    # [N,gh,gw,Ch]
        c = jax.nn.relu(jnp.einsum("nabc,cd->nabd", pooled, params["w_spp"][i])
                        + params["b_spp"][i])
        src_h = np.array([min((d * gh) // H, gh - 1) for d in range(H)])
        src_w = np.array([min((d * gw) // W, gw - 1) for d in range(W)])
        ups.append(c[:, src_h][:, :, src_w])                    # [N,H,W,Ch]
    att_pre = params["b_att1"][0]
    for i in range(4):
        att_pre = att_pre + jnp.einsum("nhwc,cd->nhwd", ups[i], params["w_att1"][i])
    att = jax.nn.sigmoid(jnp.einsum("nhwc,cd->nhwd", jax.nn.relu(att_pre),
                                    params["w_att2"])) + 1.0
    y = r
    for i in range(4):
        y = y + ups[i] * att[..., i:i + 1]
    out = jax.nn.relu(jnp.einsum("nhwc,cd->nhwd", y, params["w_out"])
                      + params["b_out"][0])
    return jnp.transpose(out, (0, 3, 1, 2))


def make_params(key, in_channels, head_channels, out_channels):
    """Deterministic synthetic parameters (xavier-like scale, zero biases)."""
    ks = jax.random.split(key, 5)

    def xavier(k, fan_in, fan_out, shape):
        return (jax.random.normal(k, shape, jnp.float32)
                * np.sqrt(2.0 / (fan_in + fan_out)))

    Ch = head_channels
    return {
        "w_red": xavier(ks[0], in_channels, Ch, (in_channels, Ch)),
        "b_red": jnp.zeros((1, Ch), jnp.float32),
        "w_spp": xavier(ks[1], Ch, Ch, (4, Ch, Ch)),
        "b_spp": jnp.zeros((4, Ch), jnp.float32),
        # spatial_attention[0]: ConvModule(4*Ch, Ch); stored split into 4 blocks
        "w_att1": xavier(ks[2], 4 * Ch, Ch, (4, Ch, Ch)),
        "b_att1": jnp.zeros((1, Ch), jnp.float32),
        # spatial_attention[1] is zero-initialized in the module; small random
        # values here to actually exercise the sigmoid path.
        "w_att2": 0.1 * xavier(ks[3], Ch, 4, (Ch, 4)),
        "w_out": xavier(ks[4], Ch, out_channels, (Ch, out_channels)),
        "b_out": jnp.zeros((1, out_channels), jnp.float32),
    }


if __name__ == "__main__":
    # Small shapes consistent with the module (Cin -> head=128 -> out=128).
    N, Cin, H, W = 2, 64, 16, 16
    head_ch, out_ch = 128, 128

    key = jax.random.PRNGKey(0)
    kx, kp = jax.random.split(key)
    x = jax.random.normal(kx, (N, Cin, H, W), jnp.float32)
    params = make_params(kp, Cin, head_ch, out_ch)

    y = sce_forward(x, params)
    jax.block_until_ready(y)
    assert y.shape == (N, out_ch, H, W)

    # Loose tolerance vs. f32 reference (kernel uses bf16 MXU operands).
    y_ref = sce_reference(x, params)
    err = float(jnp.max(jnp.abs(y - y_ref)))
    scale = float(jnp.max(jnp.abs(y_ref)))
    assert err < 0.1 * scale + 1e-2, (err, scale)

    print("KERNEL_OK")
</pallas_src>

<mosaic_0001>
module attributes {stable_mosaic.version = 11 : i64} {
  func.func @kernel(%arg0: i32, %arg1: i32, %arg2: i32, %arg3: memref<1x64x256xf32, #tpu.memory_space<vmem>>, %arg4: memref<1x256x72xbf16, #tpu.memory_space<vmem>>, %arg5: memref<1x72x256xbf16, #tpu.memory_space<vmem>>, %arg6: memref<1x72xf32, #tpu.memory_space<vmem>>, %arg7: memref<72x4xbf16, #tpu.memory_space<vmem>>, %arg8: memref<128x64xbf16, #tpu.memory_space<vmem>>, %arg9: memref<128x1xf32, #tpu.memory_space<vmem>>, %arg10: memref<4x128x128xbf16, #tpu.memory_space<vmem>>, %arg11: memref<128x4xf32, #tpu.memory_space<vmem>>, %arg12: memref<4x128x128xbf16, #tpu.memory_space<vmem>>, %arg13: memref<128x1xf32, #tpu.memory_space<vmem>>, %arg14: memref<4x128xbf16, #tpu.memory_space<vmem>>, %arg15: memref<128x128xbf16, #tpu.memory_space<vmem>>, %arg16: memref<128x1xf32, #tpu.memory_space<vmem>>, %arg17: memref<1x128x256xf32, #tpu.memory_space<vmem>>, %arg18: memref<1x128x256xbf16, #tpu.memory_space<vmem>>, %arg19: memref<128x72xf32, #tpu.memory_space<vmem>>, %arg20: memref<128x72xbf16, #tpu.memory_space<vmem>>, %arg21: memref<128x72xbf16, #tpu.memory_space<vmem>>) attributes {dimension_semantics = [#tpu.dimension_semantics<parallel>, #tpu.dimension_semantics<arbitrary>, #tpu.dimension_semantics<arbitrary>], iteration_bounds = array<i64: 2, 2, 1>, scalar_prefetch = 0 : i64, scratch_operands = 4 : i64, tpu.core_type = #tpu.core_type<tc>, window_params = [{transform_indices = @transform_0, window_bounds = array<i64: 1, 64, 256>}, {pipeline_mode = #tpu.pipeline_mode<synchronous>, transform_indices = @transform_1, window_bounds = array<i64: 1, 256, 72>}, {pipeline_mode = #tpu.pipeline_mode<synchronous>, transform_indices = @transform_2, window_bounds = array<i64: 1, 72, 256>}, {pipeline_mode = #tpu.pipeline_mode<synchronous>, transform_indices = @transform_3, window_bounds = array<i64: 1, 72>}, {pipeline_mode = #tpu.pipeline_mode<synchronous>, transform_indices = @transform_4, window_bounds = array<i64: 72, 4>}, {pipeline_mode = #tpu.pipeline_mode<synchronous>, transform_indices = @transform_5, window_bounds = array<i64: 128, 64>}, {pipeline_mode = #tpu.pipeline_mode<synchronous>, transform_indices = @transform_6, window_bounds = array<i64: 128, 1>}, {pipeline_mode = #tpu.pipeline_mode<synchronous>, transform_indices = @transform_7, window_bounds = array<i64: 4, 128, 128>}, {pipeline_mode = #tpu.pipeline_mode<synchronous>, transform_indices = @transform_8, window_bounds = array<i64: 128, 4>}, {pipeline_mode = #tpu.pipeline_mode<synchronous>, transform_indices = @transform_9, window_bounds = array<i64: 4, 128, 128>}, {pipeline_mode = #tpu.pipeline_mode<synchronous>, transform_indices = @transform_10, window_bounds = array<i64: 128, 1>}, {pipeline_mode = #tpu.pipeline_mode<synchronous>, transform_indices = @transform_11, window_bounds = array<i64: 4, 128>}, {pipeline_mode = #tpu.pipeline_mode<synchronous>, transform_indices = @transform_12, window_bounds = array<i64: 128, 128>}, {pipeline_mode = #tpu.pipeline_mode<synchronous>, transform_indices = @transform_13, window_bounds = array<i64: 128, 1>}, {transform_indices = @transform_14, window_bounds = array<i64: 1, 128, 256>}]} {
    %c0_i32 = arith.constant 0 : i32
    %0 = arith.cmpi eq, %arg1, %c0_i32 : i32
    %1 = arith.extui %0 : i1 to i32
    %c0_i32_0 = arith.constant 0 : i32
    %2 = arith.cmpi ne, %1, %c0_i32_0 : i32
    scf.if %2 {
      %c0 = arith.constant 0 : index
      %c0_2 = arith.constant 0 : index
      %c0_3 = arith.constant 0 : index
      %6 = vector.load %arg3[%c0, %c0_2, %c0_3] : memref<1x64x256xf32, #tpu.memory_space<vmem>>, vector<1x64x256xf32>
      %7 = vector.shape_cast %6 : vector<1x64x256xf32> to vector<64x256xf32>
      %8 = arith.truncf %7 : vector<64x256xf32> to vector<64x256xbf16>
      %c0_4 = arith.constant 0 : index
      %c0_5 = arith.constant 0 : index
      %9 = vector.load %arg8[%c0_4, %c0_5] : memref<128x64xbf16, #tpu.memory_space<vmem>>, vector<128x64xbf16>
      %cst = arith.constant dense<0.000000e+00> : vector<128x256xf32>
      %10 = tpu.matmul %9, %8, %cst {dimension_numbers = #tpu.dot_dimension_numbers<[1], [0], [0], [1], [0, 0, 1, 1], [], []>} : vector<128x64xbf16>, vector<64x256xbf16>, vector<128x256xf32> -> vector<128x256xf32>
      %c0_6 = arith.constant 0 : index
      %c0_7 = arith.constant 0 : index
      %11 = vector.load %arg9[%c0_6, %c0_7] : memref<128x1xf32, #tpu.memory_space<vmem>>, vector<128x1xf32>
      %12 = vector.broadcast %11 : vector<128x1xf32> to vector<128x256xf32>
      %13 = arith.addf %10, %12 : vector<128x256xf32>
      %cst_8 = arith.constant 0.000000e+00 : f32
      %14 = vector.broadcast %cst_8 : f32 to vector<128x256xf32>
      %15 = arith.maximumf %13, %14 : vector<128x256xf32>
      %16 = arith.truncf %15 : vector<128x256xf32> to vector<128x256xbf16>
      %17 = arith.index_cast %arg2 : i32 to index
      %c0_9 = arith.constant 0 : index
      %c0_10 = arith.constant 0 : index
      %18 = vector.load %arg18[%17, %c0_9, %c0_10] : memref<1x128x256xbf16, #tpu.memory_space<vmem>>, vector<1x128x256xbf16>
      %19 = vector.shape_cast %18 : vector<1x128x256xbf16> to vector<128x256xbf16>
      %20 = vector.shape_cast %16 : vector<128x256xbf16> to vector<1x128x256xbf16>
      tpu.vector_store %arg18[%17, %c0_9, %c0_10], %20 {strides = array<i32>} : memref<1x128x256xbf16, #tpu.memory_space<vmem>>, vector<1x128x256xbf16>,
      %c0_i32_11 = arith.constant 0 : i32
      %21 = arith.cmpi eq, %arg2, %c0_i32_11 : i32
      %22 = arith.extui %21 : i1 to i32
      %c0_i32_12 = arith.constant 0 : i32
      %23 = arith.cmpi ne, %22, %c0_i32_12 : i32
      scf.if %23 {
        %cst_22 = arith.constant 0.000000e+00 : f32
        %34 = vector.broadcast %cst_22 : f32 to vector<128x72xf32>
        %c0_23 = arith.constant 0 : index
        %c0_24 = arith.constant 0 : index
        %35 = vector.load %arg19[%c0_23, %c0_24] : memref<128x72xf32, #tpu.memory_space<vmem>>, vector<128x72xf32>
        tpu.vector_store %arg19[%c0_23, %c0_24], %34 {strides = array<i32>} : memref<128x72xf32, #tpu.memory_space<vmem>>, vector<128x72xf32>,
      } else {
      }
      %c0_13 = arith.constant 0 : index
      %c0_14 = arith.constant 0 : index
      %24 = vector.load %arg19[%c0_13, %c0_14] : memref<128x72xf32, #tpu.memory_space<vmem>>, vector<128x72xf32>
      %25 = arith.index_cast %arg2 : i32 to index
      %c0_15 = arith.constant 0 : index
      %c0_16 = arith.constant 0 : index
      %26 = vector.load %arg4[%25, %c0_15, %c0_16] : memref<1x256x72xbf16, #tpu.memory_space<vmem>>, vector<1x256x72xbf16>
      %27 = vector.shape_cast %26 : vector<1x256x72xbf16> to vector<256x72xbf16>
      %cst_17 = arith.constant dense<0.000000e+00> : vector<128x72xf32>
      %28 = tpu.matmul %16, %27, %cst_17 {dimension_numbers = #tpu.dot_dimension_numbers<[1], [0], [0], [1], [0, 0, 1, 1], [], []>} : vector<128x256xbf16>, vector<256x72xbf16>, vector<128x72xf32> -> vector<128x72xf32>
      %29 = arith.addf %24, %28 : vector<128x72xf32>
      %c0_18 = arith.constant 0 : index
      %c0_19 = arith.constant 0 : index
      %30 = vector.load %arg19[%c0_18, %c0_19] : memref<128x72xf32, #tpu.memory_space<vmem>>, vector<128x72xf32>
      tpu.vector_store %arg19[%c0_18, %c0_19], %29 {strides = array<i32>} : memref<128x72xf32, #tpu.memory_space<vmem>>, vector<128x72xf32>,
      %c0_i32_20 = arith.constant 0 : i32
      %31 = arith.cmpi eq, %arg2, %c0_i32_20 : i32
      %32 = arith.extui %31 : i1 to i32
      %c0_i32_21 = arith.constant 0 : i32
      %33 = arith.cmpi ne, %32, %c0_i32_21 : i32
      scf.if %33 {
        %c0_22 = arith.constant 0 : index
        %c0_23 = arith.constant 0 : index
        %34 = vector.load %arg19[%c0_22, %c0_23] : memref<128x72xf32, #tpu.memory_space<vmem>>, vector<128x72xf32>
        %c0_24 = arith.constant 0 : index
        %c0_25 = arith.constant 0 : index
        %35 = vector.load %arg6[%c0_24, %c0_25] : memref<1x72xf32, #tpu.memory_space<vmem>>, vector<1x72xf32>
        %36 = vector.broadcast %35 : vector<1x72xf32> to vector<128x72xf32>
        %37 = arith.mulf %34, %36 : vector<128x72xf32>
        %38 = arith.truncf %37 : vector<128x72xf32> to vector<128x72xbf16>
        %c0_26 = arith.constant 0 : index
        %c0_27 = arith.constant 0 : index
        %39 = vector.load %arg11[%c0_26, %c0_27] : memref<128x4xf32, #tpu.memory_space<vmem>>, vector<128x4xf32>
        %40 = vector.extract_strided_slice %38 {offsets = [0, 0], sizes = [128, 40], strides = [1, 1]} : vector<128x72xbf16> to vector<128x40xbf16>
        %c0_28 = arith.constant 0 : index
        %c0_29 = arith.constant 0 : index
        %c0_30 = arith.constant 0 : index
        %41 = vector.load %arg10[%c0_28, %c0_29, %c0_30] : memref<4x128x128xbf16, #tpu.memory_space<vmem>>, vector<1x128x128xbf16>
        %42 = vector.shape_cast %41 : vector<1x128x128xbf16> to vector<128x128xbf16>
        %cst_31 = arith.constant dense<0.000000e+00> : vector<128x40xf32>
        %43 = tpu.matmul %42, %40, %cst_31 {dimension_numbers = #tpu.dot_dimension_numbers<[1], [0], [0], [1], [0, 0, 1, 1], [], []>} : vector<128x128xbf16>, vector<128x40xbf16>, vector<128x40xf32> -> vector<128x40xf32>
        %44 = vector.extract_strided_slice %39 {offsets = [0, 0], sizes = [128, 1], strides = [1, 1]} : vector<128x4xf32> to vector<128x1xf32>
        %45 = vector.broadcast %44 : vector<128x1xf32> to vector<128x40xf32>
        %46 = arith.addf %43, %45 : vector<128x40xf32>
        %cst_32 = arith.constant 0.000000e+00 : f32
        %47 = vector.broadcast %cst_32 : f32 to vector<128x40xf32>
        %48 = arith.maximumf %46, %47 : vector<128x40xf32>
        %49 = arith.truncf %48 : vector<128x40xf32> to vector<128x40xbf16>
        %c0_33 = arith.constant 0 : index
        %c0_34 = arith.constant 0 : index
        %c0_35 = arith.constant 0 : index
        %50 = vector.load %arg12[%c0_33, %c0_34, %c0_35] : memref<4x128x128xbf16, #tpu.memory_space<vmem>>, vector<1x128x128xbf16>
        %51 = vector.shape_cast %50 : vector<1x128x128xbf16> to vector<128x128xbf16>
        %cst_36 = arith.constant dense<0.000000e+00> : vector<128x40xf32>
        %52 = tpu.matmul %51, %49, %cst_36 {dimension_numbers = #tpu.dot_dimension_numbers<[1], [0], [0], [1], [0, 0, 1, 1], [], []>} : vector<128x128xbf16>, vector<128x40xbf16>, vector<128x40xf32> -> vector<128x40xf32>
        %53 = arith.truncf %52 : vector<128x40xf32> to vector<128x40xbf16>
        %c0_37 = arith.constant 0 : index
        %c0_38 = arith.constant 0 : index
        %54 = vector.load %arg20[%c0_37, %c0_38] : memref<128x72xbf16, #tpu.memory_space<vmem>>, vector<128x40xbf16>
        tpu.vector_store %arg20[%c0_37, %c0_38], %53 {strides = array<i32>} : memref<128x72xbf16, #tpu.memory_space<vmem>>, vector<128x40xbf16>,
        %c0_39 = arith.constant 0 : index
        %c0_40 = arith.constant 0 : index
        %55 = vector.load %arg15[%c0_39, %c0_40] : memref<128x128xbf16, #tpu.memory_space<vmem>>, vector<128x128xbf16>
        %cst_41 = arith.constant dense<0.000000e+00> : vector<128x40xf32>
        %56 = tpu.matmul %55, %49, %cst_41 {dimension_numbers = #tpu.dot_dimension_numbers<[1], [0], [0], [1], [0, 0, 1, 1], [], []>} : vector<128x128xbf16>, vector<128x40xbf16>, vector<128x40xf32> -> vector<128x40xf32>
        %57 = arith.truncf %56 : vector<128x40xf32> to vector<128x40xbf16>
        %c0_42 = arith.constant 0 : index
        %c0_43 = arith.constant 0 : index
        %58 = vector.load %arg21[%c0_42, %c0_43] : memref<128x72xbf16, #tpu.memory_space<vmem>>, vector<128x40xbf16>
        tpu.vector_store %arg21[%c0_42, %c0_43], %57 {strides = array<i32>} : memref<128x72xbf16, #tpu.memory_space<vmem>>, vector<128x40xbf16>,
        %59 = vector.extract_strided_slice %38 {offsets = [0, 40], sizes = [128, 16], strides = [1, 1]} : vector<128x72xbf16> to vector<128x16xbf16>
        %c1 = arith.constant 1 : index
        %c0_44 = arith.constant 0 : index
        %c0_45 = arith.constant 0 : index
        %60 = vector.load %arg10[%c1, %c0_44, %c0_45] : memref<4x128x128xbf16, #tpu.memory_space<vmem>>, vector<1x128x128xbf16>
        %61 = vector.shape_cast %60 : vector<1x128x128xbf16> to vector<128x128xbf16>
        %cst_46 = arith.constant dense<0.000000e+00> : vector<128x16xf32>
        %62 = tpu.matmul %61, %59, %cst_46 {dimension_numbers = #tpu.dot_dimension_numbers<[1], [0], [0], [1], [0, 0, 1, 1], [], []>} : vector<128x128xbf16>, vector<128x16xbf16>, vector<128x16xf32> -> vector<128x16xf32>
        %63 = vector.extract_strided_slice %39 {offsets = [0, 1], sizes = [128, 1], strides = [1, 1]} : vector<128x4xf32> to vector<128x1xf32>
        %64 = vector.broadcast %63 : vector<128x1xf32> to vector<128x16xf32>
        %65 = arith.addf %62, %64 : vector<128x16xf32>
        %cst_47 = arith.constant 0.000000e+00 : f32
        %66 = vector.broadcast %cst_47 : f32 to vector<128x16xf32>
        %67 = arith.maximumf %65, %66 : vector<128x16xf32>
        %68 = arith.truncf %67 : vector<128x16xf32> to vector<128x16xbf16>
        %c1_48 = arith.constant 1 : index
        %c0_49 = arith.constant 0 : index
        %c0_50 = arith.constant 0 : index
        %69 = vector.load %arg12[%c1_48, %c0_49, %c0_50] : memref<4x128x128xbf16, #tpu.memory_space<vmem>>, vector<1x128x128xbf16>
        %70 = vector.shape_cast %69 : vector<1x128x128xbf16> to vector<128x128xbf16>
        %cst_51 = arith.constant dense<0.000000e+00> : vector<128x16xf32>
        %71 = tpu.matmul %70, %68, %cst_51 {dimension_numbers = #tpu.dot_dimension_numbers<[1], [0], [0], [1], [0, 0, 1, 1], [], []>} : vector<128x128xbf16>, vector<128x16xbf16>, vector<128x16xf32> -> vector<128x16xf32>
        %72 = arith.truncf %71 : vector<128x16xf32> to vector<128x16xbf16>
        %c0_52 = arith.constant 0 : index
        %c40 = arith.constant 40 : index
        %73 = vector.load %arg20[%c0_52, %c40] : memref<128x72xbf16, #tpu.memory_space<vmem>>, vector<128x16xbf16>
        tpu.vector_store %arg20[%c0_52, %c40], %72 {strides = array<i32>} : memref<128x72xbf16, #tpu.memory_space<vmem>>, vector<128x16xbf16>,
        %c0_53 = arith.constant 0 : index
        %c0_54 = arith.constant 0 : index
        %74 = vector.load %arg15[%c0_53, %c0_54] : memref<128x128xbf16, #tpu.memory_space<vmem>>, vector<128x128xbf16>
        %cst_55 = arith.constant dense<0.000000e+00> : vector<128x16xf32>
        %75 = tpu.matmul %74, %68, %cst_55 {dimension_numbers = #tpu.dot_dimension_numbers<[1], [0], [0], [1], [0, 0, 1, 1], [], []>} : vector<128x128xbf16>, vector<128x16xbf16>, vector<128x16xf32> -> vector<128x16xf32>
        %76 = arith.truncf %75 : vector<128x16xf32> to vector<128x16xbf16>
        %c0_56 = arith.constant 0 : index
        %c40_57 = arith.constant 40 : index
        %77 = vector.load %arg21[%c0_56, %c40_57] : memref<128x72xbf16, #tpu.memory_space<vmem>>, vector<128x16xbf16>
        tpu.vector_store %arg21[%c0_56, %c40_57], %76 {strides = array<i32>} : memref<128x72xbf16, #tpu.memory_space<vmem>>, vector<128x16xbf16>,
        %78 = vector.extract_strided_slice %38 {offsets = [0, 56], sizes = [128, 8], strides = [1, 1]} : vector<128x72xbf16> to vector<128x8xbf16>
        %c2 = arith.constant 2 : index
        %c0_58 = arith.constant 0 : index
        %c0_59 = arith.constant 0 : index
        %79 = vector.load %arg10[%c2, %c0_58, %c0_59] : memref<4x128x128xbf16, #tpu.memory_space<vmem>>, vector<1x128x128xbf16>
        %80 = vector.shape_cast %79 : vector<1x128x128xbf16> to vector<128x128xbf16>
        %cst_60 = arith.constant dense<0.000000e+00> : vector<128x8xf32>
        %81 = tpu.matmul %80, %78, %cst_60 {dimension_numbers = #tpu.dot_dimension_numbers<[1], [0], [0], [1], [0, 0, 1, 1], [], []>} : vector<128x128xbf16>, vector<128x8xbf16>, vector<128x8xf32> -> vector<128x8xf32>
        %82 = vector.extract_strided_slice %39 {offsets = [0, 2], sizes = [128, 1], strides = [1, 1]} : vector<128x4xf32> to vector<128x1xf32>
        %83 = vector.broadcast %82 : vector<128x1xf32> to vector<128x8xf32>
        %84 = arith.addf %81, %83 : vector<128x8xf32>
        %cst_61 = arith.constant 0.000000e+00 : f32
        %85 = vector.broadcast %cst_61 : f32 to vector<128x8xf32>
        %86 = arith.maximumf %84, %85 : vector<128x8xf32>
        %87 = arith.truncf %86 : vector<128x8xf32> to vector<128x8xbf16>
        %c2_62 = arith.constant 2 : index
        %c0_63 = arith.constant 0 : index
        %c0_64 = arith.constant 0 : index
        %88 = vector.load %arg12[%c2_62, %c0_63, %c0_64] : memref<4x128x128xbf16, #tpu.memory_space<vmem>>, vector<1x128x128xbf16>
        %89 = vector.shape_cast %88 : vector<1x128x128xbf16> to vector<128x128xbf16>
        %cst_65 = arith.constant dense<0.000000e+00> : vector<128x8xf32>
        %90 = tpu.matmul %89, %87, %cst_65 {dimension_numbers = #tpu.dot_dimension_numbers<[1], [0], [0], [1], [0, 0, 1, 1], [], []>} : vector<128x128xbf16>, vector<128x8xbf16>, vector<128x8xf32> -> vector<128x8xf32>
        %91 = arith.truncf %90 : vector<128x8xf32> to vector<128x8xbf16>
        %c0_66 = arith.constant 0 : index
        %c56 = arith.constant 56 : index
        %92 = vector.load %arg20[%c0_66, %c56] : memref<128x72xbf16, #tpu.memory_space<vmem>>, vector<128x8xbf16>
        tpu.vector_store %arg20[%c0_66, %c56], %91 {strides = array<i32>} : memref<128x72xbf16, #tpu.memory_space<vmem>>, vector<128x8xbf16>,
        %c0_67 = arith.constant 0 : index
        %c0_68 = arith.constant 0 : index
        %93 = vector.load %arg15[%c0_67, %c0_68] : memref<128x128xbf16, #tpu.memory_space<vmem>>, vector<128x128xbf16>
        %cst_69 = arith.constant dense<0.000000e+00> : vector<128x8xf32>
        %94 = tpu.matmul %93, %87, %cst_69 {dimension_numbers = #tpu.dot_dimension_numbers<[1], [0], [0], [1], [0, 0, 1, 1], [], []>} : vector<128x128xbf16>, vector<128x8xbf16>, vector<128x8xf32> -> vector<128x8xf32>
        %95 = arith.truncf %94 : vector<128x8xf32> to vector<128x8xbf16>
        %c0_70 = arith.constant 0 : index
        %c56_71 = arith.constant 56 : index
        %96 = vector.load %arg21[%c0_70, %c56_71] : memref<128x72xbf16, #tpu.memory_space<vmem>>, vector<128x8xbf16>
        tpu.vector_store %arg21[%c0_70, %c56_71], %95 {strides = array<i32>} : memref<128x72xbf16, #tpu.memory_space<vmem>>, vector<128x8xbf16>,
        %97 = vector.extract_strided_slice %38 {offsets = [0, 64], sizes = [128, 8], strides = [1, 1]} : vector<128x72xbf16> to vector<128x8xbf16>
        %c3 = arith.constant 3 : index
        %c0_72 = arith.constant 0 : index
        %c0_73 = arith.constant 0 : index
        %98 = vector.load %arg10[%c3, %c0_72, %c0_73] : memref<4x128x128xbf16, #tpu.memory_space<vmem>>, vector<1x128x128xbf16>
        %99 = vector.shape_cast %98 : vector<1x128x128xbf16> to vector<128x128xbf16>
        %cst_74 = arith.constant dense<0.000000e+00> : vector<128x8xf32>
        %100 = tpu.matmul %99, %97, %cst_74 {dimension_numbers = #tpu.dot_dimension_numbers<[1], [0], [0], [1], [0, 0, 1, 1], [], []>} : vector<128x128xbf16>, vector<128x8xbf16>, vector<128x8xf32> -> vector<128x8xf32>
        %101 = vector.extract_strided_slice %39 {offsets = [0, 3], sizes = [128, 1], strides = [1, 1]} : vector<128x4xf32> to vector<128x1xf32>
        %102 = vector.broadcast %101 : vector<128x1xf32> to vector<128x8xf32>
        %103 = arith.addf %100, %102 : vector<128x8xf32>
        %cst_75 = arith.constant 0.000000e+00 : f32
        %104 = vector.broadcast %cst_75 : f32 to vector<128x8xf32>
        %105 = arith.maximumf %103, %104 : vector<128x8xf32>
        %106 = arith.truncf %105 : vector<128x8xf32> to vector<128x8xbf16>
        %c3_76 = arith.constant 3 : index
        %c0_77 = arith.constant 0 : index
        %c0_78 = arith.constant 0 : index
        %107 = vector.load %arg12[%c3_76, %c0_77, %c0_78] : memref<4x128x128xbf16, #tpu.memory_space<vmem>>, vector<1x128x128xbf16>
        %108 = vector.shape_cast %107 : vector<1x128x128xbf16> to vector<128x128xbf16>
        %cst_79 = arith.constant dense<0.000000e+00> : vector<128x8xf32>
        %109 = tpu.matmul %108, %106, %cst_79 {dimension_numbers = #tpu.dot_dimension_numbers<[1], [0], [0], [1], [0, 0, 1, 1], [], []>} : vector<128x128xbf16>, vector<128x8xbf16>, vector<128x8xf32> -> vector<128x8xf32>
        %110 = arith.truncf %109 : vector<128x8xf32> to vector<128x8xbf16>
        %c0_80 = arith.constant 0 : index
        %c64 = arith.constant 64 : index
        %111 = vector.load %arg20[%c0_80, %c64] : memref<128x72xbf16, #tpu.memory_space<vmem>>, vector<128x8xbf16>
        tpu.vector_store %arg20[%c0_80, %c64], %110 {strides = array<i32>} : memref<128x72xbf16, #tpu.memory_space<vmem>>, vector<128x8xbf16>,
        %c0_81 = arith.constant 0 : index
        %c0_82 = arith.constant 0 : index
        %112 = vector.load %arg15[%c0_81, %c0_82] : memref<128x128xbf16, #tpu.memory_space<vmem>>, vector<128x128xbf16>
        %cst_83 = arith.constant dense<0.000000e+00> : vector<128x8xf32>
        %113 = tpu.matmul %112, %106, %cst_83 {dimension_numbers = #tpu.dot_dimension_numbers<[1], [0], [0], [1], [0, 0, 1, 1], [], []>} : vector<128x128xbf16>, vector<128x8xbf16>, vector<128x8xf32> -> vector<128x8xf32>
        %114 = arith.truncf %113 : vector<128x8xf32> to vector<128x8xbf16>
        %c0_84 = arith.constant 0 : index
        %c64_85 = arith.constant 64 : index
        %115 = vector.load %arg21[%c0_84, %c64_85] : memref<128x72xbf16, #tpu.memory_space<vmem>>, vector<128x8xbf16>
        tpu.vector_store %arg21[%c0_84, %c64_85], %114 {strides = array<i32>} : memref<128x72xbf16, #tpu.memory_space<vmem>>, vector<128x8xbf16>,
      } else {
      }
    } else {
    }
    %c1_i32 = arith.constant 1 : i32
    %3 = arith.cmpi eq, %arg1, %c1_i32 : i32
    %4 = arith.extui %3 : i1 to i32
    %c0_i32_1 = arith.constant 0 : i32
    %5 = arith.cmpi ne, %4, %c0_i32_1 : i32
    scf.if %5 {
      %6 = arith.index_cast %arg2 : i32 to index
      %c0 = arith.constant 0 : index
      %c0_2 = arith.constant 0 : index
      %7 = vector.load %arg18[%6, %c0, %c0_2] : memref<1x128x256xbf16, #tpu.memory_space<vmem>>, vector<1x128x256xbf16>
      %8 = vector.shape_cast %7 : vector<1x128x256xbf16> to vector<128x256xbf16>
      %9 = arith.index_cast %arg2 : i32 to index
      %c0_3 = arith.constant 0 : index
      %c0_4 = arith.constant 0 : index
      %10 = vector.load %arg5[%9, %c0_3, %c0_4] : memref<1x72x256xbf16, #tpu.memory_space<vmem>>, vector<1x72x256xbf16>
      %11 = vector.shape_cast %10 : vector<1x72x256xbf16> to vector<72x256xbf16>
      %c0_5 = arith.constant 0 : index
      %c0_6 = arith.constant 0 : index
      %12 = vector.load %arg20[%c0_5, %c0_6] : memref<128x72xbf16, #tpu.memory_space<vmem>>, vector<128x72xbf16>
      %cst = arith.constant dense<0.000000e+00> : vector<128x256xf32>
      %13 = tpu.matmul %12, %11, %cst {dimension_numbers = #tpu.dot_dimension_numbers<[1], [0], [0], [1], [0, 0, 1, 1], [], []>} : vector<128x72xbf16>, vector<72x256xbf16>, vector<128x256xf32> -> vector<128x256xf32>
      %c0_7 = arith.constant 0 : index
      %c0_8 = arith.constant 0 : index
      %14 = vector.load %arg13[%c0_7, %c0_8] : memref<128x1xf32, #tpu.memory_space<vmem>>, vector<128x1xf32>
      %15 = vector.broadcast %14 : vector<128x1xf32> to vector<128x256xf32>
      %16 = arith.addf %13, %15 : vector<128x256xf32>
      %cst_9 = arith.constant 0.000000e+00 : f32
      %17 = vector.broadcast %cst_9 : f32 to vector<128x256xf32>
      %18 = arith.maximumf %16, %17 : vector<128x256xf32>
      %c0_10 = arith.constant 0 : index
      %c0_11 = arith.constant 0 : index
      %19 = vector.load %arg14[%c0_10, %c0_11] : memref<4x128xbf16, #tpu.memory_space<vmem>>, vector<4x128xbf16>
      %20 = arith.truncf %18 : vector<128x256xf32> to vector<128x256xbf16>
      %cst_12 = arith.constant dense<0.000000e+00> : vector<4x256xf32>
      %21 = tpu.matmul %19, %20, %cst_12 {dimension_numbers = #tpu.dot_dimension_numbers<[1], [0], [0], [1], [0, 0, 1, 1], [], []>} : vector<4x128xbf16>, vector<128x256xbf16>, vector<4x256xf32> -> vector<4x256xf32>
      %22 = arith.negf %21 : vector<4x256xf32>
      %23 = math.exp %22 : vector<4x256xf32>
      %cst_13 = arith.constant 1.000000e+00 : f32
      %24 = vector.broadcast %cst_13 : f32 to vector<4x256xf32>
      %25 = arith.addf %24, %23 : vector<4x256xf32>
      %26 = arith.divf %24, %25 : vector<4x256xf32>
      %cst_14 = arith.constant 1.000000e+00 : f32
      %27 = vector.broadcast %cst_14 : f32 to vector<4x256xf32>
      %28 = arith.addf %26, %27 : vector<4x256xf32>
      %29 = arith.truncf %28 : vector<4x256xf32> to vector<4x256xbf16>
      %c0_15 = arith.constant 0 : index
      %c0_16 = arith.constant 0 : index
      %30 = vector.load %arg7[%c0_15, %c0_16] : memref<72x4xbf16, #tpu.memory_space<vmem>>, vector<72x4xbf16>
      %cst_17 = arith.constant dense<0.000000e+00> : vector<72x256xf32>
      %31 = tpu.matmul %30, %29, %cst_17 {dimension_numbers = #tpu.dot_dimension_numbers<[1], [0], [0], [1], [0, 0, 1, 1], [], []>} : vector<72x4xbf16>, vector<4x256xbf16>, vector<72x256xf32> -> vector<72x256xf32>
      %32 = arith.truncf %31 : vector<72x256xf32> to vector<72x256xbf16>
      %33 = arith.mulf %11, %32 : vector<72x256xbf16>
      %c0_18 = arith.constant 0 : index
      %c0_19 = arith.constant 0 : index
      %34 = vector.load %arg15[%c0_18, %c0_19] : memref<128x128xbf16, #tpu.memory_space<vmem>>, vector<128x128xbf16>
      %cst_20 = arith.constant dense<0.000000e+00> : vector<128x256xf32>
      %35 = tpu.matmul %34, %8, %cst_20 {dimension_numbers = #tpu.dot_dimension_numbers<[1], [0], [0], [1], [0, 0, 1, 1], [], []>} : vector<128x128xbf16>, vector<128x256xbf16>, vector<128x256xf32> -> vector<128x256xf32>
      %c0_21 = arith.constant 0 : index
      %c0_22 = arith.constant 0 : index
      %36 = vector.load %arg21[%c0_21, %c0_22] : memref<128x72xbf16, #tpu.memory_space<vmem>>, vector<128x72xbf16>
      %cst_23 = arith.constant dense<0.000000e+00> : vector<128x256xf32>
      %37 = tpu.matmul %36, %33, %cst_23 {dimension_numbers = #tpu.dot_dimension_numbers<[1], [0], [0], [1], [0, 0, 1, 1], [], []>} : vector<128x72xbf16>, vector<72x256xbf16>, vector<128x256xf32> -> vector<128x256xf32>
      %38 = arith.addf %35, %37 : vector<128x256xf32>
      %c0_24 = arith.constant 0 : index
      %c0_25 = arith.constant 0 : index
      %39 = vector.load %arg16[%c0_24, %c0_25] : memref<128x1xf32, #tpu.memory_space<vmem>>, vector<128x1xf32>
      %40 = vector.broadcast %39 : vector<128x1xf32> to vector<128x256xf32>
      %41 = arith.addf %38, %40 : vector<128x256xf32>
      %cst_26 = arith.constant 0.000000e+00 : f32
      %42 = vector.broadcast %cst_26 : f32 to vector<128x256xf32>
      %43 = arith.maximumf %41, %42 : vector<128x256xf32>
      %c0_27 = arith.constant 0 : index
      %c0_28 = arith.constant 0 : index
      %c0_29 = arith.constant 0 : index
      %44 = vector.load %arg17[%c0_27, %c0_28, %c0_29] : memref<1x128x256xf32, #tpu.memory_space<vmem>>, vector<1x128x256xf32>
      %45 = vector.shape_cast %44 : vector<1x128x256xf32> to vector<128x256xf32>
      %46 = vector.shape_cast %43 : vector<128x256xf32> to vector<1x128x256xf32>
      tpu.vector_store %arg17[%c0_27, %c0_28, %c0_29], %46 {strides = array<i32>} : memref<1x128x256xf32, #tpu.memory_space<vmem>>, vector<1x128x256xf32>,
    } else {
    }
    return
  }
  func.func @transform_0(%arg0: i32, %arg1: i32, %arg2: i32) -> (i32, i32, i32) {
    %c0_i32 = arith.constant 0 : i32
    %0 = arith.subi %c0_i32, %arg2 : i32
    %1 = arith.muli %arg1, %0 : i32
    %2 = arith.addi %arg2, %1 : i32
    %c0_i32_0 = arith.constant 0 : i32
    %c0_i32_1 = arith.constant 0 : i32
    return %arg0, %c0_i32_0, %2 : i32, i32, i32
  }
  func.func @transform_1(%arg0: i32, %arg1: i32, %arg2: i32) -> (i32, i32, i32) {
    %c0_i32 = arith.constant 0 : i32
    %c0_i32_0 = arith.constant 0 : i32
    %c0_i32_1 = arith.constant 0 : i32
    %c0_i32_2 = arith.constant 0 : i32
    return %c0_i32, %c0_i32_0, %c0_i32_1 : i32, i32, i32
  }
  func.func @transform_2(%arg0: i32, %arg1: i32, %arg2: i32) -> (i32, i32, i32) {
    %c0_i32 = arith.constant 0 : i32
    %c0_i32_0 = arith.constant 0 : i32
    %c0_i32_1 = arith.constant 0 : i32
    %c0_i32_2 = arith.constant 0 : i32
    return %c0_i32, %c0_i32_0, %c0_i32_1 : i32, i32, i32
  }
  func.func @transform_3(%arg0: i32, %arg1: i32, %arg2: i32) -> (i32, i32) {
    %c0_i32 = arith.constant 0 : i32
    %c0_i32_0 = arith.constant 0 : i32
    %c0_i32_1 = arith.constant 0 : i32
    return %c0_i32, %c0_i32_0 : i32, i32
  }
  func.func @transform_4(%arg0: i32, %arg1: i32, %arg2: i32) -> (i32, i32) {
    %c0_i32 = arith.constant 0 : i32
    %c0_i32_0 = arith.constant 0 : i32
    %c0_i32_1 = arith.constant 0 : i32
    return %c0_i32, %c0_i32_0 : i32, i32
  }
  func.func @transform_5(%arg0: i32, %arg1: i32, %arg2: i32) -> (i32, i32) {
    %c0_i32 = arith.constant 0 : i32
    %c0_i32_0 = arith.constant 0 : i32
    %c0_i32_1 = arith.constant 0 : i32
    return %c0_i32, %c0_i32_0 : i32, i32
  }
  func.func @transform_6(%arg0: i32, %arg1: i32, %arg2: i32) -> (i32, i32) {
    %c0_i32 = arith.constant 0 : i32
    %c0_i32_0 = arith.constant 0 : i32
    %c0_i32_1 = arith.constant 0 : i32
    return %c0_i32, %c0_i32_0 : i32, i32
  }
  func.func @transform_7(%arg0: i32, %arg1: i32, %arg2: i32) -> (i32, i32, i32) {
    %c0_i32 = arith.constant 0 : i32
    %c0_i32_0 = arith.constant 0 : i32
    %c0_i32_1 = arith.constant 0 : i32
    %c0_i32_2 = arith.constant 0 : i32
    return %c0_i32, %c0_i32_0, %c0_i32_1 : i32, i32, i32
  }
  func.func @transform_8(%arg0: i32, %arg1: i32, %arg2: i32) -> (i32, i32) {
    %c0_i32 = arith.constant 0 : i32
    %c0_i32_0 = arith.constant 0 : i32
    %c0_i32_1 = arith.constant 0 : i32
    return %c0_i32, %c0_i32_0 : i32, i32
  }
  func.func @transform_9(%arg0: i32, %arg1: i32, %arg2: i32) -> (i32, i32, i32) {
    %c0_i32 = arith.constant 0 : i32
    %c0_i32_0 = arith.constant 0 : i32
    %c0_i32_1 = arith.constant 0 : i32
    %c0_i32_2 = arith.constant 0 : i32
    return %c0_i32, %c0_i32_0, %c0_i32_1 : i32, i32, i32
  }
  func.func @transform_10(%arg0: i32, %arg1: i32, %arg2: i32) -> (i32, i32) {
    %c0_i32 = arith.constant 0 : i32
    %c0_i32_0 = arith.constant 0 : i32
    %c0_i32_1 = arith.constant 0 : i32
    return %c0_i32, %c0_i32_0 : i32, i32
  }
  func.func @transform_11(%arg0: i32, %arg1: i32, %arg2: i32) -> (i32, i32) {
    %c0_i32 = arith.constant 0 : i32
    %c0_i32_0 = arith.constant 0 : i32
    %c0_i32_1 = arith.constant 0 : i32
    return %c0_i32, %c0_i32_0 : i32, i32
  }
  func.func @transform_12(%arg0: i32, %arg1: i32, %arg2: i32) -> (i32, i32) {
    %c0_i32 = arith.constant 0 : i32
    %c0_i32_0 = arith.constant 0 : i32
    %c0_i32_1 = arith.constant 0 : i32
    return %c0_i32, %c0_i32_0 : i32, i32
  }
  func.func @transform_13(%arg0: i32, %arg1: i32, %arg2: i32) -> (i32, i32) {
    %c0_i32 = arith.constant 0 : i32
    %c0_i32_0 = arith.constant 0 : i32
    %c0_i32_1 = arith.constant 0 : i32
    return %c0_i32, %c0_i32_0 : i32, i32
  }
  func.func @transform_14(%arg0: i32, %arg1: i32, %arg2: i32) -> (i32, i32, i32) {
    %0 = arith.muli %arg2, %arg1 : i32
    %c0_i32 = arith.constant 0 : i32
    %c0_i32_0 = arith.constant 0 : i32
    return %arg0, %c0_i32, %0 : i32, i32, i32
  }
}

</mosaic_0001>

<bundles_post_ra>
// kernel: tpu_custom_call.1
= control target key start
LH: loop header
LB: loop body
LE: loop exit
PB: predicated region body
PF: predicated region fallthrough
CT: control target
= control target key end

     0   :  { %s8159_s0 = inlined_call_operand.vmem [shape: f32[2,64,256], index: 0, kind: input, shape index: {}]   ;;  %s8160_s1 = inlined_call_operand.vmem [shape: bf16[1,256,72], index: 1, kind: input, shape index: {}]   ;;  %s8161_s2 = inlined_call_operand.vmem [shape: bf16[1,72,256], index: 2, kind: input, shape index: {}]   ;;  %s8162_s3 = inlined_call_operand.vmem [shape: f32[1,72], index: 3, kind: input, shape index: {}]   ;;  %s8163_s4 = inlined_call_operand.vmem [shape: bf16[72,4], index: 4, kind: input, shape index: {}]   ;;  %s8164_s5 = inlined_call_operand.vmem [shape: bf16[128,64], index: 5, kind: input, shape index: {}]   ;;  %s8165_s6 = inlined_call_operand.vmem [shape: f32[128,1], index: 6, kind: input, shape index: {}]   ;;  %s8166_s7 = inlined_call_operand.vmem [shape: bf16[4,128,128], index: 7, kind: input, shape index: {}]   ;;  %s8167_s8 = inlined_call_operand.vmem [shape: f32[128,4], index: 8, kind: input, shape index: {}]   ;;  %s8168_s9 = inlined_call_operand.vmem [shape: bf16[4,128,128], index: 9, kind: input, shape index: {}]   ;;  %s8169_s10 = inlined_call_operand.vmem [shape: f32[128,1], index: 10, kind: input, shape index: {}]   ;;  %s8170_s11 = inlined_call_operand.vmem [shape: bf16[4,128], index: 11, kind: input, shape index: {}]   ;;  %s8171_s12 = inlined_call_operand.hbm [shape: bf16[128,128], index: 12, kind: input, shape index: {}]   ;;  %s8172_s13 = inlined_call_operand.vmem [shape: f32[128,1], index: 13, kind: input, shape index: {}]   ;;  %s8173_s14 = inlined_call_operand.hbm [shape: f32[2,128,256], index: 14, kind: output, shape index: {}]  }
   0x1   :  { %8184 = sst [smem:[#allocation18_spill]] %s8159_s0 }
   0x2   :  { %8185 = sst [smem:[#allocation19_spill]] %s8160_s1 }
   0x3   :  { %8186 = sst [smem:[#allocation20_spill]] %s8161_s2 }
   0x4   :  { %8187 = sst [smem:[#allocation21_spill]] %s8162_s3 }
   0x5   :  { %8188 = sst [smem:[#allocation22_spill]] %s8163_s4 }
   0x6   :  { %8189 = sst [smem:[#allocation23_spill]] %s8171_s12 }
   0x7   :  { %8190 = sst [smem:[#allocation24_spill]] %s8173_s14 }
   0x8   :  { %19 = vsyncpa [#allocation7], 0 }
   0x9   :  { %20 = vsyncpa [#allocation8], 0 }
   0xa   :  { %22 = vsyncpa [#allocation8 + $0x1], 0  ;;  %s6650_s29 = smov 0   ;;  %s6652_s30 = smov 0  }
   0xb   :  { %s6654_s15 = smov 0   ;;  %s6656_s16 = smov 0  }
   0xc   :  { %s6658_s17 = smov 0   ;;  %s6660_s18 = smov 0  }
   0xd   :  { %s6662_s19 = smov 0   ;;  %s6664_s20 = smov 0  }
   0xe LB: > { %8191 = sst [smem:[#allocation12_spill]] %s6529_s29  ;;  %s5274_s21 = sadd.s32 4294967295, %s6557_s20   ;;  %s6557_s20 = sphi %s6664_s20, %s8220_s20   ;;  %s6553_s19 = sphi %s6662_s19, %s8219_s19   ;;  %s6549_s18 = sphi %s6660_s18, %s8214_s18   ;;  %s6545_s17 = sphi %s6658_s17, %s8218_s17   ;;  %s6541_s16 = sphi %s6656_s16, %s8213_s16   ;;  %s6537_s15 = sphi %s6654_s15, %s8217_s15   ;;  %s6533_s30 = sphi %s6652_s30, %s8216_s30   ;;  %s6529_s29 = sphi %s6650_s29, %s8215_s29  }
   0xf   : > { %8192 = sst [smem:[#allocation13_spill]] %s6549_s18  ;;  %s5275_s22 = sadd.s32 4294967294, %s6557_s20  }
  0x10   : > { %8193 = sst [smem:[#allocation14_spill]] %s6557_s20  ;;  %s43_s23 = sadd.s32 1, %s6549_s18 }
  0x11   : > { %s47_s24 = sadd.s32 1, %s6553_s19  ;;  %p45_p0 = scmp.ge.s32.totalorder %s43_s23, 2 }
  0x12   : > { %s365_s25 = sadd.s32 1, %s6537_s15  ;;  %p375_p1 = scmp.ne.s32.totalorder %s6537_s15, %s6533_s30 }
  0x13   : > { %p376_p2 = scmp.eq.s32.totalorder %s5274_s21, 3  ;;  %s8222_s23 = smov (%p45_p0, %s43_s23), 0 }
  0x14   : > { %8194 = sst [smem:[#allocation15_spill]] %s8222_s23  ;;  %s8224_s24 = smov (!%p45_p0, %s47_s24), %s6553_s19 }
  0x15   : > { %p6700_p3 = por %p376_p2, %p375_p1  ;;  %p381_p4 = scmp.ne.s32.totalorder %s6533_s30, %s6529_s29 }
  0x16   : > { %p49_p5 = scmp.ge.s32.totalorder %s8224_s24, 2  ;;  %p382_p6 = scmp.eq.s32.totalorder %s5275_s22, 3 }
  0x17   : > { %s8195_s26 = scalar_select %p6700_p3, 1, 0 }
  0x18   : > { %p5276_p7 = scmp.ge.s32.totalorder %s6557_s20, 1  ;;  %p389_p8 = scmp.lt.s32.totalorder %s6557_s20, 5 }
  0x19   : > { %8196 = sst [smem:[#allocation16_spill]] %s8195_s26  ;;  %s8226_s24 = smov (%p49_p5, %s8224_s24), 0 }
  0x1a   : > { %p6710_p9 = por %p382_p6, %p381_p4  ;;  %p6714_p10 = pnand %p5276_p7, %p389_p8 }
  0x1b   : > { %s360_s23 = ssub.s32 %s6553_s19, %s8226_s24  ;;  %p6323_p13 = scmp.eq.s32.totalorder %s5274_s21, 0 }
  0x1c   : > { %s8197_s27 = scalar_select %p6710_p9, 1, 0 }
  0x1d   : > { %p363_p11 = scmp.eq.s32.totalorder %s360_s23, 0  ;;  %p6315_p12 = pneg %p6714_p10 }
  0x1e   : > { %8198 = sst [smem:[#allocation17_spill]] %s8197_s27  ;;  %s6559_s14 = smov [#allocation6]  }
  0x1f   : > { %s8200_s12 = sld [smem:[#allocation23_spill]]  ;;  %s435_s26 = sshll.u32 %s6559_s14, 4  ;;  %s436_s26 = int_to_ptr.vmem [resolvable:$true] %s435_s26 }
  0x20   : > { %s6726_s20 = scalar_select %p363_p11, %s6537_s15, %s365_s25  }
  0x21   : > { %p6316_p0 = pnand %p6323_p13, %p6315_p12  ;;  %s6560_s27 = smov 64  }
  0x22   : > { %s6561_s4 = smov 4   ;;  %473 = sbr.rel (%p6714_p10) target bundleno = 2704 (0xa90), region = 76 }
  0x25   : > { %s433_s29 = sshll.u32 %s8200_s12, 4  ;;  %s434_s29 = int_to_ptr.hbm [resolvable:$true] %s433_s29 }
  0x26   : > { %6318 = dma.hbm_to_vmem [thread:$0]  (!%p6316_p0), %s434_s29, 1024, %s436_s26, [#allocation7], %s6560_s27, %s6560_s27, %s6561_s4  }
  0x27   : > { %6520 = dma.done.wait (%p6323_p13), [#allocation7], 1024  }
  0x28   : > { %6522 = vsyncadd (%p6323_p13), [#allocation7], 4294966272  ;;  %s8183_s18 = sand.u32 1, %s6533_s30   ;;  %p531_p1 = scmp.lt.s32.totalorder %s6545_s17, 1 }
  0x29   : > { %s5281_s21 = sshll.u32 %s8183_s18, 8  ;;  %s8201_s0 = sld [smem:[#allocation18_spill]] }
  0x2a   : > { %s532_s23 = scalar_select %p531_p1, %s6545_s17, 1 }
  0x2b   : > { %s6740_s4 = scalar_lea.vmem [#allocation9], %s5281_s21  ;;  %p5284_p2 = scmp.ne.s32.totalorder %s6541_s16, 0 }
  0x2c   : > { %s6135_s14 = sshll.u32 %s532_s23, 7  ;;  %s8202_s1 = sld [smem:[#allocation19_spill]] (!%p5284_p2) }
  0x2d   : > { %549 = sbr.rel (%p5284_p2) target bundleno = 1715 (0x6b3), region = 84  ;;  %s8203_s3 = sld [smem:[#allocation21_spill]] (!%p5284_p2) }
  0x2e   : > { %s6565_s26 = smov (!%p5284_p2), 72   ;;  %s6567_s22 = smov (!%p5284_p2), 64  }
  0x2f   : > { %s6738_s12 = scalar_lea.vmem %s8201_s0, %s6135_s14 }
  0x32   : > { %v590_v0 = vld [vmem:[%s8165_s6] sm:$0xff]  ;;  %v564_v2 = vld [vmem:[%s6738_s12 + $0x70] sm:$0xff]  ;;  %v6562_v3 = vmov 0   ;;  %v563_v5 = vld [vmem:[%s6738_s12 + $0x68] sm:$0xff]  ;;  %vm726_vm0 = vcmask 523264   ;;  %vm920_vm1 = vcmask 588800  }
  0x33   : > { %v562_v1 = vld [vmem:[%s6738_s12 + $0x60] sm:$0xff]  ;;  %6406 = vset.pattern.permute.xlu0 %v6562_v3  ;;  %v565_v6 = vld [vmem:[%s6738_s12 + $0x78] sm:$0xff]  ;;  %6407 = vset.pattern.permute.xlu1 %v6562_v3  ;;  %v560_v9 = vld [vmem:[%s6738_s12 + $0x50] sm:$0xff]  ;;  %vm1759_vm2 = vcmask 322560   ;;  %vm2341_vm3 = vcmask 453952   ;;  %vm2987_vm4 = vcmask 519616  }
  0x34   : > { %v572_v4 = vpack.c.bf16 %v564_v2, %v562_v1  ;;  %v558_v7 = vld [vmem:[%s6738_s12 + $0x40] sm:$0xff]  ;;  %608 = vperm.xlu0 %6406, %v590_v0   ;;  %v573_v8 = vpack.c.bf16 %v565_v6, %v563_v5  ;;  %v559_v10 = vld [vmem:[%s6738_s12 + $0x48] sm:$0xff]  ;;  %v561_v11 = vld [vmem:[%s6738_s12 + $0x58] sm:$0xff]  ;;  %6408 = vset.pattern.permute.xlu2 %v6562_v3  ;;  %vm3633_vm5 = vcmask 585216  }
  0x35   : > { %v570_v12 = vpack.c.bf16 %v560_v9, %v558_v7  ;;  %v571_v13 = vpack.c.bf16 %v561_v11, %v559_v10  ;;  %v554_v14 = vld [vmem:[%s6738_s12 + $0x20] sm:$0xff]  ;;  %v556_v15 = vld [vmem:[%s6738_s12 + $0x30] sm:$0xff]  ;;  %v555_v17 = vld [vmem:[%s6738_s12 + $0x28] sm:$0xff] }
  0x36   : > { %755 = vmatpush.bf16.msra.mxu0 %v572_v4  ;;  %804 = vmatpush.bf16.msra.mxu1 %v573_v8  ;;  %v592_v16 = vld [vmem:[%s8165_s6 + $0x10] sm:$0xff]  ;;  %v557_v18 = vld [vmem:[%s6738_s12 + $0x38] sm:$0xff]  ;;  %v591_v19 = vld [vmem:[%s8165_s6 + $0x8] sm:$0xff]  ;;  %v568_v20 = vpack.c.bf16 %v556_v15, %v554_v14 }
  0x37   : > { %618 = vperm.xlu1 %6407, %v592_v16   ;;  %v569_v21 = vpack.c.bf16 %v557_v18, %v555_v17  ;;  %v550_v22 = vld [vmem:[%s6738_s12] sm:$0xff]  ;;  %v552_v23 = vld [vmem:[%s6738_s12 + $0x10] sm:$0xff]  ;;  %v551_v24 = vld [vmem:[%s6738_s12 + $0x8] sm:$0xff] }
  0x38   : > { %v553_v25 = vld [vmem:[%s6738_s12 + $0x18] sm:$0xff]  ;;  %v566_v27 = vpack.c.bf16 %v552_v23, %v550_v22  ;;  %v6136_v29 = vld [vmem:[%s8164_s5] sm:$0xff]  ;;  %v596_v30 = vld [vmem:[%s8165_s6 + $0x30] sm:$0xff]  ;;  %s6564_s12 = smov 88  }
  0x39   : > { %v593_v26 = vld [vmem:[%s8165_s6 + $0x18] sm:$0xff]  ;;  %v567_v28 = vpack.c.bf16 %v553_v25, %v551_v24  ;;  %v594_v32 = vld [vmem:[%s8165_s6 + $0x20] sm:$0xff]  ;;  %v599_v33 = vld [vmem:[%s8165_s6 + $0x48] sm:$0xff] }
  0x3a   : > { %756 = vmatpush.bf16.msra.mxu0 %v570_v12  ;;  %805 = vmatpush.bf16.msra.mxu1 %v571_v13  ;;  %v597_v31 = vld [vmem:[%s8165_s6 + $0x38] sm:$0xff]  ;;  %v595_v34 = vld [vmem:[%s8165_s6 + $0x28] sm:$0xff]  ;;  %v600_v35 = vld [vmem:[%s8165_s6 + $0x50] sm:$0xff] }
  0x3b   : > { %628 = vperm.xlu2 %6408, %v594_v32   ;;  %v6137_v36 = vld [vmem:[%s8164_s5 + $0x8] sm:$0xff]  ;;  %v602_v37 = vld [vmem:[%s8165_s6 + $0x60] sm:$0xff]  ;;  %v605_v40 = vld [vmem:[%s8165_s6 + $0x78] sm:$0xff] }
  0x3c   : > { %613 = vperm.xlu0 %6406, %v591_v19   ;;  %v603_v38 = vld [vmem:[%s8165_s6 + $0x68] sm:$0xff]  ;;  %v598_v39 = vld [vmem:[%s8165_s6 + $0x40] sm:$0xff]  ;;  %v601_v41 = vld [vmem:[%s8165_s6 + $0x58] sm:$0xff] }
  0x3d   : > { %v6138_v42 = vld [vmem:[%s8164_s5 + $0x10] sm:$0xff]  ;;  %v6139_v44 = vld [vmem:[%s8164_s5 + $0x18] sm:$0xff]  ;;  %v6140_v45 = vld [vmem:[%s8164_s5 + $0x20] sm:$0xff] }
  0x3e   : > { %757 = vmatpush.bf16.msra.mxu0 %v568_v20  ;;  %806 = vmatpush.bf16.msra.mxu1 %v569_v21  ;;  %v604_v43 = vld [vmem:[%s8165_s6 + $0x70] sm:$0xff]  ;;  %v6141_v46 = vld [vmem:[%s8164_s5 + $0x28] sm:$0xff]  ;;  %v6151_v47 = vld [vmem:[%s8202_s1 + $0x38] sm:$0xff] }
  0x3f   : > { %623 = vperm.xlu1 %6407, %v593_v26   ;;  %v6159_v48 = vld [vmem:[%s8202_s1 + $0x78] sm:$0xff]  ;;  %1163 = vmatpush.bf16.msra.mxu2 %v6151_v47  ;;  %v6150_v49 = vld [vmem:[%s8202_s1 + $0x30] sm:$0xff]  ;;  %v6149_v51 = vld [vmem:[%s8202_s1 + $0x28] sm:$0xff] }
  0x40   : > { %1212 = vmatpush.bf16.msra.mxu3 %v6159_v48  ;;  %v6158_v50 = vld [vmem:[%s8202_s1 + $0x70] sm:$0xff]  ;;  %v6157_v52 = vld [vmem:[%s8202_s1 + $0x68] sm:$0xff]  ;;  %v6148_v53 = vld [vmem:[%s8202_s1 + $0x20] sm:$0xff] }
  0x41   : > { %v6156_v54 = vld [vmem:[%s8202_s1 + $0x60] sm:$0xff]  ;;  %v6142_v55 = vld [vmem:[%s8164_s5 + $0x30] sm:$0xff]  ;;  %v6147_v56 = vld [vmem:[%s8202_s1 + $0x18] sm:$0xff] }
  0x42   : > { %758 = vmatpush.bf16.msra.mxu0 %v566_v27  ;;  %807 = vmatpush.bf16.msra.mxu1 %v567_v28  ;;  %v6155_v57 = vld [vmem:[%s8202_s1 + $0x58] sm:$0xff]  ;;  %v6146_v58 = vld [vmem:[%s8202_s1 + $0x10] sm:$0xff]  ;;  %v6145_v60 = vld [vmem:[%s8202_s1 + $0x8] sm:$0xff] }
  0x43   : > { %633 = vperm.xlu2 %6408, %v595_v34   ;;  %1164 = vmatpush.bf16.msra.mxu2 %v6150_v49  ;;  %v6154_v59 = vld [vmem:[%s8202_s1 + $0x50] sm:$0xff]  ;;  %v6153_v61 = vld [vmem:[%s8202_s1 + $0x48] sm:$0xff]  ;;  %v6143_v62 = vld [vmem:[%s8164_s5 + $0x38] sm:$0xff] }
  0x44   : > { %638 = vperm.xlu0 %6406, %v596_v30   ;;  %1213 = vmatpush.bf16.msra.mxu3 %v6158_v50  ;;  %v6144_v63 = vld [vmem:[%s8202_s1] sm:$0xff] }
  0x45   : > { %5317 = vmatmul.msk.bf16.vlgmr.msra.gmra.mxu0 %vm726_vm0, %v6136_v29  ;;  %5325 = vmatmul.msk.bf16.vlgmr.msra.gmra.mxu1 %vm726_vm0, %v6136_v29  ;;  %v6152_v0 = vld [vmem:[%s8202_s1 + $0x40] sm:$0xff] }
  0x47   : > { %643 = vperm.xlu1 %6407, %v597_v31   ;;  %1165 = vmatpush.bf16.msra.mxu2 %v6149_v51 }
  0x48   : > { %1214 = vmatpush.bf16.msra.mxu3 %v6157_v52 }
  0x4b   : > { %648 = vperm.xlu2 %6408, %v598_v39   ;;  %1166 = vmatpush.bf16.msra.mxu2 %v6148_v53 }
  0x4c   : > { %653 = vperm.xlu0 %6406, %v599_v33   ;;  %1215 = vmatpush.bf16.msra.mxu3 %v6156_v54 }
  0x4f   : > { %658 = vperm.xlu1 %6407, %v600_v35   ;;  %1167 = vmatpush.bf16.msra.mxu2 %v6147_v56 }
  0x50   : > { %1216 = vmatpush.bf16.msra.mxu3 %v6155_v57 }
  0x53   : > { %663 = vperm.xlu2 %6408, %v601_v41   ;;  %1168 = vmatpush.bf16.msra.mxu2 %v6146_v58 }
  0x54   : > { %668 = vperm.xlu0 %6406, %v602_v37   ;;  %1217 = vmatpush.bf16.msra.mxu3 %v6154_v59 }
  0x55   : > { %5318 = vmatmul.msk.bf16.gmra.mxu0 %vm726_vm0, %v6137_v36  ;;  %5326 = vmatmul.msk.bf16.gmra.mxu1 %vm726_vm0, %v6137_v36 }
  0x57   : > { %673 = vperm.xlu1 %6407, %v603_v38   ;;  %1169 = vmatpush.bf16.msra.mxu2 %v6145_v60 }
  0x58   : > { %1218 = vmatpush.bf16.msra.mxu3 %v6153_v61 }
  0x5b   : > { %678 = vperm.xlu2 %6408, %v604_v43   ;;  %1170 = vmatpush.bf16.msra.mxu2 %v6144_v63 }
  0x5c   : > { %683 = vperm.xlu0 %6406, %v605_v40   ;;  %1219 = vmatpush.bf16.msra.mxu3 %v6152_v0 }
  0x65   : > { %5319 = vmatmul.msk.bf16.gmra.mxu0 %vm726_vm0, %v6138_v42  ;;  %5327 = vmatmul.msk.bf16.gmra.mxu1 %vm726_vm0, %v6138_v42 }
  0x75   : > { %5320 = vmatmul.msk.bf16.gmra.mxu0 %vm726_vm0, %v6139_v44  ;;  %5328 = vmatmul.msk.bf16.gmra.mxu1 %vm726_vm0, %v6139_v44 }
  0x85   : > { %5321 = vmatmul.msk.bf16.gmra.mxu0 %vm726_vm0, %v6140_v45  ;;  %5329 = vmatmul.msk.bf16.gmra.mxu1 %vm726_vm0, %v6140_v45 }
  0x95   : > { %5322 = vmatmul.msk.bf16.gmra.mxu0 %vm726_vm0, %v6141_v46  ;;  %5330 = vmatmul.msk.bf16.gmra.mxu1 %vm726_vm0, %v6141_v46  ;;  %v629_v38 = vpop.permute.xlu2 %628 }
  0x9d   : > { %v634_v53 = vpop.permute.xlu2 %633 }
  0xa5   : > { %5323 = vmatmul.msk.bf16.gmra.mxu0 %vm726_vm0, %v6142_v55  ;;  %5331 = vmatmul.msk.bf16.gmra.mxu1 %vm726_vm0, %v6142_v55 }
  0xa6   : > { %v609_v1 = vpop.permute.xlu0 %608 }
  0xa9   : > { %v619_v16 = vpop.permute.xlu1 %618 }
  0xae   : > { %v614_v9 = vpop.permute.xlu0 %613 }
  0xb1   : > { %v624_v31 = vpop.permute.xlu1 %623 }
  0xb5   : > { %5324 = vmatmul.msk.bf16.gmra.mxu0 %vm726_vm0, %v6143_v62  ;;  %5332 = vmatmul.msk.bf16.gmra.mxu1 %vm726_vm0, %v6143_v62 }
  0xb6   : > { %v639_v61 = vpop.permute.xlu0 %638 }
  0xc2   : > { %v760_v2 = vpop.f32.mrf.mxu0  ;;  %v809_v4 = vpop.f32.mrf.mxu1 }
  0xc3   : > { %v761_v3 = vadd.f32 %v760_v2, %v609_v1  ;;  %v810_v5 = vadd.f32 %v809_v4, %v609_v1 }
  0xc5   : > { %v849_v6 = vmax.f32 %v761_v3, 0.0  ;;  %v850_v7 = vmax.f32 %v810_v5, 0.0 }
  0xc7   : > { %v881_v8 = vpack.c.bf16 %v850_v7, %v849_v6 }
  0xc9   : > { %900 = vst [vmem:[#allocation2] sm:$0xff] %v881_v8  ;;  %v1003_v19 = vunpack.c.l.b16 %v881_v8  ;;  %v1004_v21 = vunpack.c.h.b16 %v881_v8 }
  0xca   : > { %v762_v10 = vpop.f32.mrf.mxu0  ;;  %v811_v12 = vpop.f32.mrf.mxu1 }
  0xcb   : > { %v763_v11 = vadd.f32 %v762_v10, %v614_v9  ;;  %v812_v13 = vadd.f32 %v811_v12, %v614_v9 }
  0xcd   : > { %v851_v14 = vmax.f32 %v763_v11, 0.0  ;;  %v852_v15 = vmax.f32 %v812_v13, 0.0  ;;  %v644_v11 = vpop.permute.xlu1 %643 }
  0xcf   : > { %v882_v17 = vpack.c.bf16 %v852_v15, %v851_v14 }
  0xd1   : > { %901 = vst [vmem:[#allocation2 + $0x8] sm:$0xff] %v882_v17  ;;  %v1005_v20 = vunpack.c.l.b16 %v882_v17  ;;  %v1006_v22 = vunpack.c.h.b16 %v882_v17 }
  0xd2   : > { %v765_v18 = vpop.f32.mrf.mxu0  ;;  %v814_v24 = vpop.f32.mrf.mxu1 }
  0xd3   : > { %v766_v23 = vadd.f32 %v765_v18, %v619_v16  ;;  %v815_v25 = vadd.f32 %v814_v24, %v619_v16  ;;  %v1035_v26 = vpack.c.b16 %v1005_v20, %v1003_v19  ;;  %v1036_v27 = vpack.c.b16 %v1006_v22, %v1004_v21  ;;  %v649_v19 = vpop.permute.xlu2 %648 }
  0xd5   : > { %v853_v28 = vmax.f32 %v766_v23, 0.0  ;;  %v854_v29 = vmax.f32 %v815_v25, 0.0  ;;  %1171 = vmatmul.bf16.vlgmr.msra.gmra.mxu2 %v1035_v26  ;;  %1220 = vmatmul.bf16.vlgmr.msra.gmra.mxu3 %v1036_v27 }
  0xd7   : > { %v883_v30 = vpack.c.bf16 %v854_v29, %v853_v28 }
  0xd9   : > { %902 = vst [vmem:[#allocation2 + $0x10] sm:$0xff] %v883_v30  ;;  %v1007_v41 = vunpack.c.l.b16 %v883_v30  ;;  %v1008_v43 = vunpack.c.h.b16 %v883_v30 }
  0xda   : > { %v767_v32 = vpop.f32.mrf.mxu0  ;;  %v816_v34 = vpop.f32.mrf.mxu1 }
  0xdb   : > { %v768_v33 = vadd.f32 %v767_v32, %v624_v31  ;;  %v817_v35 = vadd.f32 %v816_v34, %v624_v31 }
  0xdd   : > { %v855_v36 = vmax.f32 %v768_v33, 0.0  ;;  %v856_v37 = vmax.f32 %v817_v35, 0.0  ;;  %v654_v33 = vpop.permute.xlu0 %653 }
  0xdf   : > { %v884_v39 = vpack.c.bf16 %v856_v37, %v855_v36 }
  0xe1   : > { %903 = vst [vmem:[#allocation2 + $0x18] sm:$0xff] %v884_v39  ;;  %v1009_v42 = vunpack.c.l.b16 %v884_v39  ;;  %v1010_v44 = vunpack.c.h.b16 %v884_v39 }
  0xe2   : > { %v770_v40 = vpop.f32.mrf.mxu0  ;;  %v819_v46 = vpop.f32.mrf.mxu1 }
  0xe3   : > { %v771_v45 = vadd.f32 %v770_v40, %v629_v38  ;;  %v820_v47 = vadd.f32 %v819_v46, %v629_v38  ;;  %v1037_v48 = vpack.c.b16 %v1009_v42, %v1007_v41  ;;  %v1038_v49 = vpack.c.b16 %v1010_v44, %v1008_v43  ;;  %v659_v41 = vpop.permute.xlu1 %658 }
  0xe5   : > { %v857_v50 = vmax.f32 %v771_v45, 0.0  ;;  %v858_v51 = vmax.f32 %v820_v47, 0.0  ;;  %1176 = vmatmul.bf16.gmra.mxu2 %v1037_v48  ;;  %1225 = vmatmul.bf16.gmra.mxu3 %v1038_v49 }
  0xe7   : > { %v885_v52 = vpack.c.bf16 %v858_v51, %v857_v50 }
  0xe9   : > { %904 = vst [vmem:[#allocation2 + $0x20] sm:$0xff] %v885_v52  ;;  %v1011_v63 = vunpack.c.l.b16 %v885_v52  ;;  %v1012_v1 = vunpack.c.h.b16 %v885_v52 }
  0xea   : > { %v772_v54 = vpop.f32.mrf.mxu0  ;;  %v821_v56 = vpop.f32.mrf.mxu1 }
  0xeb   : > { %v773_v55 = vadd.f32 %v772_v54, %v634_v53  ;;  %v822_v57 = vadd.f32 %v821_v56, %v634_v53 }
  0xed   : > { %v859_v58 = vmax.f32 %v773_v55, 0.0  ;;  %v860_v59 = vmax.f32 %v822_v57, 0.0  ;;  %v664_v55 = vpop.permute.xlu2 %663 }
  0xef   : > { %v886_v60 = vpack.c.bf16 %v860_v59, %v859_v58 }
  0xf1   : > { %905 = vst [vmem:[#allocation2 + $0x28] sm:$0xff] %v886_v60  ;;  %v1013_v0 = vunpack.c.l.b16 %v886_v60  ;;  %v1014_v2 = vunpack.c.h.b16 %v886_v60 }
  0xf2   : > { %v775_v62 = vpop.f32.mrf.mxu0  ;;  %v824_v4 = vpop.f32.mrf.mxu1 }
  0xf3   : > { %v776_v3 = vadd.f32 %v775_v62, %v639_v61  ;;  %v825_v5 = vadd.f32 %v824_v4, %v639_v61  ;;  %v1039_v6 = vpack.c.b16 %v1013_v0, %v1011_v63  ;;  %v1040_v7 = vpack.c.b16 %v1014_v2, %v1012_v1  ;;  %v669_v63 = vpop.permute.xlu0 %668 }
  0xf5   : > { %v861_v8 = vmax.f32 %v776_v3, 0.0  ;;  %v862_v9 = vmax.f32 %v825_v5, 0.0  ;;  %1181 = vmatmul.bf16.gmra.mxu2 %v1039_v6  ;;  %1230 = vmatmul.bf16.gmra.mxu3 %v1040_v7 }
  0xf7   : > { %v887_v10 = vpack.c.bf16 %v862_v9, %v861_v8 }
  0xf9   : > { %906 = vst [vmem:[#allocation2 + $0x30] sm:$0xff] %v887_v10  ;;  %v1015_v21 = vunpack.c.l.b16 %v887_v10  ;;  %v1016_v23 = vunpack.c.h.b16 %v887_v10 }
  0xfa   : > { %v777_v12 = vpop.f32.mrf.mxu0  ;;  %v826_v14 = vpop.f32.mrf.mxu1 }
  0xfb   : > { %v778_v13 = vadd.f32 %v777_v12, %v644_v11  ;;  %v827_v15 = vadd.f32 %v826_v14, %v644_v11 }
  0xfd   : > { %v863_v16 = vmax.f32 %v778_v13, 0.0  ;;  %v864_v17 = vmax.f32 %v827_v15, 0.0  ;;  %v674_v13 = vpop.permute.xlu1 %673 }
  0xff   : > { %v888_v18 = vpack.c.bf16 %v864_v17, %v863_v16 }
 0x101   : > { %907 = vst [vmem:[#allocation2 + $0x38] sm:$0xff] %v888_v18  ;;  %v1017_v22 = vunpack.c.l.b16 %v888_v18  ;;  %v1018_v24 = vunpack.c.h.b16 %v888_v18 }
 0x102   : > { %v780_v20 = vpop.f32.mrf.mxu0  ;;  %v829_v26 = vpop.f32.mrf.mxu1 }
 0x103   : > { %v781_v25 = vadd.f32 %v780_v20, %v649_v19  ;;  %v830_v27 = vadd.f32 %v829_v26, %v649_v19  ;;  %v1041_v28 = vpack.c.b16 %v1017_v22, %v1015_v21  ;;  %v1042_v29 = vpack.c.b16 %v1018_v24, %v1016_v23  ;;  %v679_v21 = vpop.permute.xlu2 %678 }
 0x105   : > { %v865_v30 = vmax.f32 %v781_v25, 0.0  ;;  %v866_v31 = vmax.f32 %v830_v27, 0.0  ;;  %1186 = vmatmul.bf16.gmra.mxu2 %v1041_v28  ;;  %1235 = vmatmul.bf16.gmra.mxu3 %v1042_v29 }
 0x107   : > { %v889_v32 = vpack.c.bf16 %v866_v31, %v865_v30 }
 0x109   : > { %908 = vst [vmem:[#allocation2 + $0x40] sm:$0xff] %v889_v32  ;;  %v1019_v43 = vunpack.c.l.b16 %v889_v32  ;;  %v1020_v45 = vunpack.c.h.b16 %v889_v32  ;;  %v6563_v32 = vmov 0.0  }
 0x10a   : > { %v782_v34 = vpop.f32.mrf.mxu0  ;;  %v831_v36 = vpop.f32.mrf.mxu1  ;;  %921 = vst.msk [vmem:[#allocation3] sm:$0xff] %vm920_vm1, %v6563_v32 }
 0x10b   : > { %v783_v35 = vadd.f32 %v782_v34, %v654_v33  ;;  %v832_v37 = vadd.f32 %v831_v36, %v654_v33  ;;  %922 = vst.msk [vmem:[#allocation3 + $0x8] sm:$0xff] %vm920_vm1, %v6563_v32  ;;  %v684_v36 = vpop.permute.xlu0 %683 }
 0x10c   : > { %923 = vst.msk [vmem:[#allocation3 + $0x10] sm:$0xff] %vm920_vm1, %v6563_v32 }
 0x10d   : > { %v867_v38 = vmax.f32 %v783_v35, 0.0  ;;  %v868_v39 = vmax.f32 %v832_v37, 0.0  ;;  %924 = vst.msk [vmem:[#allocation3 + $0x18] sm:$0xff] %vm920_vm1, %v6563_v32 }
 0x10e   : > { %925 = vst.msk [vmem:[#allocation3 + $0x20] sm:$0xff] %vm920_vm1, %v6563_v32 }
 0x10f   : > { %v890_v40 = vpack.c.bf16 %v868_v39, %v867_v38  ;;  %926 = vst.msk [vmem:[#allocation3 + $0x28] sm:$0xff] %vm920_vm1, %v6563_v32 }
 0x110   : > { %927 = vst.msk [vmem:[#allocation3 + $0x30] sm:$0xff] %vm920_vm1, %v6563_v32 }
 0x111   : > { %909 = vst [vmem:[#allocation2 + $0x48] sm:$0xff] %v890_v40  ;;  %v1021_v44 = vunpack.c.l.b16 %v890_v40  ;;  %v1022_v46 = vunpack.c.h.b16 %v890_v40 }
 0x112   : > { %v785_v42 = vpop.f32.mrf.mxu0  ;;  %v834_v48 = vpop.f32.mrf.mxu1  ;;  %928 = vst.msk [vmem:[#allocation3 + $0x38] sm:$0xff] %vm920_vm1, %v6563_v32 }
 0x113   : > { %v786_v47 = vadd.f32 %v785_v42, %v659_v41  ;;  %v835_v49 = vadd.f32 %v834_v48, %v659_v41  ;;  %v1043_v50 = vpack.c.b16 %v1021_v44, %v1019_v43  ;;  %v1044_v51 = vpack.c.b16 %v1022_v46, %v1020_v45  ;;  %929 = vst.msk [vmem:[#allocation3 + $0x40] sm:$0xff] %vm920_vm1, %v6563_v32 }
 0x114   : > { %930 = vst.msk [vmem:[#allocation3 + $0x48] sm:$0xff] %vm920_vm1, %v6563_v32 }
 0x115   : > { %v869_v52 = vmax.f32 %v786_v47, 0.0  ;;  %v870_v53 = vmax.f32 %v835_v49, 0.0  ;;  %1191 = vmatmul.bf16.gmra.mxu2 %v1043_v50  ;;  %1240 = vmatmul.bf16.gmra.mxu3 %v1044_v51  ;;  %931 = vst.msk [vmem:[#allocation3 + $0x50] sm:$0xff] %vm920_vm1, %v6563_v32  ;;  %v937_v51 = vld [vmem:[#allocation3] sm:$0xff] }
 0x116   : > { %932 = vst.msk [vmem:[#allocation3 + $0x58] sm:$0xff] %vm920_vm1, %v6563_v32 }
 0x117   : > { %v891_v54 = vpack.c.bf16 %v870_v53, %v869_v52  ;;  %933 = vst.msk [vmem:[#allocation3 + $0x60] sm:$0xff] %vm920_vm1, %v6563_v32 }
 0x118   : > { %934 = vst.msk [vmem:[#allocation3 + $0x68] sm:$0xff] %vm920_vm1, %v6563_v32 }
 0x119   : > { %910 = vst [vmem:[#allocation2 + $0x50] sm:$0xff] %v891_v54  ;;  %v1023_v1 = vunpack.c.l.b16 %v891_v54  ;;  %v1024_v3 = vunpack.c.h.b16 %v891_v54 }
 0x11a   : > { %v787_v56 = vpop.f32.mrf.mxu0  ;;  %v836_v58 = vpop.f32.mrf.mxu1  ;;  %935 = vst.msk [vmem:[#allocation3 + $0x70] sm:$0xff] %vm920_vm1, %v6563_v32 }
 0x11b   : > { %v788_v57 = vadd.f32 %v787_v56, %v664_v55  ;;  %v837_v59 = vadd.f32 %v836_v58, %v664_v55  ;;  %936 = vst.msk [vmem:[#allocation3 + $0x78] sm:$0xff] %vm920_vm1, %v6563_v32  ;;  %v938_v56 = vld [vmem:[#allocation3 + $0x8] sm:$0xff] }
 0x11c   : > { %v946_v32 = vld [vmem:[#allocation3 + $0x48] sm:$0xff] }
 0x11d   : > { %v871_v60 = vmax.f32 %v788_v57, 0.0  ;;  %v872_v61 = vmax.f32 %v837_v59, 0.0 }
 0x11f   : > { %v892_v62 = vpack.c.bf16 %v872_v61, %v871_v60  ;;  %v939_v61 = vld [vmem:[#allocation3 + $0x10] sm:$0xff] }
 0x121   : > { %911 = vst [vmem:[#allocation2 + $0x58] sm:$0xff] %v892_v62  ;;  %v1025_v2 = vunpack.c.l.b16 %v892_v62  ;;  %v1026_v4 = vunpack.c.h.b16 %v892_v62 }
 0x122   : > { %v790_v0 = vpop.f32.mrf.mxu0  ;;  %v839_v6 = vpop.f32.mrf.mxu1 }
 0x123   : > { %v791_v5 = vadd.f32 %v790_v0, %v669_v63  ;;  %v840_v7 = vadd.f32 %v839_v6, %v669_v63  ;;  %v1045_v8 = vpack.c.b16 %v1025_v2, %v1023_v1  ;;  %v1046_v9 = vpack.c.b16 %v1026_v4, %v1024_v3  ;;  %v940_v2 = vld [vmem:[#allocation3 + $0x18] sm:$0xff] }
 0x125   : > { %v873_v10 = vmax.f32 %v791_v5, 0.0  ;;  %v874_v11 = vmax.f32 %v840_v7, 0.0  ;;  %1196 = vmatmul.bf16.gmra.mxu2 %v1045_v8  ;;  %1245 = vmatmul.bf16.gmra.mxu3 %v1046_v9  ;;  %v941_v7 = vld [vmem:[#allocation3 + $0x20] sm:$0xff] }
 0x127   : > { %v893_v12 = vpack.c.bf16 %v874_v11, %v873_v10 }
 0x129   : > { %912 = vst [vmem:[#allocation2 + $0x60] sm:$0xff] %v893_v12  ;;  %v1027_v23 = vunpack.c.l.b16 %v893_v12  ;;  %v1028_v25 = vunpack.c.h.b16 %v893_v12  ;;  %v942_v12 = vld [vmem:[#allocation3 + $0x28] sm:$0xff] }
 0x12a   : > { %v792_v14 = vpop.f32.mrf.mxu0  ;;  %v841_v16 = vpop.f32.mrf.mxu1 }
 0x12b   : > { %v793_v15 = vadd.f32 %v792_v14, %v674_v13  ;;  %v842_v17 = vadd.f32 %v841_v16, %v674_v13 }
 0x12d   : > { %v875_v18 = vmax.f32 %v793_v15, 0.0  ;;  %v876_v19 = vmax.f32 %v842_v17, 0.0  ;;  %v943_v17 = vld [vmem:[#allocation3 + $0x30] sm:$0xff] }
 0x12f   : > { %v894_v20 = vpack.c.bf16 %v876_v19, %v875_v18 }
 0x131   : > { %913 = vst [vmem:[#allocation2 + $0x68] sm:$0xff] %v894_v20  ;;  %v1029_v24 = vunpack.c.l.b16 %v894_v20  ;;  %v1030_v26 = vunpack.c.h.b16 %v894_v20 }
 0x132   : > { %v795_v22 = vpop.f32.mrf.mxu0  ;;  %v844_v28 = vpop.f32.mrf.mxu1 }
 0x133   : > { %v796_v27 = vadd.f32 %v795_v22, %v679_v21  ;;  %v845_v29 = vadd.f32 %v844_v28, %v679_v21  ;;  %v1047_v30 = vpack.c.b16 %v1029_v24, %v1027_v23  ;;  %v1048_v31 = vpack.c.b16 %v1030_v26, %v1028_v25  ;;  %v944_v22 = vld [vmem:[#allocation3 + $0x38] sm:$0xff] }
 0x135   : > { %v877_v33 = vmax.f32 %v796_v27, 0.0  ;;  %v878_v34 = vmax.f32 %v845_v29, 0.0  ;;  %1201 = vmatmul.bf16.gmra.mxu2 %v1047_v30  ;;  %1250 = vmatmul.bf16.gmra.mxu3 %v1048_v31  ;;  %v945_v27 = vld [vmem:[#allocation3 + $0x40] sm:$0xff] }
 0x137   : > { %v895_v35 = vpack.c.bf16 %v878_v34, %v877_v33 }
 0x139   : > { %914 = vst [vmem:[#allocation2 + $0x70] sm:$0xff] %v895_v35  ;;  %v1031_v44 = vunpack.c.l.b16 %v895_v35  ;;  %v1032_v46 = vunpack.c.h.b16 %v895_v35 }
 0x13a   : > { %v797_v37 = vpop.f32.mrf.mxu0  ;;  %v846_v39 = vpop.f32.mrf.mxu1 }
 0x13b   : > { %v798_v38 = vadd.f32 %v797_v37, %v684_v36  ;;  %v847_v40 = vadd.f32 %v846_v39, %v684_v36  ;;  %v947_v37 = vld [vmem:[#allocation3 + $0x50] sm:$0xff] }
 0x13d   : > { %v879_v41 = vmax.f32 %v798_v38, 0.0  ;;  %v880_v42 = vmax.f32 %v847_v40, 0.0 }
 0x13f   : > { %v896_v43 = vpack.c.bf16 %v880_v42, %v879_v41  ;;  %v948_v42 = vld [vmem:[#allocation3 + $0x58] sm:$0xff] }
 0x141   : > { %915 = vst [vmem:[#allocation2 + $0x78] sm:$0xff] %v896_v43  ;;  %v1033_v45 = vunpack.c.l.b16 %v896_v43  ;;  %v1034_v47 = vunpack.c.h.b16 %v896_v43 }
 0x143   : > { %v1049_v48 = vpack.c.b16 %v1033_v45, %v1031_v44  ;;  %v1050_v49 = vpack.c.b16 %v1034_v47, %v1032_v46  ;;  %v6926_v47 = vld [vmem:[%s8203_s3] ss:$0 sm:$0xff] }
 0x145   : > { %1206 = vmatmul.bf16.gmra.mxu2 %v1049_v48  ;;  %1255 = vmatmul.bf16.gmra.mxu3 %v1050_v49  ;;  %v949_v49 = vld [vmem:[#allocation3 + $0x60] sm:$0xff] }
 0x158   : > { %v1172_v50 = vpop.f32.mrf.mxu2  ;;  %v1221_v52 = vpop.f32.mrf.mxu3 }
 0x159   : > { %v1222_v53 = vadd.f32 %v1221_v52, %v1172_v50 }
 0x15b   : > { %v1261_v54 = vadd.f32 %v1222_v53, %v937_v51 }
 0x15d   : > { %1278 = vst.msk [vmem:[#allocation3] sm:$0xff] %vm920_vm1, %v1261_v54 }
 0x160   : > { %v1174_v55 = vpop.f32.mrf.mxu2  ;;  %v1223_v57 = vpop.f32.mrf.mxu3 }
 0x161   : > { %v1224_v58 = vadd.f32 %v1223_v57, %v1174_v55 }
 0x163   : > { %v1262_v59 = vadd.f32 %v1224_v58, %v938_v56 }
 0x165   : > { %1279 = vst.msk [vmem:[#allocation3 + $0x8] sm:$0xff] %vm920_vm1, %v1262_v59 }
 0x168   : > { %v1177_v60 = vpop.f32.mrf.mxu2  ;;  %v1226_v62 = vpop.f32.mrf.mxu3 }
 0x169   : > { %v1227_v63 = vadd.f32 %v1226_v62, %v1177_v60  ;;  %v950_v62 = vld [vmem:[#allocation3 + $0x68] sm:$0xff] }
 0x16b   : > { %v1263_v0 = vadd.f32 %v1227_v63, %v939_v61 }
 0x16d   : > { %1280 = vst.msk [vmem:[#allocation3 + $0x10] sm:$0xff] %vm920_vm1, %v1263_v0 }
 0x170   : > { %v1179_v1 = vpop.f32.mrf.mxu2  ;;  %v1228_v3 = vpop.f32.mrf.mxu3 }
 0x171   : > { %v1229_v4 = vadd.f32 %v1228_v3, %v1179_v1 }
 0x173   : > { %v1264_v5 = vadd.f32 %v1229_v4, %v940_v2 }
 0x175   : > { %1281 = vst.msk [vmem:[#allocation3 + $0x18] sm:$0xff] %vm920_vm1, %v1264_v5 }
 0x178   : > { %v1182_v6 = vpop.f32.mrf.mxu2  ;;  %v1231_v8 = vpop.f32.mrf.mxu3 }
 0x179   : > { %v1232_v9 = vadd.f32 %v1231_v8, %v1182_v6 }
 0x17b   : > { %v1265_v10 = vadd.f32 %v1232_v9, %v941_v7 }
 0x17d   : > { %1282 = vst.msk [vmem:[#allocation3 + $0x20] sm:$0xff] %vm920_vm1, %v1265_v10 }
 0x180   : > { %v1184_v11 = vpop.f32.mrf.mxu2  ;;  %v1233_v13 = vpop.f32.mrf.mxu3 }
 0x181   : > { %v1234_v14 = vadd.f32 %v1233_v13, %v1184_v11  ;;  %v951_v11 = vld [vmem:[#allocation3 + $0x70] sm:$0xff] }
 0x183   : > { %v1266_v15 = vadd.f32 %v1234_v14, %v942_v12 }
 0x184   : > { %v1301_v58 = vld [vmem:[#allocation3 + $0x20] sm:$0xff] }
 0x185   : > { %1283 = vst.msk [vmem:[#allocation3 + $0x28] sm:$0xff] %vm920_vm1, %v1266_v15  ;;  %v1321_v3 = vmul.f32 %v6926_v47, %v1301_v58 }
 0x187   : > { %v1337_v7 = vpack.c.bf16 %v1321_v3, %v1321_v3 }
 0x188   : > { %v1187_v16 = vpop.f32.mrf.mxu2  ;;  %v1236_v18 = vpop.f32.mrf.mxu3 }
 0x189   : > { %v1237_v19 = vadd.f32 %v1236_v18, %v1187_v16  ;;  %v1529_v14 = vunpack.c.l.b16 %v1337_v7 }
 0x18b   : > { %v1267_v20 = vadd.f32 %v1237_v19, %v943_v17 }
 0x18c   : > { %v1302_v55 = vld [vmem:[#allocation3 + $0x28] sm:$0xff] }
 0x18d   : > { %1284 = vst.msk [vmem:[#allocation3 + $0x30] sm:$0xff] %vm920_vm1, %v1267_v20  ;;  %v1322_v60 = vmul.f32 %v6926_v47, %v1302_v55 }
 0x18f   : > { %v1338_v6 = vpack.c.bf16 %v1322_v60, %v1322_v60 }
 0x190   : > { %v1189_v21 = vpop.f32.mrf.mxu2  ;;  %v1238_v23 = vpop.f32.mrf.mxu3 }
 0x191   : > { %v1239_v24 = vadd.f32 %v1238_v23, %v1189_v21  ;;  %v1530_v9 = vunpack.c.l.b16 %v1338_v6 }
 0x193   : > { %v1268_v25 = vadd.f32 %v1239_v24, %v944_v22  ;;  %v6939_v17 = vpack.c.b16 %v1530_v9, %v1529_v14  ;;  %v6999_v9 = vld [vmem:[%s8167_s8 + $0x60] sm:$0xff] }
 0x194   : > { %v1303_v22 = vld [vmem:[#allocation3 + $0x30] sm:$0xff] }
 0x195   : > { %1285 = vst.msk [vmem:[#allocation3 + $0x38] sm:$0xff] %vm920_vm1, %v1268_v25 }
 0x198   : > { %v1192_v26 = vpop.f32.mrf.mxu2  ;;  %v1241_v28 = vpop.f32.mrf.mxu3 }
 0x199   : > { %v1242_v29 = vadd.f32 %v1241_v28, %v1192_v26  ;;  %v952_v26 = vld [vmem:[#allocation3 + $0x78] sm:$0xff] }
 0x19b   : > { %v1269_v30 = vadd.f32 %v1242_v29, %v945_v27 }
 0x19c   : > { %v1304_v19 = vld [vmem:[#allocation3 + $0x38] sm:$0xff] }
 0x19d   : > { %1286 = vst.msk [vmem:[#allocation3 + $0x40] sm:$0xff] %vm920_vm1, %v1269_v30  ;;  %v1324_v24 = vmul.f32 %v6926_v47, %v1304_v19 }
 0x1a0   : > { %v1194_v31 = vpop.f32.mrf.mxu2  ;;  %v1243_v33 = vpop.f32.mrf.mxu3 }
 0x1a1   : > { %v1244_v34 = vadd.f32 %v1243_v33, %v1194_v31  ;;  %v1323_v31 = vmul.f32 %v6926_v47, %v1303_v22  ;;  %v7041_v22 = vld [vmem:[%s8167_s8 + $0x78] sm:$0xff] }
 0x1a3   : > { %v1270_v35 = vadd.f32 %v1244_v34, %v946_v32  ;;  %v6950_v32 = vld [vmem:[%s8167_s8 + $0x70] sm:$0xff] }
 0x1a5   : > { %1287 = vst.msk [vmem:[#allocation3 + $0x48] sm:$0xff] %vm920_vm1, %v1270_v35  ;;  %v1340_v35 = vpack.c.bf16 %v1324_v24, %v1324_v24  ;;  %v7054_v24 = vld [vmem:[%s8167_s8 + $0x28] sm:$0xff] }
 0x1a8   : > { %v1197_v36 = vpop.f32.mrf.mxu2  ;;  %v1246_v38 = vpop.f32.mrf.mxu3 }
 0x1a9   : > { %v1247_v39 = vadd.f32 %v1246_v38, %v1197_v36  ;;  %v1298_v36 = vld [vmem:[#allocation3 + $0x8] sm:$0xff]  ;;  %v1297_v38 = vld [vmem:[#allocation3] sm:$0xff] }
 0x1ab   : > { %v1271_v40 = vadd.f32 %v1247_v39, %v947_v37  ;;  %v1339_v37 = vpack.c.bf16 %v1323_v31, %v1323_v31  ;;  %v7094_v31 = vld [vmem:[%s8167_s8 + $0x18] sm:$0xff] }
 0x1ad   : > { %1288 = vst.msk [vmem:[#allocation3 + $0x50] sm:$0xff] %vm920_vm1, %v1271_v40  ;;  %v1532_v40 = vunpack.c.l.b16 %v1340_v35  ;;  %v6163_v35 = vld [vmem:[%s8166_s7 + $0x18] sm:$0xff] }
 0x1b0   : > { %v1199_v41 = vpop.f32.mrf.mxu2  ;;  %v1248_v43 = vpop.f32.mrf.mxu3 }
 0x1b1   : > { %v1249_v44 = vadd.f32 %v1248_v43, %v1199_v41  ;;  %v1318_v41 = vmul.f32 %v6926_v47, %v1298_v36  ;;  %v1317_v43 = vmul.f32 %v6926_v47, %v1297_v38  ;;  %v6164_v36 = vld [vmem:[%s8166_s7 + $0x20] sm:$0xff] }
 0x1b3   : > { %v1272_v45 = vadd.f32 %v1249_v44, %v948_v42  ;;  %v1531_v42 = vunpack.c.l.b16 %v1339_v37  ;;  %v6165_v37 = vld [vmem:[%s8166_s7 + $0x28] sm:$0xff] }
 0x1b4   : > { %v1307_v46 = vld [vmem:[#allocation3 + $0x50] sm:$0xff] }
 0x1b5   : > { %1289 = vst.msk [vmem:[#allocation3 + $0x58] sm:$0xff] %vm920_vm1, %v1272_v45  ;;  %v1327_v52 = vmul.f32 %v6926_v47, %v1307_v46  ;;  %v6964_v45 = vld [vmem:[%s8167_s8 + $0x68] sm:$0xff]  ;;  %v6966_v46 = vpack.c.b16 %v1532_v40, %v1531_v42 }
 0x1b7   : > { %v1343_v57 = vpack.c.bf16 %v1327_v52, %v1327_v52 }
 0x1b8   : > { %v1202_v48 = vpop.f32.mrf.mxu2  ;;  %v1251_v50 = vpop.f32.mrf.mxu3 }
 0x1b9   : > { %v1252_v51 = vadd.f32 %v1251_v50, %v1202_v48  ;;  %v1535_v1 = vunpack.c.l.b16 %v1343_v57  ;;  %v1334_v48 = vpack.c.bf16 %v1318_v41, %v1318_v41  ;;  %v1333_v50 = vpack.c.bf16 %v1317_v43, %v1317_v43  ;;  %v6167_v43 = vld [vmem:[%s8166_s7 + $0x38] sm:$0xff] }
 0x1bb   : > { %v1273_v53 = vadd.f32 %v1252_v51, %v949_v49  ;;  %v1525_v58 = vunpack.c.l.b16 %v1333_v50 }
 0x1bc   : > { %v1308_v54 = vld [vmem:[#allocation3 + $0x58] sm:$0xff] }
 0x1bd   : > { %1290 = vst.msk [vmem:[#allocation3 + $0x60] sm:$0xff] %vm920_vm1, %v1273_v53  ;;  %v1328_v56 = vmul.f32 %v6926_v47, %v1308_v54  ;;  %v1306_v53 = vld [vmem:[#allocation3 + $0x48] sm:$0xff]  ;;  %v1526_v54 = vunpack.c.l.b16 %v1334_v48 }
 0x1be   : > { %v1326_v57 = vmul.f32 %v6926_v47, %v1306_v53 }
 0x1bf   : > { %v1344_v59 = vpack.c.bf16 %v1328_v56, %v1328_v56  ;;  %v1305_v56 = vld [vmem:[#allocation3 + $0x40] sm:$0xff] }
 0x1c0   : > { %v1204_v61 = vpop.f32.mrf.mxu2  ;;  %v1253_v63 = vpop.f32.mrf.mxu3 }
 0x1c1   : > { %v1254_v0 = vadd.f32 %v1253_v63, %v1204_v61  ;;  %v1536_v2 = vunpack.c.l.b16 %v1344_v59  ;;  %v6976_v61 = vld [vmem:[%s8167_s8 + $0x40] sm:$0xff]  ;;  %v6979_v63 = vpack.c.b16 %v1526_v54, %v1525_v58 }
 0x1c2   : > { %v6188_v58 = vld [vmem:[%s8166_s7 + $0x60] sm:$0xff] }
 0x1c3   : > { %v1274_v4 = vadd.f32 %v1254_v0, %v950_v62  ;;  %v6933_v5 = vpack.c.b16 %v1536_v2, %v1535_v1  ;;  %v1325_v62 = vmul.f32 %v6926_v47, %v1305_v56  ;;  %v1342_v1 = vpack.c.bf16 %v1326_v57, %v1326_v57  ;;  %v1300_v2 = vld [vmem:[#allocation3 + $0x18] sm:$0xff] }
 0x1c4   : > { %v1309_v8 = vld [vmem:[#allocation3 + $0x60] sm:$0xff]  ;;  %v1320_v7 = vmul.f32 %v6926_v47, %v1300_v2 }
 0x1c5   : > { %1291 = vst.msk [vmem:[#allocation3 + $0x68] sm:$0xff] %vm920_vm1, %v1274_v4  ;;  %2060 = vrot.lane.b32.xlu0 %v6933_v5, %s6564_s12  ;;  %v1329_v15 = vmul.f32 %v6926_v47, %v1309_v8  ;;  %v1341_v3 = vpack.c.bf16 %v1325_v62, %v1325_v62  ;;  %v1299_v4 = vld [vmem:[#allocation3 + $0x10] sm:$0xff]  ;;  %v1534_v6 = vunpack.c.l.b16 %v1342_v1  ;;  %v6994_v8 = vld [vmem:[%s8167_s8 + $0x38] sm:$0xff] }
 0x1c7   : > { %v1345_v21 = vpack.c.bf16 %v1329_v15, %v1329_v15 }
 0x1c8   : > { %v1207_v10 = vpop.f32.mrf.mxu2  ;;  %v1256_v12 = vpop.f32.mrf.mxu3 }
 0x1c9   : > { %v1257_v13 = vadd.f32 %v1256_v12, %v1207_v10  ;;  %v1537_v29 = vunpack.c.l.b16 %v1345_v21  ;;  %v1533_v10 = vunpack.c.l.b16 %v1341_v3  ;;  %v7036_v21 = vld [vmem:[%s8167_s8 + $0x30] sm:$0xff] }
 0x1cb   : > { %v1275_v16 = vadd.f32 %v1257_v13, %v951_v11  ;;  %v1319_v11 = vmul.f32 %v6926_v47, %v1299_v4  ;;  %v7002_v12 = vpack.c.b16 %v1534_v6, %v1533_v10  ;;  %v1336_v13 = vpack.c.bf16 %v1320_v7, %v1320_v7  ;;  %v6190_v4 = vld [vmem:[%s8166_s7 + $0x70] sm:$0xff] }
 0x1cc   : > { %v1310_v18 = vld [vmem:[#allocation3 + $0x68] sm:$0xff] }
 0x1cd   : > { %1292 = vst.msk [vmem:[#allocation3 + $0x70] sm:$0xff] %vm920_vm1, %v1275_v16  ;;  %2054 = vrot.lane.b32.xlu0 %v6939_v17, %s6564_s12  ;;  %v1330_v20 = vmul.f32 %v6926_v47, %v1310_v18  ;;  %v1335_v14 = vpack.c.bf16 %v1319_v11, %v1319_v11  ;;  %v1528_v15 = vunpack.c.l.b16 %v1336_v13  ;;  %v7018_v16 = vld [vmem:[%s8167_s8 + $0x58] sm:$0xff] }
 0x1cf   : > { %v1346_v23 = vpack.c.bf16 %v1330_v20, %v1330_v20  ;;  %v1527_v18 = vunpack.c.l.b16 %v1335_v14  ;;  %v7031_v20 = vld [vmem:[%s8167_s8 + $0x8] sm:$0xff] }
 0x1d0   : > { %v1209_v25 = vpop.f32.mrf.mxu2  ;;  %v1258_v27 = vpop.f32.mrf.mxu3 }
 0x1d1   : > { %v1259_v28 = vadd.f32 %v1258_v27, %v1209_v25  ;;  %v1538_v30 = vunpack.c.l.b16 %v1346_v23  ;;  %v7020_v19 = vpack.c.b16 %v1528_v15, %v1527_v18  ;;  %v6160_v23 = vld [vmem:[%s8166_s7] sm:$0xff]  ;;  %v7059_v25 = vld [vmem:[%s8167_s8 + $0x50] sm:$0xff]  ;;  %v7073_v27 = vld [vmem:[%s8167_s8 + $0x48] sm:$0xff] }
 0x1d3   : > { %v1276_v33 = vadd.f32 %v1259_v28, %v952_v26  ;;  %v6952_v34 = vpack.c.b16 %v1538_v30, %v1537_v29  ;;  %v7068_v26 = vld [vmem:[%s8167_s8] sm:$0xff]  ;;  %v6161_v28 = vld [vmem:[%s8166_s7 + $0x8] sm:$0xff]  ;;  %v6566_v30 = vmov 1  }
 0x1d4   : > { %v1311_v39 = vld [vmem:[#allocation3 + $0x70] sm:$0xff]  ;;  %v7085_v29 = vld [vmem:[%s8167_s8 + $0x20] sm:$0xff] }
 0x1d5   : > { %1293 = vst.msk [vmem:[#allocation3 + $0x78] sm:$0xff] %vm920_vm1, %v1276_v33  ;;  %1453 = vperm.xlu0 %6406, %v6950_v32   ;;  %2062 = vrot.lane.b32.xlu2 %v6952_v34, %s6564_s12  ;;  %v1331_v44 = vmul.f32 %v6926_v47, %v1311_v39  ;;  %v6162_v33 = vld [vmem:[%s8166_s7 + $0x10] sm:$0xff] }
 0x1d6   : > { %v6166_v39 = vld [vmem:[%s8166_s7 + $0x30] sm:$0xff] }
 0x1d7   : > { %v1347_v52 = vpack.c.bf16 %v1331_v44, %v1331_v44 }
 0x1d9   : > { %v1539_v59 = vunpack.c.l.b16 %v1347_v52  ;;  %v6186_v52 = vld [vmem:[%s8166_s7 + $0x50] sm:$0xff] }
 0x1dc   : > { %v1312_v49 = vld [vmem:[#allocation3 + $0x78] sm:$0xff] }
 0x1dd   : > { %1448 = vperm.xlu0 %6406, %v6964_v45   ;;  %2056 = vrot.lane.b32.xlu2 %v6966_v46, %s6564_s12  ;;  %v1332_v51 = vmul.f32 %v6926_v47, %v1312_v49  ;;  %v7013_v47 = vld [vmem:[%s8167_s8 + $0x10] sm:$0xff]  ;;  %v6185_v49 = vld [vmem:[%s8166_s7 + $0x48] sm:$0xff] }
 0x1df   : > { %v1348_v55 = vpack.c.bf16 %v1332_v51, %v1332_v51 }
 0x1e1   : > { %v1540_v60 = vunpack.c.l.b16 %v1348_v55  ;;  %v6187_v55 = vld [vmem:[%s8166_s7 + $0x58] sm:$0xff] }
 0x1e3   : > { %v6981_v0 = vpack.c.b16 %v1540_v60, %v1539_v59 }
 0x1e5   : > { %1423 = vperm.xlu0 %6406, %v6976_v61   ;;  %2050 = vrot.lane.b32.xlu2 %v6979_v63, %s6564_s12 }
 0x1e6   : > { %2064 = vrot.lane.b32.xlu1 %v6981_v0, %s6564_s12  ;;  %1557 = vmatpush.bf16.msrb.mxu0 %v6981_v0 }
 0x1ea   : > { %1558 = vmatpush.bf16.msrb.mxu0 %v6952_v34 }
 0x1ed   : > { %1418 = vperm.xlu0 %6406, %v6994_v8   ;;  %1443 = vperm.xlu2 %6408, %v6999_v9  }
 0x1ee   : > { %2058 = vrot.lane.b32.xlu1 %v7002_v12, %s6564_s12  ;;  %1559 = vmatpush.bf16.msrb.mxu0 %v6933_v5 }
 0x1f2   : > { %1560 = vmatpush.bf16.msrb.mxu0 %v7002_v12 }
 0x1f5   : > { %1393 = vperm.xlu0 %6406, %v7013_v47   ;;  %1438 = vperm.xlu2 %6408, %v7018_v16  }
 0x1f6   : > { %2052 = vrot.lane.b32.xlu1 %v7020_v19, %s6564_s12  ;;  %1561 = vmatpush.bf16.msrb.mxu0 %v6966_v46  ;;  %s6570_s12 = smov 40  }
 0x1fa   : > { %1562 = vmatpush.bf16.msrb.mxu0 %v6939_v17 }
 0x1fd   : > { %1388 = vperm.xlu0 %6406, %v7031_v20   ;;  %1413 = vperm.xlu2 %6408, %v7036_v21  }
 0x1fe   : > { %1458 = vperm.xlu1 %6407, %v7041_v22   ;;  %1563 = vmatpush.bf16.msrb.mxu0 %v7020_v19 }
 0x202   : > { %1564 = vmatpush.bf16.msrb.mxu0 %v6979_v63 }
 0x205   : > { %1565 = vmatmul.bf16.vlgmr.msrb.gmra.mxu0 %v6160_v23  ;;  %2708 = vrot.lane.b32.xlu0 %v6952_v34, %s6565_s26 }
 0x206   : > { %1408 = vperm.xlu2 %6408, %v7054_v24   ;;  %1433 = vperm.xlu1 %6407, %v7059_v25  }
 0x20d   : > { %2706 = vrot.lane.b32.xlu0 %v6933_v5, %s6565_s26 }
 0x20e   : > { %1383 = vperm.xlu2 %6408, %v7068_v26   ;;  %1428 = vperm.xlu1 %6407, %v7073_v27  }
 0x215   : > { %1570 = vmatmul.bf16.gmra.mxu0 %v6161_v28  ;;  %2704 = vrot.lane.b32.xlu0 %v7002_v12, %s6565_s26 }
 0x216   : > { %6410 = vset.pattern.permute.xlu2 %v6566_v30  ;;  %1403 = vperm.xlu1 %6407, %v7085_v29  }
 0x217   : > { %1999 = vperm.xlu2 %6410, %v7041_v22  }
 0x21d   : > { %2710 = vrot.lane.b32.xlu0 %v6981_v0, %s6565_s26 }
 0x21e   : > { %1398 = vperm.xlu1 %6407, %v7094_v31  }
 0x21f   : > { %1991 = vperm.xlu2 %6410, %v6964_v45  }
 0x225   : > { %1575 = vmatmul.bf16.gmra.mxu0 %v6162_v33  ;;  %2702 = vrot.lane.b32.xlu0 %v6966_v46, %s6565_s26 }
 0x226   : > { %6409 = vset.pattern.permute.xlu1 %v6566_v30 }
 0x227   : > { %1983 = vperm.xlu2 %6410, %v7018_v16   ;;  %1995 = vperm.xlu1 %6409, %v6950_v32  }
 0x22d   : > { %2700 = vrot.lane.b32.xlu0 %v6939_v17, %s6565_s26 }
 0x22f   : > { %1975 = vperm.xlu2 %6410, %v7073_v27   ;;  %1987 = vperm.xlu1 %6409, %v6999_v9   ;;  %v2063_v38 = vpop.permute.xlu2 %2062 }
 0x235   : > { %1580 = vmatmul.bf16.gmra.mxu0 %v6163_v35  ;;  %2698 = vrot.lane.b32.xlu0 %v7020_v19, %s6565_s26 }
 0x237   : > { %1967 = vperm.xlu2 %6410, %v6994_v8   ;;  %1979 = vperm.xlu1 %6409, %v7059_v25  }
 0x23d   : > { %2696 = vrot.lane.b32.xlu0 %v6979_v63, %s6565_s26  ;;  %s6571_s26 = smov 56  }
 0x23f   : > { %1959 = vperm.xlu2 %6410, %v7054_v24   ;;  %1971 = vperm.xlu1 %6409, %v6976_v61  }
 0x245   : > { %1585 = vmatmul.bf16.gmra.mxu0 %v6164_v36  ;;  %3352 = vrot.lane.b32.xlu0 %v6933_v5, %s6567_s22 }
 0x247   : > { %1951 = vperm.xlu2 %6410, %v7094_v31   ;;  %1963 = vperm.xlu1 %6409, %v7036_v21  }
 0x24d   : > { %3346 = vrot.lane.b32.xlu0 %v6939_v17, %s6567_s22  ;;  %v2061_v17 = vpop.permute.xlu0 %2060 }
 0x24f   : > { %1943 = vperm.xlu2 %6410, %v7031_v20   ;;  %1955 = vperm.xlu1 %6409, %v7085_v29  }
 0x255   : > { %1590 = vmatmul.bf16.gmra.mxu0 %v6165_v37  ;;  %v2055_v41 = vpop.permute.xlu0 %2054 }
 0x257   : > { %3354 = vrot.lane.b32.xlu2 %v6952_v34, %s6567_s22  ;;  %1947 = vperm.xlu1 %6409, %v7013_v47   ;;  %v2057_v34 = vpop.permute.xlu2 %2056 }
 0x258   : > { %v2065_v5 = vpop.permute.xlu1 %2064 }
 0x259   : > { %2074 = vmatpush.bf16.msrb.mxu3 %v2065_v5 }
 0x25d   : > { %2075 = vmatpush.bf16.msrb.mxu3 %v2063_v38  ;;  %v1454_v59 = vpop.permute.xlu0 %1453 }
 0x25f   : > { %3348 = vrot.lane.b32.xlu2 %v6966_v46, %s6567_s22  ;;  %1939 = vperm.xlu1 %6409, %v7068_v26   ;;  %v2051_v44 = vpop.permute.xlu2 %2050  ;;  %v6184_v46 = vld [vmem:[%s8166_s7 + $0x40] sm:$0xff] }
 0x260   : > { %v2059_v40 = vpop.permute.xlu1 %2058 }
 0x261   : > { %2076 = vmatpush.bf16.msrb.mxu3 %v2061_v17 }
 0x265   : > { %1595 = vmatmul.bf16.gmra.mxu0 %v6166_v39  ;;  %2077 = vmatpush.bf16.msrb.mxu3 %v2059_v40  ;;  %v1449_v62 = vpop.permute.xlu0 %1448 }
 0x267   : > { %3342 = vrot.lane.b32.xlu2 %v6979_v63, %s6567_s22  ;;  %3356 = vrot.lane.b32.xlu1 %v6981_v0, %s6567_s22  ;;  %v6189_v0 = vld [vmem:[%s8166_s7 + $0x68] sm:$0xff]  ;;  %v1444_v18 = vpop.permute.xlu2 %1443 }
 0x268   : > { %v2053_v42 = vpop.permute.xlu1 %2052 }
 0x269   : > { %2078 = vmatpush.bf16.msrb.mxu3 %v2057_v34 }
 0x26d   : > { %2079 = vmatpush.bf16.msrb.mxu3 %v2055_v41  ;;  %v1424_v2 = vpop.permute.xlu0 %1423 }
 0x26f   : > { %3350 = vrot.lane.b32.xlu1 %v7002_v12, %s6567_s22  ;;  %v6191_v12 = vld [vmem:[%s8166_s7 + $0x78] sm:$0xff]  ;;  %v1439_v30 = vpop.permute.xlu2 %1438 }
 0x270   : > { %v1459_v13 = vpop.permute.xlu1 %1458 }
 0x271   : > { %2080 = vmatpush.bf16.msrb.mxu3 %v2053_v42 }
 0x275   : > { %1600 = vmatmul.bf16.gmra.mxu0 %v6167_v43  ;;  %2081 = vmatpush.bf16.msrb.mxu3 %v2051_v44  ;;  %v1419_v6 = vpop.permute.xlu0 %1418 }
 0x277   : > { %3344 = vrot.lane.b32.xlu1 %v7020_v19, %s6567_s22  ;;  %v1414_v44 = vpop.permute.xlu2 %1413 }
 0x278   : > { %2082 = vmatmul.bf16.vlgmr.msrb.gmra.mxu3 %v6184_v46  ;;  %v1434_v19 = vpop.permute.xlu1 %1433 }
 0x27d   : > { %v1394_v10 = vpop.permute.xlu0 %1393 }
 0x280   : > { %v1429_v35 = vpop.permute.xlu1 %1428 }
 0x282   : > { %v7159_v48 = vpop.f32.mrf.mxu0 }
 0x285   : > { %v1389_v14 = vpop.permute.xlu0 %1388 }
 0x288   : > { %2087 = vmatmul.bf16.gmra.mxu3 %v6185_v49 }
 0x28a   : > { %v7164_v50 = vpop.f32.mrf.mxu0 }
 0x28d   : > { %v7192_v28 = vpop.permute.xlu0 %2708 }
 0x292   : > { %v7166_v51 = vpop.f32.mrf.mxu0 }
 0x295   : > { %v7196_v17 = vpop.permute.xlu0 %2706 }
 0x298   : > { %2092 = vmatmul.bf16.gmra.mxu3 %v6186_v52 }
 0x29a   : > { %v7171_v53 = vpop.f32.mrf.mxu0 }
 0x2a2   : > { %v7173_v54 = vpop.f32.mrf.mxu0 }
 0x2a8   : > { %2097 = vmatmul.bf16.gmra.mxu3 %v6187_v55 }
 0x2aa   : > { %v7178_v56 = vpop.f32.mrf.mxu0 }
 0x2b2   : > { %v1581_v57 = vpop.f32.mrf.mxu0 }
 0x2b8   : > { %2102 = vmatmul.bf16.gmra.mxu3 %v6188_v58 }
 0x2ba   : > { %v1583_v60 = vpop.f32.mrf.mxu0 }
 0x2c2   : > { %v1586_v63 = vpop.f32.mrf.mxu0 }
 0x2c8   : > { %2107 = vmatmul.bf16.gmra.mxu3 %v6189_v0  ;;  %v1587_v0 = vadd.f32 %v1586_v63, %v1424_v2 }
 0x2ca   : > { %v1588_v1 = vpop.f32.mrf.mxu0 }
 0x2cb   : > { %v1589_v52 = vadd.f32 %v1588_v1, %v1429_v35 }
 0x2d2   : > { %v1591_v3 = vpop.f32.mrf.mxu0 }
 0x2d3   : > { %v1592_v46 = vadd.f32 %v1591_v3, %v1434_v19  ;;  %v1409_v3 = vpop.permute.xlu2 %1408 }
 0x2d4   : > { %v1579_v1 = vadd.f32 %v7178_v56, %v1409_v3  ;;  %v1569_v56 = vadd.f32 %v7164_v50, %v1389_v14  ;;  %v6168_v50 = vld [vmem:[%s8168_s9] sm:$0xff] }
 0x2d5   : > { %v6176_v14 = vld [vmem:[#allocation6] sm:$0xff] }
 0x2d8   : > { %2112 = vmatmul.bf16.gmra.mxu3 %v6190_v4  ;;  %v1616_v4 = vmax.f32 %v1592_v46, 0.0 }
 0x2da   : > { %v1593_v7 = vpop.f32.mrf.mxu0 }
 0x2db   : > { %v1594_v41 = vadd.f32 %v1593_v7, %v1439_v30  ;;  %v1615_v7 = vmax.f32 %v1589_v52, 0.0  ;;  %v6169_v52 = vld [vmem:[%s8168_s9 + $0x8] sm:$0xff] }
 0x2dd   : > { %v1617_v55 = vmax.f32 %v1594_v41, 0.0 }
 0x2e2   : > { %v1596_v11 = vpop.f32.mrf.mxu0 }
 0x2e3   : > { %v1597_v39 = vadd.f32 %v1596_v11, %v1444_v18  ;;  %v2705_v11 = vpop.permute.xlu0 %2704  ;;  %v1614_v18 = vmax.f32 %v1587_v0, 0.0 }
 0x2e5   : > { %v1618_v49 = vmax.f32 %v1597_v39, 0.0  ;;  %v1626_v30 = vpack.c.bf16 %v1615_v7, %v1614_v18  ;;  %v6179_v18 = vld [vmem:[#allocation6 + $0x18] sm:$0xff] }
 0x2e8   : > { %2117 = vmatmul.bf16.gmra.mxu3 %v6191_v12  ;;  %v1584_v12 = vadd.f32 %v1583_v60, %v1419_v6  ;;  %v1611_v6 = vmax.f32 %v1579_v1, 0.0 }
 0x2ea   : > { %v1598_v15 = vpop.f32.mrf.mxu0  ;;  %v1613_v19 = vmax.f32 %v1584_v12, 0.0 }
 0x2eb   : > { %v1599_v37 = vadd.f32 %v1598_v15, %v1449_v62  ;;  %v1404_v62 = vpop.permute.xlu1 %1403  ;;  %v1582_v15 = vadd.f32 %v1581_v57, %v1414_v44  ;;  %v2711_v35 = vpop.permute.xlu0 %2710 }
 0x2ec   : > { %v1577_v63 = vadd.f32 %v7173_v54, %v1404_v62 }
 0x2ed   : > { %v1619_v42 = vmax.f32 %v1599_v37, 0.0  ;;  %v1612_v2 = vmax.f32 %v1582_v15, 0.0  ;;  %v6171_v15 = vld [vmem:[%s8168_s9 + $0x18] sm:$0xff] }
 0x2ee   : > { %v1610_v37 = vmax.f32 %v1577_v63, 0.0 }
 0x2ef   : > { %v1625_v57 = vpack.c.bf16 %v1613_v19, %v1612_v2 }
 0x2f0   : > { %v1624_v54 = vpack.c.bf16 %v1611_v6, %v1610_v37 }
 0x2f2   : > { %v1601_v23 = vpop.f32.mrf.mxu0 }
 0x2f3   : > { %v1602_v33 = vadd.f32 %v1601_v23, %v1454_v59  ;;  %v1628_v59 = vpack.c.bf16 %v1619_v42, %v1618_v49 }
 0x2f5   : > { %v1620_v40 = vmax.f32 %v1602_v33, 0.0  ;;  %v1399_v33 = vpop.permute.xlu1 %1398 }
 0x2f6   : > { %v1574_v60 = vadd.f32 %v7171_v53, %v1399_v33  ;;  %v1607_v53 = vmax.f32 %v1569_v56, 0.0  ;;  %v6172_v33 = vld [vmem:[%s8168_s9 + $0x20] sm:$0xff]  ;;  %v6173_v56 = vld [vmem:[%s8168_s9 + $0x28] sm:$0xff] }
 0x2fa   : > { %v1603_v36 = vpop.f32.mrf.mxu0 }
 0x2fb   : > { %v1604_v5 = vadd.f32 %v1603_v36, %v1459_v13  ;;  %v7194_v38 = vpop.f32.mrf.mxu3  ;;  %v1627_v13 = vpack.c.bf16 %v1617_v55, %v1616_v4  ;;  %v1572_v36 = vadd.f32 %v7166_v51, %v1394_v10  ;;  %v2703_v51 = vpop.permute.xlu0 %2702  ;;  %v6177_v55 = vld [vmem:[#allocation6 + $0x8] sm:$0xff]  ;;  %v6178_v4 = vld [vmem:[#allocation6 + $0x10] sm:$0xff] }
 0x2fd   : > { %v1621_v34 = vmax.f32 %v1604_v5, 0.0  ;;  %v1609_v5 = vmax.f32 %v1574_v60, 0.0  ;;  %v1608_v41 = vmax.f32 %v1572_v36, 0.0  ;;  %v1996_v12 = vpop.permute.xlu1 %1995  ;;  %v6180_v60 = vld [vmem:[#allocation6 + $0x20] sm:$0xff] }
 0x2ff   : > { %v1629_v43 = vpack.c.bf16 %v1621_v34, %v1620_v40  ;;  %v1384_v40 = vpop.permute.xlu2 %1383  ;;  %v1623_v42 = vpack.c.bf16 %v1609_v5, %v1608_v41  ;;  %v6181_v5 = vld [vmem:[#allocation6 + $0x28] sm:$0xff] }
 0x300   : > { %v1567_v34 = vadd.f32 %v7159_v48, %v1384_v40  ;;  %v6568_v40 = vmov 2  }
 0x301   : > { %1694 = vmatpush.bf16.msrb.mxu1 %v1629_v43  ;;  %1840 = vmatpush.bf16.msrb.mxu2 %v1629_v43 }
 0x302   : > { %v1606_v43 = vmax.f32 %v1567_v34, 0.0  ;;  %6411 = vset.pattern.permute.xlu0 %v6568_v40  ;;  %6412 = vset.pattern.permute.xlu1 %v6568_v40 }
 0x303   : > { %v7198_v58 = vpop.f32.mrf.mxu3  ;;  %v2701_v46 = vpop.permute.xlu0 %2700  ;;  %2641 = vperm.xlu0 %6411, %v6950_v32   ;;  %2645 = vperm.xlu1 %6412, %v7041_v22  }
 0x304   : > { %v1622_v44 = vpack.c.bf16 %v1607_v53, %v1606_v43  ;;  %6413 = vset.pattern.permute.xlu2 %v6568_v40  ;;  %v6175_v40 = vld [vmem:[%s8168_s9 + $0x38] sm:$0xff] }
 0x305   : > { %1695 = vmatpush.bf16.msrb.mxu1 %v1628_v59  ;;  %1841 = vmatpush.bf16.msrb.mxu2 %v1628_v59  ;;  %v1988_v3 = vpop.permute.xlu1 %1987 }
 0x306   : > { %2633 = vperm.xlu2 %6413, %v6999_v9  }
 0x307   : > { %v2000_v7 = vpop.permute.xlu2 %1999 }
 0x309   : > { %1696 = vmatpush.bf16.msrb.mxu1 %v1627_v13  ;;  %1842 = vmatpush.bf16.msrb.mxu2 %v1627_v13 }
 0x30b   : > { %v7201_v23 = vpop.f32.mrf.mxu3  ;;  %v2699_v59 = vpop.permute.xlu0 %2698  ;;  %2629 = vperm.xlu0 %6411, %v7018_v16   ;;  %2637 = vperm.xlu1 %6412, %v6964_v45  }
 0x30d   : > { %1697 = vmatpush.bf16.msrb.mxu1 %v1626_v30  ;;  %1843 = vmatpush.bf16.msrb.mxu2 %v1626_v30  ;;  %v1980_v30 = vpop.permute.xlu1 %1979 }
 0x30e   : > { %2625 = vperm.xlu2 %6413, %v7059_v25  }
 0x30f   : > { %v1992_v1 = vpop.permute.xlu2 %1991 }
 0x311   : > { %1698 = vmatpush.bf16.msrb.mxu1 %v1625_v57  ;;  %1844 = vmatpush.bf16.msrb.mxu2 %v1625_v57 }
 0x313   : > { %v7207_v39 = vpop.f32.mrf.mxu3  ;;  %2609 = vperm.xlu0 %6411, %v7036_v21   ;;  %2617 = vperm.xlu1 %6412, %v6976_v61  }
 0x315   : > { %1699 = vmatpush.bf16.msrb.mxu1 %v1624_v54  ;;  %1845 = vmatpush.bf16.msrb.mxu2 %v1624_v54  ;;  %v1972_v6 = vpop.permute.xlu1 %1971 }
 0x316   : > { %2621 = vperm.xlu2 %6413, %v7073_v27  }
 0x317   : > { %v1984_v63 = vpop.permute.xlu2 %1983 }
 0x319   : > { %1700 = vmatpush.bf16.msrb.mxu1 %v1623_v42  ;;  %1846 = vmatpush.bf16.msrb.mxu2 %v1623_v42 }
 0x31b   : > { %v7210_v10 = vpop.f32.mrf.mxu3  ;;  %2605 = vperm.xlu0 %6411, %v7054_v24   ;;  %2613 = vperm.xlu1 %6412, %v6994_v8  }
 0x31d   : > { %1701 = vmatpush.bf16.msrb.mxu1 %v1622_v44  ;;  %1847 = vmatpush.bf16.msrb.mxu2 %v1622_v44  ;;  %v1964_v37 = vpop.permute.xlu1 %1963 }
 0x31e   : > { %2601 = vperm.xlu2 %6413, %v7085_v29  }
 0x31f   : > { %v1976_v57 = vpop.permute.xlu2 %1975 }
 0x320   : > { %1702 = vmatmul.bf16.vlgmr.msrb.gmra.mxu1 %v6168_v50  ;;  %1848 = vmatmul.bf16.vlgmr.msrb.gmra.mxu2 %v6176_v14 }
 0x321   : > { %2720 = vmatpush.bf16.msra.mxu2 %v2711_v35 }
 0x323   : > { %v7216_v48 = vpop.f32.mrf.mxu3  ;;  %2585 = vperm.xlu0 %6411, %v7068_v26   ;;  %2593 = vperm.xlu1 %6412, %v7013_v47  }
 0x325   : > { %2721 = vmatpush.bf16.msra.mxu2 %v7192_v28  ;;  %v2697_v28 = vpop.permute.xlu0 %2696 }
 0x326   : > { %2597 = vperm.xlu2 %6413, %v7094_v31  }
 0x327   : > { %v1968_v54 = vpop.permute.xlu2 %1967 }
 0x329   : > { %2722 = vmatpush.bf16.msra.mxu2 %v7196_v17  ;;  %v6170_v17 = vld [vmem:[%s8168_s9 + $0x10] sm:$0xff] }
 0x32b   : > { %v7219_v49 = vpop.f32.mrf.mxu3  ;;  %2589 = vperm.xlu1 %6412, %v7031_v20  }
 0x32d   : > { %2723 = vmatpush.bf16.msra.mxu2 %v2705_v11 }
 0x32f   : > { %v1960_v14 = vpop.permute.xlu2 %1959 }
 0x330   : > { %1707 = vmatmul.bf16.gmra.mxu1 %v6169_v52  ;;  %1853 = vmatmul.bf16.gmra.mxu2 %v6177_v55 }
 0x331   : > { %2724 = vmatpush.bf16.msra.mxu2 %v2703_v51  ;;  %v1956_v51 = vpop.permute.xlu1 %1955 }
 0x333   : > { %v7224_v62 = vpop.f32.mrf.mxu3 }
 0x335   : > { %2725 = vmatpush.bf16.msra.mxu2 %v2701_v46 }
 0x339   : > { %2726 = vmatpush.bf16.msra.mxu2 %v2699_v59 }
 0x33b   : > { %v2103_v0 = vpop.f32.mrf.mxu3 }
 0x33d   : > { %2727 = vmatpush.bf16.msra.mxu2 %v2697_v28 }
 0x340   : > { %1712 = vmatmul.bf16.gmra.mxu1 %v6170_v17  ;;  %1858 = vmatmul.bf16.gmra.mxu2 %v6178_v4  ;;  %v2104_v17 = vadd.f32 %v2103_v0, %v1972_v6 }
 0x343   : > { %v2105_v11 = vpop.f32.mrf.mxu3 }
 0x344   : > { %v2106_v4 = vadd.f32 %v2105_v11, %v1976_v57 }
 0x346   : > { %v2132_v0 = vmax.f32 %v2106_v4, 0.0  ;;  %v6193_v4 = vld [vmem:[%s8168_s9 + $0x48] sm:$0xff] }
 0x34b   : > { %v2108_v13 = vpop.f32.mrf.mxu3 }
 0x34c   : > { %v2109_v46 = vadd.f32 %v2108_v13, %v1980_v30  ;;  %v6174_v13 = vld [vmem:[%s8168_s9 + $0x30] sm:$0xff]  ;;  %v2131_v30 = vmax.f32 %v2104_v17, 0.0 }
 0x350   : > { %1717 = vmatmul.bf16.gmra.mxu1 %v6171_v15  ;;  %1863 = vmatmul.bf16.gmra.mxu2 %v6179_v18  ;;  %v6182_v18 = vld [vmem:[#allocation6 + $0x30] sm:$0xff] }
 0x353   : > { %v2110_v19 = vpop.f32.mrf.mxu3 }
 0x354   : > { %v2111_v52 = vadd.f32 %v2110_v19, %v1984_v63  ;;  %v2101_v19 = vadd.f32 %v7224_v62, %v1968_v54  ;;  %v1952_v63 = vpop.permute.xlu2 %1951 }
 0x355   : > { %v2091_v57 = vadd.f32 %v7207_v39, %v1952_v63 }
 0x356   : > { %v2130_v62 = vmax.f32 %v2101_v19, 0.0 }
 0x357   : > { %v2126_v54 = vmax.f32 %v2091_v57, 0.0  ;;  %v6202_v57 = vld [vmem:[#allocation6 + $0x10] sm:$0xff] }
 0x35b   : > { %v2113_v2 = vpop.f32.mrf.mxu3 }
 0x35c   : > { %v2114_v53 = vadd.f32 %v2113_v2, %v1988_v3  ;;  %v2099_v3 = vadd.f32 %v7219_v49, %v1964_v37  ;;  %v2094_v2 = vadd.f32 %v7210_v10, %v1956_v51  ;;  %v2096_v49 = vadd.f32 %v7216_v48, %v1960_v14  ;;  %v1944_v48 = vpop.permute.xlu2 %1943 }
 0x35e   : > { %v2135_v55 = vmax.f32 %v2114_v53, 0.0 }
 0x360   : > { %1722 = vmatmul.bf16.gmra.mxu1 %v6172_v33  ;;  %1868 = vmatmul.bf16.gmra.mxu2 %v6180_v60  ;;  %v2129_v33 = vmax.f32 %v2099_v3, 0.0  ;;  %v2143_v60 = vpack.c.bf16 %v2132_v0, %v2131_v30  ;;  %v6201_v3 = vld [vmem:[#allocation6 + $0x8] sm:$0xff] }
 0x362   : > { %v2142_v37 = vpack.c.bf16 %v2130_v62, %v2129_v33  ;;  %v6194_v33 = vld [vmem:[%s8168_s9 + $0x50] sm:$0xff] }
 0x363   : > { %v2115_v35 = vpop.f32.mrf.mxu3 }
 0x364   : > { %v2116_v42 = vadd.f32 %v2115_v35, %v1992_v1  ;;  %v1948_v1 = vpop.permute.xlu1 %1947  ;;  %v2127_v35 = vmax.f32 %v2094_v2, 0.0  ;;  %v3355_v51 = vpop.permute.xlu2 %3354 }
 0x365   : > { %v2089_v6 = vadd.f32 %v7201_v23, %v1948_v1  ;;  %v6209_v1 = vld [vmem:[%s8166_s7 + $0x88] sm:$0xff] }
 0x366   : > { %v2136_v59 = vmax.f32 %v2116_v42, 0.0 }
 0x367   : > { %v2125_v23 = vmax.f32 %v2089_v6, 0.0 }
 0x368   : > { %v2145_v15 = vpack.c.bf16 %v2136_v59, %v2135_v55 }
 0x369   : > { %v2140_v42 = vpack.c.bf16 %v2126_v54, %v2125_v23 }
 0x36b   : > { %v2118_v36 = vpop.f32.mrf.mxu3 }
 0x36c   : > { %v2119_v34 = vadd.f32 %v2118_v36, %v1996_v12  ;;  %v2133_v12 = vmax.f32 %v2109_v46, 0.0  ;;  %v2128_v36 = vmax.f32 %v2096_v49, 0.0  ;;  %v1940_v10 = vpop.permute.xlu1 %1939  ;;  %v3353_v46 = vpop.permute.xlu0 %3352 }
 0x36e   : > { %v2137_v44 = vmax.f32 %v2119_v34, 0.0  ;;  %v2141_v39 = vpack.c.bf16 %v2128_v36, %v2127_v35  ;;  %v6183_v34 = vld [vmem:[#allocation6 + $0x38] sm:$0xff]  ;;  %v6210_v35 = vld [vmem:[%s8166_s7 + $0x90] sm:$0xff] }
 0x370   : > { %1727 = vmatmul.bf16.gmra.mxu1 %v6173_v56  ;;  %1873 = vmatmul.bf16.gmra.mxu2 %v6181_v5  ;;  %v2084_v56 = vadd.f32 %v7194_v38, %v1940_v10  ;;  %v2086_v5 = vadd.f32 %v7198_v58, %v1944_v48  ;;  %v6192_v58 = vld [vmem:[%s8168_s9 + $0x40] sm:$0xff] }
 0x372   : > { %v2124_v53 = vmax.f32 %v2086_v5, 0.0  ;;  %v6195_v5 = vld [vmem:[%s8168_s9 + $0x58] sm:$0xff] }
 0x373   : > { %v2120_v41 = vpop.f32.mrf.mxu3 }
 0x374   : > { %v2121_v43 = vadd.f32 %v2120_v41, %v2000_v7  ;;  %v2134_v7 = vmax.f32 %v2111_v52, 0.0  ;;  %v2123_v41 = vmax.f32 %v2084_v56, 0.0 }
 0x376   : > { %v2138_v50 = vmax.f32 %v2121_v43, 0.0  ;;  %v2144_v11 = vpack.c.bf16 %v2134_v7, %v2133_v12  ;;  %v2139_v38 = vpack.c.bf16 %v2124_v53, %v2123_v41  ;;  %v3357_v43 = vpop.permute.xlu1 %3356  ;;  %v3349_v12 = vpop.permute.xlu2 %3348  ;;  %v6569_v53 = vmov 3  }
 0x377   : > { %6415 = vset.pattern.permute.xlu2 %v6569_v53  ;;  %6414 = vset.pattern.permute.xlu1 %v6569_v53 }
 0x378   : > { %v2146_v28 = vpack.c.bf16 %v2138_v50, %v2137_v44  ;;  %v6200_v44 = vld [vmem:[#allocation6] sm:$0xff]  ;;  %3291 = vperm.xlu2 %6415, %v7041_v22   ;;  %3287 = vperm.xlu1 %6414, %v6950_v32  }
 0x379   : > { %v6208_v50 = vld [vmem:[%s8166_s7 + $0x80] sm:$0xff]  ;;  %6416 = vset.pattern.permute.xlu0 %v6569_v53 }
 0x37a   : > { %2212 = vmatpush.bf16.msra.mxu0 %v2146_v28  ;;  %2422 = vmatpush.bf16.msra.mxu1 %v2146_v28  ;;  %v6204_v22 = vld [vmem:[#allocation6 + $0x20] sm:$0xff] }
 0x37b   : > { %3279 = vperm.xlu0 %6416, %v6999_v9   ;;  %v6232_v53 = vld [vmem:[%s8166_s7 + $0xc0] sm:$0xff] }
 0x37e   : > { %2213 = vmatpush.bf16.msra.mxu0 %v2145_v15  ;;  %2423 = vmatpush.bf16.msra.mxu1 %v2145_v15  ;;  %v3351_v55 = vpop.permute.xlu1 %3350  ;;  %v3347_v15 = vpop.permute.xlu0 %3346 }
 0x380   : > { %1732 = vmatmul.bf16.gmra.mxu1 %v6174_v13  ;;  %1878 = vmatmul.bf16.gmra.mxu2 %v6182_v18 }
 0x381   : > { %3271 = vperm.xlu2 %6415, %v7059_v25   ;;  %3283 = vperm.xlu1 %6414, %v6964_v45  }
 0x382   : > { %2214 = vmatpush.bf16.msra.mxu0 %v2144_v11  ;;  %2424 = vmatpush.bf16.msra.mxu1 %v2144_v11  ;;  %v3343_v11 = vpop.permute.xlu2 %3342 }
 0x383   : > { %3267 = vperm.xlu0 %6416, %v7073_v27  }
 0x386   : > { %2215 = vmatpush.bf16.msra.mxu0 %v2143_v60  ;;  %2425 = vmatpush.bf16.msra.mxu1 %v2143_v60  ;;  %v3345_v30 = vpop.permute.xlu1 %3344 }
 0x389   : > { %3263 = vperm.xlu2 %6415, %v6976_v61   ;;  %3275 = vperm.xlu1 %6414, %v7018_v16  }
 0x38a   : > { %2216 = vmatpush.bf16.msra.mxu0 %v2142_v37  ;;  %2426 = vmatpush.bf16.msra.mxu1 %v2142_v37 }
 0x38b   : > { %3247 = vperm.xlu0 %6416, %v7085_v29   ;;  %v6205_v29 = vld [vmem:[#allocation6 + $0x28] sm:$0xff] }
 0x38e   : > { %2217 = vmatpush.bf16.msra.mxu0 %v2141_v39  ;;  %2427 = vmatpush.bf16.msra.mxu1 %v2141_v39 }
 0x390   : > { %1737 = vmatmul.bf16.gmra.mxu1 %v6175_v40  ;;  %1883 = vmatmul.bf16.gmra.mxu2 %v6183_v34  ;;  %v6203_v40 = vld [vmem:[#allocation6 + $0x18] sm:$0xff] }
 0x391   : > { %v6211_v34 = vld [vmem:[%s8166_s7 + $0x98] sm:$0xff]  ;;  %3259 = vperm.xlu2 %6415, %v6994_v8   ;;  %3255 = vperm.xlu1 %6414, %v7036_v21  }
 0x392   : > { %2218 = vmatpush.bf16.msra.mxu0 %v2140_v42  ;;  %2428 = vmatpush.bf16.msra.mxu1 %v2140_v42 }
 0x393   : > { %3243 = vperm.xlu0 %6416, %v7094_v31  }
 0x396   : > { %2219 = vmatpush.bf16.msra.mxu0 %v2139_v38  ;;  %2429 = vmatpush.bf16.msra.mxu1 %v2139_v38 }
 0x399   : > { %2220 = vmatmul.bf16.vlgmr.msra.gmra.mxu0 %v6192_v58  ;;  %3239 = vperm.xlu2 %6415, %v7013_v47   ;;  %v7345_v47 = vpop.permute.xlu1 %2645 }
 0x39a   : > { %3366 = vmatpush.bf16.msrb.mxu1 %v3357_v43  ;;  %3251 = vperm.xlu1 %6414, %v7054_v24   ;;  %v7348_v24 = vpop.permute.xlu0 %2641 }
 0x39d   : > { %v1703_v14 = vpop.f32.mrf.mxu1 }
 0x39e   : > { %3367 = vmatpush.bf16.msrb.mxu1 %v3355_v51  ;;  %v1743_v52 = vpack.c.bf16 %v1703_v14, %v1703_v14  ;;  %v6196_v51 = vld [vmem:[%s8168_s9 + $0x60] sm:$0xff] }
 0x3a0   : > { %1760 = vst.msk [vmem:[#allocation4] sm:$0xf] %vm1759_vm2, %v1743_v52  ;;  %2430 = vmatmul.bf16.vlgmr.msra.gmra.mxu1 %v6200_v44  ;;  %2728 = vmatmul.bf16.vlgmr.msra.gmra.mxu2 %v6208_v50  ;;  %v6212_v50 = vld [vmem:[%s8166_s7 + $0xa0] sm:$0xff]  ;;  %v6197_v52 = vld [vmem:[%s8168_s9 + $0x68] sm:$0xff] }
 0x3a1   : > { %3235 = vperm.xlu2 %6415, %v7031_v20  }
 0x3a2   : > { %3368 = vmatpush.bf16.msrb.mxu1 %v3353_v46  ;;  %3231 = vperm.xlu1 %6414, %v7068_v26   ;;  %v7355_v26 = vpop.permute.xlu1 %2637 }
 0x3a3   : > { %v1849_v59 = vpop.f32.mrf.mxu2 }
 0x3a4   : > { %v1889_v28 = vpack.c.bf16 %v1849_v59, %v1849_v59  ;;  %v6213_v59 = vld [vmem:[%s8166_s7 + $0xa8] sm:$0xff] }
 0x3a5   : > { %v1705_v17 = vpop.f32.mrf.mxu1 }
 0x3a6   : > { %3369 = vmatpush.bf16.msrb.mxu1 %v3351_v55  ;;  %1905 = vst.msk [vmem:[#allocation5] sm:$0xf] %vm1759_vm2, %v1889_v28  ;;  %v1744_v7 = vpack.c.bf16 %v1705_v17, %v1705_v17 }
 0x3a8   : > { %1761 = vst.msk [vmem:[#allocation4 + $0x4] sm:$0xf] %vm1759_vm2, %v1744_v7 }
 0x3a9   : > { %2225 = vmatmul.bf16.gmra.mxu0 %v6193_v4  ;;  %v6198_v4 = vld [vmem:[%s8168_s9 + $0x70] sm:$0xff] }
 0x3aa   : > { %3370 = vmatpush.bf16.msrb.mxu1 %v3349_v12 }
 0x3ab   : > { %v1851_v13 = vpop.f32.mrf.mxu2 }
 0x3ac   : > { %v1890_v18 = vpack.c.bf16 %v1851_v13, %v1851_v13  ;;  %v6206_v13 = vld [vmem:[#allocation6 + $0x30] sm:$0xff] }
 0x3ad   : > { %v1708_v19 = vpop.f32.mrf.mxu1 }
 0x3ae   : > { %3371 = vmatpush.bf16.msrb.mxu1 %v3347_v15  ;;  %1906 = vst.msk [vmem:[#allocation5 + $0x4] sm:$0xf] %vm1759_vm2, %v1890_v18  ;;  %v1745_v0 = vpack.c.bf16 %v1708_v19, %v1708_v19  ;;  %v6214_v18 = vld [vmem:[%s8166_s7 + $0xb0] sm:$0xff]  ;;  %v7357_v19 = vpop.permute.xlu0 %2629 }
 0x3b0   : > { %1762 = vst.msk [vmem:[#allocation4 + $0x8] sm:$0xf] %vm1759_vm2, %v1745_v0  ;;  %2435 = vmatmul.bf16.gmra.mxu1 %v6201_v3  ;;  %2733 = vmatmul.bf16.gmra.mxu2 %v6209_v1 }
 0x3b2   : > { %3372 = vmatpush.bf16.msrb.mxu1 %v3345_v30 }
 0x3b3   : > { %v1854_v63 = vpop.f32.mrf.mxu2 }
 0x3b4   : > { %v1891_v2 = vpack.c.bf16 %v1854_v63, %v1854_v63  ;;  %v7360_v63 = vpop.permute.xlu2 %2633 }
 0x3b5   : > { %v1710_v49 = vpop.f32.mrf.mxu1 }
 0x3b6   : > { %3373 = vmatpush.bf16.msrb.mxu1 %v3343_v11  ;;  %1907 = vst.msk [vmem:[#allocation5 + $0x8] sm:$0xf] %vm1759_vm2, %v1891_v2  ;;  %v1746_v62 = vpack.c.bf16 %v1710_v49, %v1710_v49  ;;  %v7363_v49 = vpop.permute.xlu1 %2617 }
 0x3b8   : > { %1763 = vst.msk [vmem:[#allocation4 + $0xc] sm:$0xf] %vm1759_vm2, %v1746_v62  ;;  %v6207_v62 = vld [vmem:[#allocation6 + $0x38] sm:$0xff] }
 0x3b9   : > { %2230 = vmatmul.bf16.gmra.mxu0 %v6194_v33 }
 0x3bb   : > { %v1856_v60 = vpop.f32.mrf.mxu2 }
 0x3bc   : > { %v1892_v6 = vpack.c.bf16 %v1856_v60, %v1856_v60  ;;  %v6215_v60 = vld [vmem:[%s8166_s7 + $0xb8] sm:$0xff] }
 0x3bd   : > { %v1713_v36 = vpop.f32.mrf.mxu1 }
 0x3be   : > { %1908 = vst.msk [vmem:[#allocation5 + $0xc] sm:$0xf] %vm1759_vm2, %v1892_v6  ;;  %v1747_v37 = vpack.c.bf16 %v1713_v36, %v1713_v36  ;;  %v7372_v36 = vpop.permute.xlu2 %2625 }
 0x3c0   : > { %1764 = vst.msk [vmem:[#allocation4 + $0x10] sm:$0xf] %vm1759_vm2, %v1747_v37  ;;  %2440 = vmatmul.bf16.gmra.mxu1 %v6202_v57  ;;  %2738 = vmatmul.bf16.gmra.mxu2 %v6210_v35  ;;  %v7368_v57 = vpop.permute.xlu0 %2609 }
 0x3c3   : > { %v1859_v10 = vpop.f32.mrf.mxu2 }
 0x3c4   : > { %v1893_v48 = vpack.c.bf16 %v1859_v10, %v1859_v10 }
 0x3c5   : > { %v1715_v56 = vpop.f32.mrf.mxu1 }
 0x3c6   : > { %1909 = vst.msk [vmem:[#allocation5 + $0x10] sm:$0xf] %vm1759_vm2, %v1893_v48  ;;  %v1748_v23 = vpack.c.bf16 %v1715_v56, %v1715_v56  ;;  %v7374_v56 = vpop.permute.xlu1 %2613 }
 0x3c8   : > { %1765 = vst.msk [vmem:[#allocation4 + $0x14] sm:$0xf] %vm1759_vm2, %v1748_v23 }
 0x3c9   : > { %2235 = vmatmul.bf16.gmra.mxu0 %v6195_v5 }
 0x3cb   : > { %v1861_v54 = vpop.f32.mrf.mxu2 }
 0x3cc   : > { %v1894_v39 = vpack.c.bf16 %v1861_v54, %v1861_v54 }
 0x3cd   : > { %v1718_v41 = vpop.f32.mrf.mxu1 }
 0x3ce   : > { %1910 = vst.msk [vmem:[#allocation5 + $0x14] sm:$0xf] %vm1759_vm2, %v1894_v39  ;;  %v1749_v42 = vpack.c.bf16 %v1718_v41, %v1718_v41  ;;  %v7377_v39 = vpop.permute.xlu0 %2605 }
 0x3d0   : > { %1766 = vst.msk [vmem:[#allocation4 + $0x18] sm:$0xf] %vm1759_vm2, %v1749_v42  ;;  %2445 = vmatmul.bf16.gmra.mxu1 %v6203_v40  ;;  %2743 = vmatmul.bf16.gmra.mxu2 %v6211_v34  ;;  %v7381_v34 = vpop.permute.xlu2 %2621 }
 0x3d3   : > { %v1864_v38 = vpop.f32.mrf.mxu2 }
 0x3d4   : > { %v1895_v58 = vpack.c.bf16 %v1864_v38, %v1864_v38 }
 0x3d5   : > { %v1720_v43 = vpop.f32.mrf.mxu1 }
 0x3d6   : > { %1911 = vst.msk [vmem:[#allocation5 + $0x18] sm:$0xf] %vm1759_vm2, %v1895_v58  ;;  %v1750_v44 = vpack.c.bf16 %v1720_v43, %v1720_v43 }
 0x3d8   : > { %1767 = vst.msk [vmem:[#allocation4 + $0x1c] sm:$0xf] %vm1759_vm2, %v1750_v44  ;;  %v2586_v44 = vpop.permute.xlu0 %2585 }
 0x3d9   : > { %2240 = vmatmul.bf16.gmra.mxu0 %v6196_v51  ;;  %v2594_v51 = vpop.permute.xlu1 %2593 }
 0x3db   : > { %v1866_v32 = vpop.f32.mrf.mxu2 }
 0x3dc   : > { %v1896_v9 = vpack.c.bf16 %v1866_v32, %v1866_v32 }
 0x3dd   : > { %v1723_v14 = vpop.f32.mrf.mxu1 }
 0x3de   : > { %1912 = vst.msk [vmem:[#allocation5 + $0x1c] sm:$0xf] %vm1759_vm2, %v1896_v9  ;;  %v1751_v46 = vpack.c.bf16 %v1723_v14, %v1723_v14 }
 0x3e0   : > { %1768 = vst.msk [vmem:[#allocation4 + $0x20] sm:$0xf] %vm1759_vm2, %v1751_v46  ;;  %2450 = vmatmul.bf16.gmra.mxu1 %v6204_v22  ;;  %2748 = vmatmul.bf16.gmra.mxu2 %v6212_v50  ;;  %v2602_v50 = vpop.permute.xlu2 %2601 }
 0x3e3   : > { %v1869_v45 = vpop.f32.mrf.mxu2 }
 0x3e4   : > { %v1897_v25 = vpack.c.bf16 %v1869_v45, %v1869_v45 }
 0x3e5   : > { %v1725_v27 = vpop.f32.mrf.mxu1 }
 0x3e6   : > { %1913 = vst.msk [vmem:[#allocation5 + $0x20] sm:$0xf] %vm1759_vm2, %v1897_v25  ;;  %v1752_v55 = vpack.c.bf16 %v1725_v27, %v1725_v27  ;;  %v2590_v25 = vpop.permute.xlu1 %2589 }
 0x3e8   : > { %1769 = vst.msk [vmem:[#allocation4 + $0x24] sm:$0xf] %vm1759_vm2, %v1752_v55  ;;  %v6233_v55 = vld [vmem:[%s8166_s7 + $0xc8] sm:$0xff] }
 0x3e9   : > { %2245 = vmatmul.bf16.gmra.mxu0 %v6197_v52 }
 0x3eb   : > { %v1871_v61 = vpop.f32.mrf.mxu2 }
 0x3ec   : > { %v1898_v16 = vpack.c.bf16 %v1871_v61, %v1871_v61 }
 0x3ed   : > { %v1728_v28 = vpop.f32.mrf.mxu1 }
 0x3ee   : > { %1914 = vst.msk [vmem:[#allocation5 + $0x24] sm:$0xf] %vm1759_vm2, %v1898_v16  ;;  %v1753_v17 = vpack.c.bf16 %v1728_v28, %v1728_v28 }
 0x3f0   : > { %1770 = vst.msk [vmem:[#allocation4 + $0x28] sm:$0xf] %vm1759_vm2, %v1753_v17  ;;  %2455 = vmatmul.bf16.gmra.mxu1 %v6205_v29  ;;  %2753 = vmatmul.bf16.gmra.mxu2 %v6213_v59 }
 0x3f3   : > { %v1874_v8 = vpop.f32.mrf.mxu2 }
 0x3f4   : > { %v1899_v21 = vpack.c.bf16 %v1874_v8, %v1874_v8  ;;  %v2598_v8 = vpop.permute.xlu2 %2597 }
 0x3f5   : > { %v1730_v31 = vpop.f32.mrf.mxu1 }
 0x3f6   : > { %1915 = vst.msk [vmem:[#allocation5 + $0x28] sm:$0xf] %vm1759_vm2, %v1899_v21  ;;  %v1754_v12 = vpack.c.bf16 %v1730_v31, %v1730_v31 }
 0x3f8   : > { %1771 = vst.msk [vmem:[#allocation4 + $0x2c] sm:$0xf] %vm1759_vm2, %v1754_v12 }
 0x3f9   : > { %2250 = vmatmul.bf16.gmra.mxu0 %v6198_v4 }
 0x3fb   : > { %v1876_v7 = vpop.f32.mrf.mxu2 }
 0x3fc   : > { %v1900_v15 = vpack.c.bf16 %v1876_v7, %v1876_v7 }
 0x3fd   : > { %v1733_v3 = vpop.f32.mrf.mxu1 }
 0x3fe   : > { %1916 = vst.msk [vmem:[#allocation5 + $0x2c] sm:$0xf] %vm1759_vm2, %v1900_v15  ;;  %v1755_v20 = vpack.c.bf16 %v1733_v3, %v1733_v3 }
 0x400   : > { %1772 = vst.msk [vmem:[#allocation4 + $0x30] sm:$0xf] %vm1759_vm2, %v1755_v20  ;;  %2460 = vmatmul.bf16.gmra.mxu1 %v6206_v13  ;;  %2758 = vmatmul.bf16.gmra.mxu2 %v6214_v18  ;;  %v7398_v18 = vpop.permute.xlu2 %3291 }
 0x403   : > { %v1879_v1 = vpop.f32.mrf.mxu2 }
 0x404   : > { %v1901_v30 = vpack.c.bf16 %v1879_v1, %v1879_v1  ;;  %v6234_v1 = vld [vmem:[%s8166_s7 + $0xd0] sm:$0xff] }
 0x405   : > { %v1735_v0 = vpop.f32.mrf.mxu1 }
 0x406   : > { %1917 = vst.msk [vmem:[#allocation5 + $0x30] sm:$0xf] %vm1759_vm2, %v1901_v30  ;;  %v1756_v11 = vpack.c.bf16 %v1735_v0, %v1735_v0 }
 0x408   : > { %1773 = vst.msk [vmem:[#allocation4 + $0x34] sm:$0xf] %vm1759_vm2, %v1756_v11 }
 0x40b   : > { %v1881_v2 = vpop.f32.mrf.mxu2 }
 0x40c   : > { %v1902_v33 = vpack.c.bf16 %v1881_v2, %v1881_v2 }
 0x40d   : > { %v1738_v6 = vpop.f32.mrf.mxu1 }
 0x40e   : > { %1918 = vst.msk [vmem:[#allocation5 + $0x34] sm:$0xf] %vm1759_vm2, %v1902_v33  ;;  %v1757_v35 = vpack.c.bf16 %v1738_v6, %v1738_v6 }
 0x410   : > { %1774 = vst.msk [vmem:[#allocation4 + $0x38] sm:$0xf] %vm1759_vm2, %v1757_v35  ;;  %2465 = vmatmul.bf16.gmra.mxu1 %v6207_v62  ;;  %2763 = vmatmul.bf16.gmra.mxu2 %v6215_v60  ;;  %v7408_v60 = vpop.permute.xlu2 %3271 }
 0x413   : > { %v1884_v37 = vpop.f32.mrf.mxu2 }
 0x414   : > { %v1903_v10 = vpack.c.bf16 %v1884_v37, %v1884_v37 }
 0x415   : > { %v1740_v48 = vpop.f32.mrf.mxu1 }
 0x416   : > { %1919 = vst.msk [vmem:[#allocation5 + $0x38] sm:$0xf] %vm1759_vm2, %v1903_v10  ;;  %v1758_v5 = vpack.c.bf16 %v1740_v48, %v1740_v48  ;;  %v2221_v23 = vpop.f32.mrf.mxu0 }
 0x417   : > { %v2261_v54 = vpack.c.bf16 %v2221_v23, %v2221_v23 }
 0x418   : > { %1775 = vst.msk [vmem:[#allocation4 + $0x3c] sm:$0xf] %vm1759_vm2, %v1758_v5 }
 0x419   : > { %2293 = vrot.lane.b32.xlu2 %v2261_v54, %s6570_s12  ;;  %v7416_v54 = vpop.permute.xlu2 %3263 }
 0x41b   : > { %v1886_v40 = vpop.f32.mrf.mxu2 }
 0x41c   : > { %v1904_v41 = vpack.c.bf16 %v1886_v40, %v1886_v40  ;;  %v6235_v40 = vld [vmem:[%s8166_s7 + $0xd8] sm:$0xff] }
 0x41d   : > { %v2431_v42 = vpop.f32.mrf.mxu1 }
 0x41e   : > { %1920 = vst.msk [vmem:[#allocation5 + $0x3c] sm:$0xf] %vm1759_vm2, %v1904_v41  ;;  %v2471_v38 = vpack.c.bf16 %v2431_v42, %v2431_v42  ;;  %v2223_v58 = vpop.f32.mrf.mxu0 }
 0x41f   : > { %v2262_v43 = vpack.c.bf16 %v2223_v58, %v2223_v58 }
 0x420   : > { %3374 = vmatmul.bf16.vlgmr.msrb.gmra.mxu1 %v6232_v53 }
 0x421   : > { %2295 = vrot.lane.b32.xlu0 %v2262_v43, %s6570_s12  ;;  %2503 = vrot.lane.b32.xlu2 %v2471_v38, %s6570_s12 }
 0x423   : > { %v2729_v32 = vpop.f32.mrf.mxu2 }
 0x424   : > { %v2730_v9 = vadd.f32 %v2729_v32, %v2586_v44  ;;  %v7425_v44 = vpop.permute.xlu2 %3259 }
 0x425   : > { %v2433_v22 = vpop.f32.mrf.mxu1 }
 0x426   : > { %v2472_v14 = vpack.c.bf16 %v2433_v22, %v2433_v22  ;;  %v2226_v46 = vpop.f32.mrf.mxu0  ;;  %v2769_v16 = vmax.f32 %v2730_v9, 0.0 }
 0x427   : > { %v2263_v45 = vpack.c.bf16 %v2226_v46, %v2226_v46 }
 0x429   : > { %2505 = vrot.lane.b32.xlu0 %v2472_v14, %s6570_s12  ;;  %2297 = vrot.lane.b32.xlu1 %v2263_v45, %s6570_s12 }
 0x42b   : > { %v2731_v27 = vpop.f32.mrf.mxu2 }
 0x42c   : > { %v2732_v52 = vadd.f32 %v2731_v27, %v2590_v25  ;;  %v7434_v27 = vpop.permute.xlu2 %3239 }
 0x42d   : > { %v2436_v61 = vpop.f32.mrf.mxu1 }
 0x42e   : > { %v2770_v29 = vmax.f32 %v2732_v52, 0.0  ;;  %v2473_v59 = vpack.c.bf16 %v2436_v61, %v2436_v61  ;;  %v2228_v28 = vpop.f32.mrf.mxu0  ;;  %v7437_v52 = vpop.permute.xlu1 %3287 }
 0x42f   : > { %v2264_v17 = vpack.c.bf16 %v2228_v28, %v2228_v28 }
 0x430   : > { %3379 = vmatmul.bf16.gmra.mxu1 %v6233_v55  ;;  %v7394_v21 = vpack.c.bf16 %v2770_v29, %v2769_v16 }
 0x431   : > { %2299 = vrot.lane.b32.xlu2 %v2264_v17, %s6570_s12  ;;  %2507 = vrot.lane.b32.xlu1 %v2473_v59, %s6570_s12 }
 0x433   : > { %v2734_v31 = vpop.f32.mrf.mxu2 }
 0x434   : > { %v2735_v4 = vadd.f32 %v2734_v31, %v2594_v51  ;;  %v7444_v28 = vpop.permute.xlu2 %3235  ;;  %v7450_v31 = vpop.permute.xlu0 %3279 }
 0x435   : > { %v2438_v12 = vpop.f32.mrf.mxu1 }
 0x436   : > { %v2474_v7 = vpack.c.bf16 %v2438_v12, %v2438_v12  ;;  %v2231_v15 = vpop.f32.mrf.mxu0  ;;  %v2771_v0 = vmax.f32 %v2735_v4, 0.0  ;;  %v7446_v17 = vpop.permute.xlu1 %3283  ;;  %v6237_v4 = vld [vmem:[%s8166_s7 + $0xe8] sm:$0xff] }
 0x437   : > { %v2265_v13 = vpack.c.bf16 %v2231_v15, %v2231_v15 }
 0x439   : > { %2509 = vrot.lane.b32.xlu2 %v2474_v7, %s6570_s12  ;;  %2301 = vrot.lane.b32.xlu0 %v2265_v13, %s6570_s12 }
 0x43b   : > { %v2736_v3 = vpop.f32.mrf.mxu2 }
 0x43c   : > { %v2737_v20 = vadd.f32 %v2736_v3, %v2598_v8 }
 0x43d   : > { %v2441_v30 = vpop.f32.mrf.mxu1 }
 0x43e   : > { %v2772_v11 = vmax.f32 %v2737_v20, 0.0  ;;  %v2475_v2 = vpack.c.bf16 %v2441_v30, %v2441_v30  ;;  %v2233_v33 = vpop.f32.mrf.mxu0  ;;  %v7460_v30 = vpop.permute.xlu1 %3275 }
 0x43f   : > { %v2266_v10 = vpack.c.bf16 %v2233_v33, %v2233_v33 }
 0x440   : > { %3384 = vmatmul.bf16.gmra.mxu1 %v6234_v1  ;;  %v7405_v62 = vpack.c.bf16 %v2772_v11, %v2771_v0  ;;  %v7462_v11 = vpop.permute.xlu0 %3267 }
 0x441   : > { %2511 = vrot.lane.b32.xlu0 %v2475_v2, %s6570_s12 }
 0x443   : > { %v2739_v6 = vpop.f32.mrf.mxu2 }
 0x444   : > { %v7410_v35 = vadd.f32 %v2739_v6, %v2602_v50  ;;  %v6236_v50 = vld [vmem:[%s8166_s7 + $0xe0] sm:$0xff] }
 0x445   : > { %v2443_v37 = vpop.f32.mrf.mxu1 }
 0x446   : > { %v2476_v48 = vpack.c.bf16 %v2443_v37, %v2443_v37  ;;  %v2236_v5 = vpop.f32.mrf.mxu0 }
 0x447   : > { %v2267_v53 = vpack.c.bf16 %v2236_v5, %v2236_v5 }
 0x448   : > { %2513 = vrot.lane.b32.xlu1 %v2476_v48, %s6570_s12 }
 0x449   : > { %2303 = vrot.lane.b32.xlu0 %v2266_v10, %s6570_s12  ;;  %v6238_v10 = vld [vmem:[%s8166_s7 + $0xf0] sm:$0xff] }
 0x44b   : > { %v7414_v23 = vpop.f32.mrf.mxu2 }
 0x44d   : > { %v2446_v41 = vpop.f32.mrf.mxu1 }
 0x44e   : > { %v2477_v42 = vpack.c.bf16 %v2446_v41, %v2446_v41  ;;  %v2238_v38 = vpop.f32.mrf.mxu0  ;;  %v7470_v41 = vpop.permute.xlu1 %3255 }
 0x44f   : > { %v2268_v43 = vpack.c.bf16 %v2238_v38, %v2238_v38 }
 0x450   : > { %3389 = vmatmul.bf16.gmra.mxu1 %v6235_v40  ;;  %2515 = vrot.lane.b32.xlu2 %v2477_v42, %s6570_s12 }
 0x451   : > { %2305 = vrot.lane.b32.xlu1 %v2267_v53, %s6570_s12  ;;  %v7472_v53 = vpop.permute.xlu0 %3247 }
 0x453   : > { %v7423_v58 = vpop.f32.mrf.mxu2 }
 0x455   : > { %v2448_v51 = vpop.f32.mrf.mxu1 }
 0x456   : > { %v2478_v32 = vpack.c.bf16 %v2448_v51, %v2448_v51  ;;  %v2241_v9 = vpop.f32.mrf.mxu0 }
 0x457   : > { %v2269_v46 = vpack.c.bf16 %v2241_v9, %v2241_v9  ;;  %v7477_v9 = vpop.permute.xlu1 %3251 }
 0x458   : > { %2517 = vrot.lane.b32.xlu0 %v2478_v32, %s6570_s12  ;;  %2307 = vrot.lane.b32.xlu2 %v2268_v43, %s6570_s12 }
 0x45b   : > { %v7429_v22 = vpop.f32.mrf.mxu2 }
 0x45d   : > { %v2451_v14 = vpop.f32.mrf.mxu1 }
 0x45e   : > { %v2479_v45 = vpack.c.bf16 %v2451_v14, %v2451_v14  ;;  %v2243_v25 = vpop.f32.mrf.mxu0 }
 0x45f   : > { %v2270_v61 = vpack.c.bf16 %v2243_v25, %v2243_v25 }
 0x460   : > { %3394 = vmatmul.bf16.gmra.mxu1 %v6236_v50  ;;  %2519 = vrot.lane.b32.xlu1 %v2479_v45, %s6570_s12  ;;  %v7480_v50 = vpop.permute.xlu0 %3243  ;;  %v6239_v45 = vld [vmem:[%s8166_s7 + $0xf8] sm:$0xff] }
 0x461   : > { %2309 = vrot.lane.b32.xlu0 %v2269_v46, %s6570_s12 }
 0x463   : > { %v7440_v55 = vpop.f32.mrf.mxu2 }
 0x465   : > { %v2453_v16 = vpop.f32.mrf.mxu1 }
 0x466   : > { %v2480_v29 = vpack.c.bf16 %v2453_v16, %v2453_v16  ;;  %v2246_v59 = vpop.f32.mrf.mxu0  ;;  %v3232_v16 = vpop.permute.xlu1 %3231 }
 0x467   : > { %v2271_v7 = vpack.c.bf16 %v2246_v59, %v2246_v59 }
 0x468   : > { %2521 = vrot.lane.b32.xlu2 %v2480_v29, %s6570_s12  ;;  %2311 = vrot.lane.b32.xlu1 %v2270_v61, %s6570_s12 }
 0x46b   : > { %v7448_v8 = vpop.f32.mrf.mxu2 }
 0x46d   : > { %v2456_v12 = vpop.f32.mrf.mxu1 }
 0x46e   : > { %v2481_v15 = vpack.c.bf16 %v2456_v12, %v2456_v12  ;;  %v2248_v13 = vpop.f32.mrf.mxu0 }
 0x46f   : > { %v2272_v1 = vpack.c.bf16 %v2248_v13, %v2248_v13 }
 0x470   : > { %3399 = vmatmul.bf16.gmra.mxu1 %v6237_v4  ;;  %2523 = vrot.lane.b32.xlu0 %v2481_v15, %s6570_s12  ;;  %v6199_v15 = vld [vmem:[%s8168_s9 + $0x78] sm:$0xff] }
 0x471   : > { %2313 = vrot.lane.b32.xlu2 %v2271_v7, %s6570_s12  ;;  %2255 = vmatmul.bf16.gmra.mxu0 %v6199_v15 }
 0x473   : > { %v7457_v3 = vpop.f32.mrf.mxu2  ;;  %v2294_v20 = vpop.permute.xlu2 %2293 }
 0x474   : > { %2342 = vst.msk [vmem:[#allocation4] sm:$0xf] %vm2341_vm3, %v2294_v20 }
 0x475   : > { %v2458_v0 = vpop.f32.mrf.mxu1 }
 0x476   : > { %v2482_v2 = vpack.c.bf16 %v2458_v0, %v2458_v0  ;;  %v2251_v33 = vpop.f32.mrf.mxu0 }
 0x477   : > { %v2273_v5 = vpack.c.bf16 %v2251_v33, %v2251_v33 }
 0x478   : > { %2525 = vrot.lane.b32.xlu1 %v2482_v2, %s6570_s12  ;;  %2315 = vrot.lane.b32.xlu0 %v2272_v1, %s6570_s12 }
 0x47b   : > { %v2756_v6 = vpop.f32.mrf.mxu2  ;;  %v2504_v37 = vpop.permute.xlu2 %2503 }
 0x47c   : > { %2551 = vst.msk [vmem:[#allocation5] sm:$0xf] %vm2341_vm3, %v2504_v37 }
 0x47d   : > { %v2461_v48 = vpop.f32.mrf.mxu1 }
 0x47e   : > { %v2483_v40 = vpack.c.bf16 %v2461_v48, %v2461_v48  ;;  %v2253_v42 = vpop.f32.mrf.mxu0 }
 0x47f   : > { %v2274_v43 = vpack.c.bf16 %v2253_v42, %v2253_v42  ;;  %v2757_v42 = vadd.f32 %v2756_v6, %v7357_v19  ;;  %v2750_v19 = vadd.f32 %v7440_v55, %v7363_v49 }
 0x480   : > { %3404 = vmatmul.bf16.gmra.mxu1 %v6238_v10  ;;  %2527 = vrot.lane.b32.xlu2 %v2483_v40, %s6570_s12 }
 0x481   : > { %2317 = vrot.lane.b32.xlu1 %v2273_v5, %s6570_s12 }
 0x483   : > { %v2759_v38 = vpop.f32.mrf.mxu2 }
 0x484   : > { %v2760_v10 = vadd.f32 %v2759_v38, %v7360_v63 }
 0x485   : > { %v2463_v51 = vpop.f32.mrf.mxu1 }
 0x486   : > { %v2484_v32 = vpack.c.bf16 %v2463_v51, %v2463_v51  ;;  %v2781_v51 = vmax.f32 %v2760_v10, 0.0 }
 0x488   : > { %2529 = vrot.lane.b32.xlu0 %v2484_v32, %s6570_s12  ;;  %2319 = vrot.lane.b32.xlu2 %v2274_v43, %s6570_s12  ;;  %v2780_v32 = vmax.f32 %v2757_v42, 0.0 }
 0x48b   : > { %v2761_v14 = vpop.f32.mrf.mxu2  ;;  %v2300_v46 = vpop.permute.xlu2 %2299 }
 0x48c   : > { %2345 = vst.msk [vmem:[#allocation4 + $0xc] sm:$0xf] %vm2341_vm3, %v2300_v46  ;;  %v2762_v0 = vadd.f32 %v2761_v14, %v7355_v26  ;;  %v2755_v26 = vadd.f32 %v7457_v3, %v7372_v36  ;;  %v2747_v36 = vadd.f32 %v7429_v22, %v7374_v56 }
 0x48d   : > { %v2466_v25 = vpop.f32.mrf.mxu1 }
 0x48e   : > { %v2485_v61 = vpack.c.bf16 %v2466_v25, %v2466_v25  ;;  %v2779_v6 = vmax.f32 %v2755_v26, 0.0  ;;  %v2745_v25 = vadd.f32 %v7423_v58, %v7368_v57  ;;  %v2776_v56 = vmax.f32 %v2747_v36, 0.0 }
 0x490   : > { %3409 = vmatmul.bf16.gmra.mxu1 %v6239_v45  ;;  %2531 = vrot.lane.b32.xlu1 %v2485_v61, %s6570_s12  ;;  %v2790_v45 = vpack.c.bf16 %v2780_v32, %v2779_v6  ;;  %v2777_v61 = vmax.f32 %v2750_v19, 0.0 }
 0x493   : > { %v2296_v29 = vpop.permute.xlu0 %2295  ;;  %v2764_v59 = vpop.f32.mrf.mxu2 }
 0x494   : > { %2343 = vst.msk [vmem:[#allocation4 + $0x4] sm:$0xf] %vm2341_vm3, %v2296_v29  ;;  %v2510_v4 = vpop.permute.xlu2 %2509  ;;  %v2765_v13 = vadd.f32 %v2764_v59, %v7348_v24  ;;  %v2782_v24 = vmax.f32 %v2762_v0, 0.0  ;;  %v2775_v59 = vmax.f32 %v2745_v25, 0.0 }
 0x495   : > { %2554 = vst.msk [vmem:[#allocation5 + $0xc] sm:$0xf] %vm2341_vm3, %v2510_v4  ;;  %v2468_v12 = vpop.f32.mrf.mxu1  ;;  %v2773_v4 = vmax.f32 %v7410_v35, 0.0 }
 0x496   : > { %v2486_v7 = vpack.c.bf16 %v2468_v12, %v2468_v12  ;;  %v2783_v48 = vmax.f32 %v2765_v13, 0.0  ;;  %v2791_v14 = vpack.c.bf16 %v2782_v24, %v2781_v51  ;;  %v2788_v58 = vpack.c.bf16 %v2776_v56, %v2775_v59  ;;  %v6225_v51 = vld [vmem:[#allocation6 + $0x8] sm:$0xff] }
 0x498   : > { %2533 = vrot.lane.b32.xlu2 %v2486_v7, %s6570_s12 }
 0x49b   : > { %v2766_v20 = vpop.f32.mrf.mxu2  ;;  %v2506_v1 = vpop.permute.xlu0 %2505 }
 0x49c   : > { %v2767_v2 = vadd.f32 %v2766_v20, %v7345_v47  ;;  %2552 = vst.msk [vmem:[#allocation5 + $0x4] sm:$0xf] %vm2341_vm3, %v2506_v1  ;;  %v2298_v33 = vpop.permute.xlu1 %2297  ;;  %v2752_v47 = vadd.f32 %v7448_v8, %v7381_v34 }
 0x49d   : > { %v3375_v37 = vpop.f32.mrf.mxu1  ;;  %2344 = vst.msk [vmem:[#allocation4 + $0x8] sm:$0xf] %vm2341_vm3, %v2298_v33  ;;  %v6224_v33 = vld [vmem:[#allocation6] sm:$0xff] }
 0x49e   : > { %v2784_v5 = vmax.f32 %v2767_v2, 0.0  ;;  %v3376_v40 = vadd.f32 %v3375_v37, %v3232_v16  ;;  %v2778_v3 = vmax.f32 %v2752_v47, 0.0 }
 0x4a0   : > { %v2792_v43 = vpack.c.bf16 %v2784_v5, %v2783_v48  ;;  %v3415_v34 = vmax.f32 %v3376_v40, 0.0  ;;  %v2789_v22 = vpack.c.bf16 %v2778_v3, %v2777_v61 }
 0x4a2   : > { %2858 = vmatpush.bf16.msra.mxu3 %v2792_v43  ;;  %3068 = vmatpush.bf16.msrb.mxu0 %v2792_v43 }
 0x4a4   : > { %v2508_v46 = vpop.permute.xlu1 %2507 }
 0x4a5   : > { %v3377_v63 = vpop.f32.mrf.mxu1  ;;  %2553 = vst.msk [vmem:[#allocation5 + $0x8] sm:$0xf] %vm2341_vm3, %v2508_v46 }
 0x4a6   : > { %v3378_v38 = vadd.f32 %v3377_v63, %v7444_v28  ;;  %2859 = vmatpush.bf16.msra.mxu3 %v2791_v14  ;;  %3069 = vmatpush.bf16.msrb.mxu0 %v2791_v14  ;;  %v2742_v28 = vadd.f32 %v7414_v23, %v7377_v39 }
 0x4a8   : > { %v3416_v8 = vmax.f32 %v3378_v38, 0.0  ;;  %v2774_v57 = vmax.f32 %v2742_v28, 0.0  ;;  %v6227_v28 = vld [vmem:[#allocation6 + $0x18] sm:$0xff] }
 0x4aa   : > { %v7512_v16 = vpack.c.bf16 %v3416_v8, %v3415_v34  ;;  %2860 = vmatpush.bf16.msra.mxu3 %v2790_v45  ;;  %3070 = vmatpush.bf16.msrb.mxu0 %v2790_v45  ;;  %v2516_v49 = vpop.permute.xlu2 %2515  ;;  %v2787_v23 = vpack.c.bf16 %v2774_v57, %v2773_v4  ;;  %v6226_v45 = vld [vmem:[#allocation6 + $0x10] sm:$0xff]  ;;  %v6228_v4 = vld [vmem:[#allocation6 + $0x20] sm:$0xff] }
 0x4ab   : > { %v2302_v55 = vpop.permute.xlu0 %2301  ;;  %2557 = vst.msk [vmem:[#allocation5 + $0x18] sm:$0xf] %vm2341_vm3, %v2516_v49 }
 0x4ac   : > { %2346 = vst.msk [vmem:[#allocation4 + $0x10] sm:$0xf] %vm2341_vm3, %v2302_v55  ;;  %v6219_v55 = vld [vmem:[%s8168_s9 + $0x98] sm:$0xff] }
 0x4ad   : > { %v3380_v29 = vpop.f32.mrf.mxu1 }
 0x4ae   : > { %2861 = vmatpush.bf16.msra.mxu3 %v2789_v22  ;;  %3071 = vmatpush.bf16.msrb.mxu0 %v2789_v22  ;;  %v3381_v39 = vadd.f32 %v3380_v29, %v7434_v27 }
 0x4b0   : > { %v3417_v20 = vmax.f32 %v3381_v39, 0.0 }
 0x4b2   : > { %2862 = vmatpush.bf16.msra.mxu3 %v2788_v58  ;;  %3072 = vmatpush.bf16.msrb.mxu0 %v2788_v58  ;;  %v2308_v12 = vpop.permute.xlu2 %2307  ;;  %v6220_v58 = vld [vmem:[%s8168_s9 + $0xa0] sm:$0xff] }
 0x4b3   : > { %v2512_v7 = vpop.permute.xlu0 %2511  ;;  %2349 = vst.msk [vmem:[#allocation4 + $0x1c] sm:$0xf] %vm2341_vm3, %v2308_v12 }
 0x4b4   : > { %2555 = vst.msk [vmem:[#allocation5 + $0x10] sm:$0xf] %vm2341_vm3, %v2512_v7 }
 0x4b5   : > { %v3382_v15 = vpop.f32.mrf.mxu1 }
 0x4b6   : > { %v3383_v13 = vadd.f32 %v3382_v15, %v7480_v50  ;;  %2863 = vmatpush.bf16.msra.mxu3 %v2787_v23  ;;  %3073 = vmatpush.bf16.msrb.mxu0 %v2787_v23  ;;  %v6216_v50 = vld [vmem:[%s8168_s9 + $0x80] sm:$0xff]  ;;  %v6221_v23 = vld [vmem:[%s8168_s9 + $0xa8] sm:$0xff] }
 0x4b7   : > { %v6229_v15 = vld [vmem:[#allocation6 + $0x28] sm:$0xff] }
 0x4b8   : > { %v3418_v1 = vmax.f32 %v3383_v13, 0.0 }
 0x4ba   : > { %v7523_v0 = vpack.c.bf16 %v3418_v1, %v3417_v20  ;;  %2864 = vmatpush.bf16.msra.mxu3 %v7405_v62  ;;  %3074 = vmatpush.bf16.msrb.mxu0 %v7405_v62  ;;  %v2514_v35 = vpop.permute.xlu1 %2513 }
 0x4bb   : > { %2556 = vst.msk [vmem:[#allocation5 + $0x14] sm:$0xf] %vm2341_vm3, %v2514_v35  ;;  %v2304_v27 = vpop.permute.xlu0 %2303 }
 0x4bc   : > { %2347 = vst.msk [vmem:[#allocation4 + $0x14] sm:$0xf] %vm2341_vm3, %v2304_v27 }
 0x4bd   : > { %v3385_v2 = vpop.f32.mrf.mxu1 }
 0x4be   : > { %2865 = vmatpush.bf16.msra.mxu3 %v7394_v21  ;;  %3075 = vmatpush.bf16.msrb.mxu0 %v7394_v21  ;;  %v3386_v10 = vadd.f32 %v3385_v2, %v7472_v53  ;;  %v6217_v53 = vld [vmem:[%s8168_s9 + $0x88] sm:$0xff] }
 0x4c0   : > { %v3419_v40 = vmax.f32 %v3386_v10, 0.0 }
 0x4c1   : > { %2866 = vmatmul.bf16.vlgmr.msra.gmra.mxu3 %v6216_v50  ;;  %3076 = vmatmul.bf16.vlgmr.msrb.gmra.mxu0 %v6224_v33 }
 0x4c2   : > { %v2522_v37 = vpop.permute.xlu2 %2521 }
 0x4c3   : > { %2560 = vst.msk [vmem:[#allocation5 + $0x24] sm:$0xf] %vm2341_vm3, %v2522_v37  ;;  %v2306_v62 = vpop.permute.xlu1 %2305 }
 0x4c4   : > { %2348 = vst.msk [vmem:[#allocation4 + $0x18] sm:$0xf] %vm2341_vm3, %v2306_v62 }
 0x4c5   : > { %v3387_v48 = vpop.f32.mrf.mxu1 }
 0x4c6   : > { %v3388_v5 = vadd.f32 %v3387_v48, %v7477_v9 }
 0x4c8   : > { %v3420_v42 = vmax.f32 %v3388_v5, 0.0 }
 0x4ca   : > { %v7538_v24 = vpack.c.bf16 %v3420_v42, %v3419_v40  ;;  %v2518_v43 = vpop.permute.xlu0 %2517 }
 0x4cb   : > { %2558 = vst.msk [vmem:[#allocation5 + $0x1c] sm:$0xf] %vm2341_vm3, %v2518_v43  ;;  %v2314_v21 = vpop.permute.xlu2 %2313 }
 0x4cc   : > { %2352 = vst.msk [vmem:[#allocation4 + $0x28] sm:$0xf] %vm2341_vm3, %v2314_v21 }
 0x4cd   : > { %v3390_v26 = vpop.f32.mrf.mxu1 }
 0x4ce   : > { %v3391_v32 = vadd.f32 %v3390_v26, %v7470_v41  ;;  %v6218_v41 = vld [vmem:[%s8168_s9 + $0x90] sm:$0xff] }
 0x4d0   : > { %v3421_v63 = vmax.f32 %v3391_v32, 0.0  ;;  %v6248_v32 = vld [vmem:[#allocation6] sm:$0xff] }
 0x4d1   : > { %2871 = vmatmul.bf16.gmra.mxu3 %v6217_v53  ;;  %3081 = vmatmul.bf16.gmra.mxu0 %v6225_v51 }
 0x4d2   : > { %v2520_v47 = vpop.permute.xlu1 %2519 }
 0x4d3   : > { %2559 = vst.msk [vmem:[#allocation5 + $0x20] sm:$0xf] %vm2341_vm3, %v2520_v47  ;;  %v2310_v9 = vpop.permute.xlu0 %2309 }
 0x4d4   : > { %2350 = vst.msk [vmem:[#allocation4 + $0x20] sm:$0xf] %vm2341_vm3, %v2310_v9  ;;  %v6240_v9 = vld [vmem:[%s8168_s9 + $0xc0] sm:$0xff] }
 0x4d5   : > { %v3392_v14 = vpop.f32.mrf.mxu1 }
 0x4d6   : > { %v3393_v46 = vadd.f32 %v3392_v14, %v7425_v44 }
 0x4d8   : > { %v3422_v19 = vmax.f32 %v3393_v46, 0.0 }
 0x4da   : > { %v7549_v6 = vpack.c.bf16 %v3422_v19, %v3421_v63  ;;  %v2528_v38 = vpop.permute.xlu2 %2527  ;;  %v2312_v36 = vpop.permute.xlu1 %2311 }
 0x4db   : > { %2563 = vst.msk [vmem:[#allocation5 + $0x30] sm:$0xf] %vm2341_vm3, %v2528_v38 }
 0x4dc   : > { %2351 = vst.msk [vmem:[#allocation4 + $0x24] sm:$0xf] %vm2341_vm3, %v2312_v36  ;;  %v6249_v36 = vld [vmem:[#allocation6 + $0x8] sm:$0xff] }
 0x4dd   : > { %v7553_v3 = vpop.f32.mrf.mxu1 }
 0x4de   : > { %v3396_v21 = vadd.f32 %v7553_v3, %v7416_v54  ;;  %v6223_v54 = vld [vmem:[%s8168_s9 + $0xb8] sm:$0xff] }
 0x4e0   : > { %v3423_v51 = vmax.f32 %v3396_v21, 0.0 }
 0x4e1   : > { %2876 = vmatmul.bf16.gmra.mxu3 %v6218_v41  ;;  %3086 = vmatmul.bf16.gmra.mxu0 %v6226_v45 }
 0x4e2   : > { %v2524_v44 = vpop.permute.xlu0 %2523  ;;  %v2320_v34 = vpop.permute.xlu2 %2319 }
 0x4e3   : > { %2561 = vst.msk [vmem:[#allocation5 + $0x28] sm:$0xf] %vm2341_vm3, %v2524_v44 }
 0x4e4   : > { %2355 = vst.msk [vmem:[#allocation4 + $0x34] sm:$0xf] %vm2341_vm3, %v2320_v34 }
 0x4e5   : > { %v3397_v8 = vpop.f32.mrf.mxu1 }
 0x4ea   : > { %v2526_v25 = vpop.permute.xlu1 %2525  ;;  %v2316_v61 = vpop.permute.xlu0 %2315 }
 0x4eb   : > { %2562 = vst.msk [vmem:[#allocation5 + $0x2c] sm:$0xf] %vm2341_vm3, %v2526_v25 }
 0x4ec   : > { %2353 = vst.msk [vmem:[#allocation4 + $0x2c] sm:$0xf] %vm2341_vm3, %v2316_v61 }
 0x4ed   : > { %v3400_v49 = vpop.f32.mrf.mxu1 }
 0x4ee   : > { %v2256_v1 = vpop.f32.mrf.mxu0  ;;  %v3401_v5 = vadd.f32 %v3400_v49, %v7408_v60 }
 0x4ef   : > { %v2275_v48 = vpack.c.bf16 %v2256_v1, %v2256_v1  ;;  %v6244_v1 = vld [vmem:[%s8168_s9 + $0xe0] sm:$0xff] }
 0x4f0   : > { %v3425_v60 = vmax.f32 %v3401_v5, 0.0  ;;  %v6245_v5 = vld [vmem:[%s8168_s9 + $0xe8] sm:$0xff] }
 0x4f1   : > { %2881 = vmatmul.bf16.gmra.mxu3 %v6219_v55  ;;  %3091 = vmatmul.bf16.gmra.mxu0 %v6227_v28  ;;  %v6250_v55 = vld [vmem:[#allocation6 + $0x10] sm:$0xff] }
 0x4f2   : > { %v2534_v56 = vpop.permute.xlu2 %2533  ;;  %2321 = vrot.lane.b32.xlu0 %v2275_v48, %s6570_s12 }
 0x4f3   : > { %2566 = vst.msk [vmem:[#allocation5 + $0x3c] sm:$0xf] %vm2341_vm3, %v2534_v56  ;;  %v2318_v22 = vpop.permute.xlu1 %2317 }
 0x4f4   : > { %2354 = vst.msk [vmem:[#allocation4 + $0x30] sm:$0xf] %vm2341_vm3, %v2318_v22 }
 0x4f5   : > { %v3402_v29 = vpop.f32.mrf.mxu1 }
 0x4f6   : > { %v3403_v37 = vadd.f32 %v3402_v29, %v7460_v30 }
 0x4f8   : > { %v3426_v42 = vmax.f32 %v3403_v37, 0.0 }
 0x4fa   : > { %v2530_v59 = vpop.permute.xlu0 %2529  ;;  %v3436_v53 = vpack.c.bf16 %v3426_v42, %v3425_v60 }
 0x4fb   : > { %2564 = vst.msk [vmem:[#allocation5 + $0x34] sm:$0xf] %vm2341_vm3, %v2530_v59 }
 0x4fd   : > { %v3405_v57 = vpop.f32.mrf.mxu1 }
 0x4fe   : > { %v3406_v2 = vadd.f32 %v3405_v57, %v7450_v31  ;;  %v3398_v31 = vadd.f32 %v3397_v8, %v7462_v11  ;;  %v6231_v11 = vld [vmem:[#allocation6 + $0x38] sm:$0xff]  ;;  %v6242_v8 = vld [vmem:[%s8168_s9 + $0xd0] sm:$0xff] }
 0x4ff   : > { %v6243_v57 = vld [vmem:[%s8168_s9 + $0xd8] sm:$0xff] }
 0x500   : > { %v3427_v40 = vmax.f32 %v3406_v2, 0.0  ;;  %v3424_v26 = vmax.f32 %v3398_v31, 0.0 }
 0x501   : > { %2886 = vmatmul.bf16.gmra.mxu3 %v6220_v58  ;;  %3096 = vmatmul.bf16.gmra.mxu0 %v6228_v4 }
 0x502   : > { %v2532_v12 = vpop.permute.xlu1 %2531  ;;  %v3435_v47 = vpack.c.bf16 %v3424_v26, %v3423_v51 }
 0x503   : > { %2565 = vst.msk [vmem:[#allocation5 + $0x38] sm:$0xf] %vm2341_vm3, %v2532_v12 }
 0x505   : > { %v3407_v7 = vpop.f32.mrf.mxu1 }
 0x506   : > { %v3408_v35 = vadd.f32 %v3407_v7, %v7446_v17  ;;  %v6230_v17 = vld [vmem:[#allocation6 + $0x30] sm:$0xff]  ;;  %v6251_v7 = vld [vmem:[#allocation6 + $0x18] sm:$0xff] }
 0x508   : > { %v3428_v62 = vmax.f32 %v3408_v35, 0.0 }
 0x50a   : > { %v3437_v30 = vpack.c.bf16 %v3428_v62, %v3427_v40 }
 0x50d   : > { %v3410_v39 = vpop.f32.mrf.mxu1 }
 0x50e   : > { %v3411_v13 = vadd.f32 %v3410_v39, %v7437_v52  ;;  %v6222_v52 = vld [vmem:[%s8168_s9 + $0xb0] sm:$0xff] }
 0x510   : > { %v3429_v50 = vmax.f32 %v3411_v13, 0.0 }
 0x511   : > { %2891 = vmatmul.bf16.gmra.mxu3 %v6221_v23  ;;  %3101 = vmatmul.bf16.gmra.mxu0 %v6229_v15 }
 0x515   : > { %v3412_v20 = vpop.f32.mrf.mxu1 }
 0x516   : > { %v3413_v27 = vadd.f32 %v3412_v20, %v7398_v18  ;;  %v2258_v18 = vpop.f32.mrf.mxu0 }
 0x517   : > { %v2276_v43 = vpack.c.bf16 %v2258_v18, %v2258_v18  ;;  %v6253_v18 = vld [vmem:[#allocation6 + $0x28] sm:$0xff] }
 0x518   : > { %v3430_v33 = vmax.f32 %v3413_v27, 0.0 }
 0x519   : > { %2323 = vrot.lane.b32.xlu1 %v2276_v43, %s6570_s12 }
 0x51a   : > { %v3438_v10 = vpack.c.bf16 %v3430_v33, %v3429_v50  ;;  %v6252_v50 = vld [vmem:[#allocation6 + $0x20] sm:$0xff] }
 0x51c   : > { %3504 = vmatpush.bf16.msrb.mxu2 %v3438_v10  ;;  %3714 = vmatpush.bf16.msrb.mxu3 %v3438_v10 }
 0x520   : > { %3505 = vmatpush.bf16.msrb.mxu2 %v3437_v30  ;;  %3715 = vmatpush.bf16.msrb.mxu3 %v3437_v30 }
 0x521   : > { %2896 = vmatmul.bf16.gmra.mxu3 %v6222_v52  ;;  %3106 = vmatmul.bf16.gmra.mxu0 %v6230_v17 }
 0x524   : > { %3506 = vmatpush.bf16.msrb.mxu2 %v3436_v53  ;;  %3716 = vmatpush.bf16.msrb.mxu3 %v3436_v53  ;;  %v6246_v53 = vld [vmem:[%s8168_s9 + $0xf0] sm:$0xff] }
 0x528   : > { %3507 = vmatpush.bf16.msrb.mxu2 %v3435_v47  ;;  %3717 = vmatpush.bf16.msrb.mxu3 %v3435_v47 }
 0x52c   : > { %3508 = vmatpush.bf16.msrb.mxu2 %v7549_v6  ;;  %3718 = vmatpush.bf16.msrb.mxu3 %v7549_v6 }
 0x530   : > { %3509 = vmatpush.bf16.msrb.mxu2 %v7538_v24  ;;  %3719 = vmatpush.bf16.msrb.mxu3 %v7538_v24 }
 0x531   : > { %2901 = vmatmul.bf16.gmra.mxu3 %v6223_v54  ;;  %3111 = vmatmul.bf16.gmra.mxu0 %v6231_v11  ;;  %v6254_v11 = vld [vmem:[#allocation6 + $0x30] sm:$0xff] }
 0x534   : > { %3510 = vmatpush.bf16.msrb.mxu2 %v7523_v0  ;;  %3720 = vmatpush.bf16.msrb.mxu3 %v7523_v0  ;;  %v6241_v0 = vld [vmem:[%s8168_s9 + $0xc8] sm:$0xff] }
 0x538   : > { %3511 = vmatpush.bf16.msrb.mxu2 %v7512_v16  ;;  %3721 = vmatpush.bf16.msrb.mxu3 %v7512_v16 }
 0x53b   : > { %3512 = vmatmul.bf16.vlgmr.msrb.gmra.mxu2 %v6240_v9 }
 0x53e   : > { %v3077_v14 = vpop.f32.mrf.mxu0 }
 0x53f   : > { %v3117_v46 = vpack.c.bf16 %v3077_v14, %v3077_v14 }
 0x541   : > { %3722 = vmatmul.bf16.vlgmr.msrb.gmra.mxu3 %v6248_v32  ;;  %3149 = vrot.lane.b32.xlu1 %v3117_v46, %s6571_s26 }
 0x544   : > { %v2867_v24 = vpop.f32.mrf.mxu3 }
 0x545   : > { %v2907_v63 = vpack.c.bf16 %v2867_v24, %v2867_v24 }
 0x546   : > { %v3079_v19 = vpop.f32.mrf.mxu0 }
 0x547   : > { %v3118_v6 = vpack.c.bf16 %v3079_v19, %v3079_v19  ;;  %2939 = vrot.lane.b32.xlu0 %v2907_v63, %s6571_s26  ;;  %v6247_v19 = vld [vmem:[%s8168_s9 + $0xf8] sm:$0xff] }
 0x549   : > { %3151 = vrot.lane.b32.xlu2 %v3118_v6, %s6571_s26 }
 0x54b   : > { %3517 = vmatmul.bf16.gmra.mxu2 %v6241_v0 }
 0x54c   : > { %v2869_v16 = vpop.f32.mrf.mxu3 }
 0x54d   : > { %v2908_v38 = vpack.c.bf16 %v2869_v16, %v2869_v16 }
 0x54e   : > { %v3082_v3 = vpop.f32.mrf.mxu0 }
 0x54f   : > { %2941 = vrot.lane.b32.xlu1 %v2908_v38, %s6571_s26  ;;  %v3119_v41 = vpack.c.bf16 %v3082_v3, %v3082_v3  ;;  %v6255_v38 = vld [vmem:[#allocation6 + $0x38] sm:$0xff] }
 0x551   : > { %3727 = vmatmul.bf16.gmra.mxu3 %v6249_v36  ;;  %3153 = vrot.lane.b32.xlu0 %v3119_v41, %s6571_s26 }
 0x554   : > { %v2872_v45 = vpop.f32.mrf.mxu3 }
 0x555   : > { %v2909_v44 = vpack.c.bf16 %v2872_v45, %v2872_v45 }
 0x556   : > { %v3084_v34 = vpop.f32.mrf.mxu0 }
 0x557   : > { %v3120_v25 = vpack.c.bf16 %v3084_v34, %v3084_v34  ;;  %2943 = vrot.lane.b32.xlu2 %v2909_v44, %s6571_s26 }
 0x559   : > { %3155 = vrot.lane.b32.xlu1 %v3120_v25, %s6571_s26 }
 0x55b   : > { %3522 = vmatmul.bf16.gmra.mxu2 %v6242_v8 }
 0x55c   : > { %v2874_v61 = vpop.f32.mrf.mxu3 }
 0x55d   : > { %v2910_v49 = vpack.c.bf16 %v2874_v61, %v2874_v61 }
 0x55e   : > { %v3087_v28 = vpop.f32.mrf.mxu0 }
 0x55f   : > { %2945 = vrot.lane.b32.xlu0 %v2910_v49, %s6571_s26  ;;  %v3121_v56 = vpack.c.bf16 %v3087_v28, %v3087_v28 }
 0x561   : > { %3732 = vmatmul.bf16.gmra.mxu3 %v6250_v55  ;;  %3157 = vrot.lane.b32.xlu2 %v3121_v56, %s6571_s26 }
 0x564   : > { %v2877_v22 = vpop.f32.mrf.mxu3  ;;  %v2322_v30 = vpop.permute.xlu0 %2321 }
 0x565   : > { %v2911_v29 = vpack.c.bf16 %v2877_v22, %v2877_v22  ;;  %2356 = vst.msk [vmem:[#allocation4 + $0x38] sm:$0xf] %vm2341_vm3, %v2322_v30 }
 0x566   : > { %v3089_v59 = vpop.f32.mrf.mxu0 }
 0x567   : > { %v3122_v58 = vpack.c.bf16 %v3089_v59, %v3089_v59  ;;  %2947 = vrot.lane.b32.xlu1 %v2911_v29, %s6571_s26 }
 0x569   : > { %3159 = vrot.lane.b32.xlu0 %v3122_v58, %s6571_s26 }
 0x56b   : > { %3527 = vmatmul.bf16.gmra.mxu2 %v6243_v57 }
 0x56c   : > { %v2879_v4 = vpop.f32.mrf.mxu3 }
 0x56d   : > { %v2912_v12 = vpack.c.bf16 %v2879_v4, %v2879_v4 }
 0x56e   : > { %v3092_v39 = vpop.f32.mrf.mxu0 }
 0x56f   : > { %2949 = vrot.lane.b32.xlu2 %v2912_v12, %s6571_s26  ;;  %v3123_v23 = vpack.c.bf16 %v3092_v39, %v3092_v39 }
 0x571   : > { %3737 = vmatmul.bf16.gmra.mxu3 %v6251_v7  ;;  %3161 = vrot.lane.b32.xlu1 %v3123_v23, %s6571_s26 }
 0x574   : > { %v2882_v15 = vpop.f32.mrf.mxu3 }
 0x575   : > { %v2913_v13 = vpack.c.bf16 %v2882_v15, %v2882_v15 }
 0x576   : > { %v3094_v20 = vpop.f32.mrf.mxu0 }
 0x577   : > { %v3124_v35 = vpack.c.bf16 %v3094_v20, %v3094_v20  ;;  %2951 = vrot.lane.b32.xlu0 %v2913_v13, %s6571_s26 }
 0x579   : > { %3163 = vrot.lane.b32.xlu2 %v3124_v35, %s6571_s26 }
 0x57b   : > { %3532 = vmatmul.bf16.gmra.mxu2 %v6244_v1 }
 0x57c   : > { %v2884_v27 = vpop.f32.mrf.mxu3 }
 0x57d   : > { %v2914_v2 = vpack.c.bf16 %v2884_v27, %v2884_v27 }
 0x57e   : > { %v3097_v33 = vpop.f32.mrf.mxu0 }
 0x57f   : > { %2953 = vrot.lane.b32.xlu1 %v2914_v2, %s6571_s26  ;;  %v3125_v37 = vpack.c.bf16 %v3097_v33, %v3097_v33 }
 0x581   : > { %3742 = vmatmul.bf16.gmra.mxu3 %v6252_v50  ;;  %3165 = vrot.lane.b32.xlu0 %v3125_v37, %s6571_s26 }
 0x584   : > { %v2887_v62 = vpop.f32.mrf.mxu3 }
 0x585   : > { %v2915_v10 = vpack.c.bf16 %v2887_v62, %v2887_v62 }
 0x586   : > { %v3099_v48 = vpop.f32.mrf.mxu0 }
 0x587   : > { %v3126_v40 = vpack.c.bf16 %v3099_v48, %v3099_v48  ;;  %2955 = vrot.lane.b32.xlu2 %v2915_v10, %s6571_s26 }
 0x589   : > { %3167 = vrot.lane.b32.xlu1 %v3126_v40, %s6571_s26 }
 0x58b   : > { %3537 = vmatmul.bf16.gmra.mxu2 %v6245_v5  ;;  %v2324_v21 = vpop.permute.xlu1 %2323 }
 0x58c   : > { %v2889_v52 = vpop.f32.mrf.mxu3  ;;  %2357 = vst.msk [vmem:[#allocation4 + $0x3c] sm:$0xf] %vm2341_vm3, %v2324_v21 }
 0x58d   : > { %v2916_v17 = vpack.c.bf16 %v2889_v52, %v2889_v52 }
 0x58e   : > { %v3102_v31 = vpop.f32.mrf.mxu0 }
 0x58f   : > { %2957 = vrot.lane.b32.xlu0 %v2916_v17, %s6571_s26  ;;  %v3127_v42 = vpack.c.bf16 %v3102_v31, %v3102_v31 }
 0x591   : > { %3747 = vmatmul.bf16.gmra.mxu3 %v6253_v18  ;;  %3169 = vrot.lane.b32.xlu2 %v3127_v42, %s6571_s26 }
 0x594   : > { %v2892_v43 = vpop.f32.mrf.mxu3 }
 0x595   : > { %v2917_v60 = vpack.c.bf16 %v2892_v43, %v2892_v43 }
 0x596   : > { %v3104_v26 = vpop.f32.mrf.mxu0 }
 0x597   : > { %v3128_v51 = vpack.c.bf16 %v3104_v26, %v3104_v26  ;;  %2959 = vrot.lane.b32.xlu1 %v2917_v60, %s6571_s26 }
 0x599   : > { %3171 = vrot.lane.b32.xlu0 %v3128_v51, %s6571_s26 }
 0x59b   : > { %3542 = vmatmul.bf16.gmra.mxu2 %v6246_v53 }
 0x59c   : > { %v2894_v47 = vpop.f32.mrf.mxu3 }
 0x59d   : > { %v2918_v54 = vpack.c.bf16 %v2894_v47, %v2894_v47 }
 0x59e   : > { %v3107_v9 = vpop.f32.mrf.mxu0 }
 0x59f   : > { %2961 = vrot.lane.b32.xlu2 %v2918_v54, %s6571_s26  ;;  %v3129_v32 = vpack.c.bf16 %v3107_v9, %v3107_v9 }
 0x5a1   : > { %3752 = vmatmul.bf16.gmra.mxu3 %v6254_v11  ;;  %3173 = vrot.lane.b32.xlu1 %v3129_v32, %s6571_s26 }
 0x5a3   : > { %v3152_v14 = vpop.permute.xlu2 %3151 }
 0x5a4   : > { %v2897_v46 = vpop.f32.mrf.mxu3  ;;  %3198 = vst.msk [vmem:[#allocation5 + $0x4] sm:$0xf] %vm2987_vm4, %v3152_v14 }
 0x5a5   : > { %v2919_v24 = vpack.c.bf16 %v2897_v46, %v2897_v46 }
 0x5a6   : > { %v3109_v63 = vpop.f32.mrf.mxu0 }
 0x5a7   : > { %v3130_v0 = vpack.c.bf16 %v3109_v63, %v3109_v63  ;;  %2963 = vrot.lane.b32.xlu0 %v2919_v24, %s6571_s26 }
 0x5a9   : > { %3175 = vrot.lane.b32.xlu2 %v3130_v0, %s6571_s26 }
 0x5ab   : > { %3547 = vmatmul.bf16.gmra.mxu2 %v6247_v19 }
 0x5ac   : > { %v2899_v6 = vpop.f32.mrf.mxu3 }
 0x5ad   : > { %v2920_v16 = vpack.c.bf16 %v2899_v6, %v2899_v6 }
 0x5ae   : > { %v3112_v36 = vpop.f32.mrf.mxu0 }
 0x5af   : > { %2965 = vrot.lane.b32.xlu1 %v2920_v16, %s6571_s26  ;;  %v3131_v3 = vpack.c.bf16 %v3112_v36, %v3112_v36 }
 0x5b1   : > { %3757 = vmatmul.bf16.gmra.mxu3 %v6255_v38  ;;  %3177 = vrot.lane.b32.xlu0 %v3131_v3, %s6571_s26  ;;  %v2944_v41 = vpop.permute.xlu2 %2943 }
 0x5b2   : > { %2990 = vst.msk [vmem:[#allocation4 + $0x8] sm:$0xf] %vm2987_vm4, %v2944_v41 }
 0x5b3   : > { %v3150_v45 = vpop.permute.xlu1 %3149 }
 0x5b4   : > { %v2902_v44 = vpop.f32.mrf.mxu3  ;;  %3197 = vst.msk [vmem:[#allocation5] sm:$0xf] %vm2987_vm4, %v3150_v45 }
 0x5b5   : > { %v2921_v34 = vpack.c.bf16 %v2902_v44, %v2902_v44 }
 0x5b6   : > { %v3114_v8 = vpop.f32.mrf.mxu0 }
 0x5b7   : > { %2967 = vrot.lane.b32.xlu2 %v2921_v34, %s6571_s26  ;;  %v3132_v25 = vpack.c.bf16 %v3114_v8, %v3114_v8 }
 0x5b9   : > { %v2940_v61 = vpop.permute.xlu0 %2939  ;;  %3179 = vrot.lane.b32.xlu1 %v3132_v25, %s6571_s26 }
 0x5ba   : > { %2988 = vst.msk [vmem:[#allocation4] sm:$0xf] %vm2987_vm4, %v2940_v61 }
 0x5bb   : > { %v3158_v49 = vpop.permute.xlu2 %3157 }
 0x5bc   : > { %v2904_v55 = vpop.f32.mrf.mxu3  ;;  %3201 = vst.msk [vmem:[#allocation5 + $0x10] sm:$0xf] %vm2987_vm4, %v3158_v49 }
 0x5bd   : > { %v2922_v28 = vpack.c.bf16 %v2904_v55, %v2904_v55 }
 0x5be   : > { %v3513_v56 = vpop.f32.mrf.mxu2 }
 0x5bf   : > { %v3553_v22 = vpack.c.bf16 %v3513_v56, %v3513_v56  ;;  %2969 = vrot.lane.b32.xlu0 %v2922_v28, %s6571_s26 }
 0x5c1   : > { %v2942_v29 = vpop.permute.xlu1 %2941  ;;  %3585 = vrot.lane.b32.xlu2 %v3553_v22, %s6567_s22 }
 0x5c2   : > { %2989 = vst.msk [vmem:[#allocation4 + $0x4] sm:$0xf] %vm2987_vm4, %v2942_v29 }
 0x5c3   : > { %v3154_v59 = vpop.permute.xlu0 %3153 }
 0x5c4   : > { %v3723_v57 = vpop.f32.mrf.mxu3  ;;  %3199 = vst.msk [vmem:[#allocation5 + $0x8] sm:$0xf] %vm2987_vm4, %v3154_v59 }
 0x5c5   : > { %v3763_v58 = vpack.c.bf16 %v3723_v57, %v3723_v57 }
 0x5c6   : > { %v3515_v4 = vpop.f32.mrf.mxu2 }
 0x5c7   : > { %3795 = vrot.lane.b32.xlu0 %v3763_v58, %s6567_s22  ;;  %v3554_v23 = vpack.c.bf16 %v3515_v4, %v3515_v4 }
 0x5c9   : > { %v2950_v12 = vpop.permute.xlu2 %2949 }
 0x5ca   : > { %2993 = vst.msk [vmem:[#allocation4 + $0x14] sm:$0xf] %vm2987_vm4, %v2950_v12 }
 0x5cb   : > { %v3156_v7 = vpop.permute.xlu1 %3155 }
 0x5cc   : > { %v3725_v39 = vpop.f32.mrf.mxu3  ;;  %3200 = vst.msk [vmem:[#allocation5 + $0xc] sm:$0xf] %vm2987_vm4, %v3156_v7 }
 0x5cd   : > { %v3764_v15 = vpack.c.bf16 %v3725_v39, %v3725_v39 }
 0x5ce   : > { %v3518_v13 = vpop.f32.mrf.mxu2 }
 0x5cf   : > { %3797 = vrot.lane.b32.xlu1 %v3764_v15, %s6567_s22  ;;  %3587 = vrot.lane.b32.xlu0 %v3554_v23, %s6567_s22  ;;  %v3555_v1 = vpack.c.bf16 %v3518_v13, %v3518_v13 }
 0x5d1   : > { %v2946_v20 = vpop.permute.xlu0 %2945 }
 0x5d2   : > { %2991 = vst.msk [vmem:[#allocation4 + $0xc] sm:$0xf] %vm2987_vm4, %v2946_v20 }
 0x5d3   : > { %v3164_v35 = vpop.permute.xlu2 %3163 }
 0x5d4   : > { %v3728_v27 = vpop.f32.mrf.mxu3  ;;  %3204 = vst.msk [vmem:[#allocation5 + $0x1c] sm:$0xf] %vm2987_vm4, %v3164_v35 }
 0x5d5   : > { %v3765_v2 = vpack.c.bf16 %v3728_v27, %v3728_v27 }
 0x5d6   : > { %v3520_v50 = vpop.f32.mrf.mxu2 }
 0x5d7   : > { %3799 = vrot.lane.b32.xlu2 %v3765_v2, %s6567_s22  ;;  %3589 = vrot.lane.b32.xlu1 %v3555_v1, %s6567_s22  ;;  %v3556_v10 = vpack.c.bf16 %v3520_v50, %v3520_v50 }
 0x5d9   : > { %v2948_v33 = vpop.permute.xlu1 %2947 }
 0x5da   : > { %2992 = vst.msk [vmem:[#allocation4 + $0x10] sm:$0xf] %vm2987_vm4, %v2948_v33 }
 0x5db   : > { %v3160_v37 = vpop.permute.xlu0 %3159 }
 0x5dc   : > { %v3730_v62 = vpop.f32.mrf.mxu3  ;;  %3202 = vst.msk [vmem:[#allocation5 + $0x14] sm:$0xf] %vm2987_vm4, %v3160_v37 }
 0x5dd   : > { %v3766_v48 = vpack.c.bf16 %v3730_v62, %v3730_v62 }
 0x5de   : > { %v3523_v5 = vpop.f32.mrf.mxu2 }
 0x5df   : > { %3801 = vrot.lane.b32.xlu0 %v3766_v48, %s6567_s22  ;;  %3591 = vrot.lane.b32.xlu2 %v3556_v10, %s6567_s22  ;;  %v3557_v52 = vpack.c.bf16 %v3523_v5, %v3523_v5 }
 0x5e1   : > { %v2956_v40 = vpop.permute.xlu2 %2955 }
 0x5e2   : > { %2996 = vst.msk [vmem:[#allocation4 + $0x20] sm:$0xf] %vm2987_vm4, %v2956_v40 }
 0x5e3   : > { %v3162_v17 = vpop.permute.xlu1 %3161 }
 0x5e4   : > { %v3733_v18 = vpop.f32.mrf.mxu3  ;;  %3203 = vst.msk [vmem:[#allocation5 + $0x18] sm:$0xf] %vm2987_vm4, %v3162_v17 }
 0x5e5   : > { %v3767_v31 = vpack.c.bf16 %v3733_v18, %v3733_v18 }
 0x5e6   : > { %v3525_v42 = vpop.f32.mrf.mxu2 }
 0x5e7   : > { %3803 = vrot.lane.b32.xlu1 %v3767_v31, %s6567_s22  ;;  %3593 = vrot.lane.b32.xlu0 %v3557_v52, %s6567_s22  ;;  %v3558_v60 = vpack.c.bf16 %v3525_v42, %v3525_v42 }
 0x5e9   : > { %v2952_v30 = vpop.permute.xlu0 %2951 }
 0x5ea   : > { %2994 = vst.msk [vmem:[#allocation4 + $0x18] sm:$0xf] %vm2987_vm4, %v2952_v30 }
 0x5eb   : > { %v3170_v43 = vpop.permute.xlu2 %3169 }
 0x5ec   : > { %v3735_v21 = vpop.f32.mrf.mxu3  ;;  %3207 = vst.msk [vmem:[#allocation5 + $0x28] sm:$0xf] %vm2987_vm4, %v3170_v43 }
 0x5ed   : > { %v3768_v26 = vpack.c.bf16 %v3735_v21, %v3735_v21 }
 0x5ee   : > { %v3528_v53 = vpop.f32.mrf.mxu2 }
 0x5ef   : > { %3595 = vrot.lane.b32.xlu1 %v3558_v60, %s6567_s22  ;;  %3805 = vrot.lane.b32.xlu2 %v3768_v26, %s6567_s22  ;;  %v3559_v47 = vpack.c.bf16 %v3528_v53, %v3528_v53 }
 0x5f1   : > { %v2954_v51 = vpop.permute.xlu1 %2953 }
 0x5f2   : > { %2995 = vst.msk [vmem:[#allocation4 + $0x1c] sm:$0xf] %vm2987_vm4, %v2954_v51 }
 0x5f3   : > { %v3166_v54 = vpop.permute.xlu0 %3165 }
 0x5f4   : > { %v3738_v11 = vpop.f32.mrf.mxu3  ;;  %3205 = vst.msk [vmem:[#allocation5 + $0x20] sm:$0xf] %vm2987_vm4, %v3166_v54 }
 0x5f5   : > { %v3769_v9 = vpack.c.bf16 %v3738_v11, %v3738_v11 }
 0x5f6   : > { %v3530_v32 = vpop.f32.mrf.mxu2 }
 0x5f7   : > { %3807 = vrot.lane.b32.xlu0 %v3769_v9, %s6567_s22  ;;  %3597 = vrot.lane.b32.xlu2 %v3559_v47, %s6567_s22  ;;  %v3560_v63 = vpack.c.bf16 %v3530_v32, %v3530_v32 }
 0x5f9   : > { %v2962_v14 = vpop.permute.xlu2 %2961 }
 0x5fa   : > { %2999 = vst.msk [vmem:[#allocation4 + $0x2c] sm:$0xf] %vm2987_vm4, %v2962_v14 }
 0x5fb   : > { %v3168_v46 = vpop.permute.xlu1 %3167 }
 0x5fc   : > { %v3740_v24 = vpop.f32.mrf.mxu3  ;;  %3206 = vst.msk [vmem:[#allocation5 + $0x24] sm:$0xf] %vm2987_vm4, %v3168_v46 }
 0x5fd   : > { %v3770_v19 = vpack.c.bf16 %v3740_v24, %v3740_v24 }
 0x5fe   : > { %v3533_v0 = vpop.f32.mrf.mxu2 }
 0x5ff   : > { %3809 = vrot.lane.b32.xlu1 %v3770_v19, %s6567_s22  ;;  %3599 = vrot.lane.b32.xlu0 %v3560_v63, %s6567_s22  ;;  %v3561_v16 = vpack.c.bf16 %v3533_v0, %v3533_v0 }
 0x601   : > { %v2958_v6 = vpop.permute.xlu0 %2957 }
 0x602   : > { %2997 = vst.msk [vmem:[#allocation4 + $0x24] sm:$0xf] %vm2987_vm4, %v2958_v6 }
 0x603   : > { %v3176_v38 = vpop.permute.xlu2 %3175 }
 0x604   : > { %v3743_v36 = vpop.f32.mrf.mxu3  ;;  %3210 = vst.msk [vmem:[#allocation5 + $0x34] sm:$0xf] %vm2987_vm4, %v3176_v38 }
 0x605   : > { %v3771_v3 = vpack.c.bf16 %v3743_v36, %v3743_v36 }
 0x606   : > { %v3535_v41 = vpop.f32.mrf.mxu2 }
 0x607   : > { %3811 = vrot.lane.b32.xlu2 %v3771_v3, %s6567_s22  ;;  %3601 = vrot.lane.b32.xlu1 %v3561_v16, %s6567_s22  ;;  %v3562_v8 = vpack.c.bf16 %v3535_v41, %v3535_v41 }
 0x609   : > { %v2960_v45 = vpop.permute.xlu1 %2959 }
 0x60a   : > { %2998 = vst.msk [vmem:[#allocation4 + $0x28] sm:$0xf] %vm2987_vm4, %v2960_v45 }
 0x60b   : > { %v3172_v44 = vpop.permute.xlu0 %3171 }
 0x60c   : > { %v3745_v34 = vpop.f32.mrf.mxu3  ;;  %3208 = vst.msk [vmem:[#allocation5 + $0x2c] sm:$0xf] %vm2987_vm4, %v3172_v44 }
 0x60d   : > { %v3772_v25 = vpack.c.bf16 %v3745_v34, %v3745_v34 }
 0x60e   : > { %v3538_v61 = vpop.f32.mrf.mxu2 }
 0x60f   : > { %3813 = vrot.lane.b32.xlu0 %v3772_v25, %s6567_s22  ;;  %3603 = vrot.lane.b32.xlu2 %v3562_v8, %s6567_s22  ;;  %v3563_v55 = vpack.c.bf16 %v3538_v61, %v3538_v61 }
 0x611   : > { %v2968_v49 = vpop.permute.xlu2 %2967 }
 0x612   : > { %3002 = vst.msk [vmem:[#allocation4 + $0x38] sm:$0xf] %vm2987_vm4, %v2968_v49 }
 0x613   : > { %v3174_v28 = vpop.permute.xlu1 %3173 }
 0x614   : > { %v3748_v56 = vpop.f32.mrf.mxu3  ;;  %3209 = vst.msk [vmem:[#allocation5 + $0x30] sm:$0xf] %vm2987_vm4, %v3174_v28 }
 0x615   : > { %v3773_v22 = vpack.c.bf16 %v3748_v56, %v3748_v56 }
 0x616   : > { %v3540_v29 = vpop.f32.mrf.mxu2 }
 0x617   : > { %3815 = vrot.lane.b32.xlu1 %v3773_v22, %s6567_s22  ;;  %3605 = vrot.lane.b32.xlu0 %v3563_v55, %s6567_s22  ;;  %v3564_v4 = vpack.c.bf16 %v3540_v29, %v3540_v29 }
 0x619   : > { %v2964_v59 = vpop.permute.xlu0 %2963 }
 0x61a   : > { %3000 = vst.msk [vmem:[#allocation4 + $0x30] sm:$0xf] %vm2987_vm4, %v2964_v59 }
 0x61b   : > { %v3586_v57 = vpop.permute.xlu2 %3585 }
 0x61c   : > { %v3750_v58 = vpop.f32.mrf.mxu3  ;;  %3634 = vst.msk [vmem:[#allocation4] sm:$0xf] %vm3633_vm5, %v3586_v57 }
 0x61d   : > { %v3774_v12 = vpack.c.bf16 %v3750_v58, %v3750_v58 }
 0x61e   : > { %v3543_v7 = vpop.f32.mrf.mxu2 }
 0x61f   : > { %3607 = vrot.lane.b32.xlu1 %v3564_v4, %s6567_s22  ;;  %3817 = vrot.lane.b32.xlu2 %v3774_v12, %s6567_s22  ;;  %v3565_v23 = vpack.c.bf16 %v3543_v7, %v3543_v7 }
 0x621   : > { %v2966_v39 = vpop.permute.xlu1 %2965 }
 0x622   : > { %3001 = vst.msk [vmem:[#allocation4 + $0x34] sm:$0xf] %vm2987_vm4, %v2966_v39 }
 0x623   : > { %v3178_v15 = vpop.permute.xlu0 %3177 }
 0x624   : > { %v3753_v13 = vpop.f32.mrf.mxu3  ;;  %3211 = vst.msk [vmem:[#allocation5 + $0x38] sm:$0xf] %vm2987_vm4, %v3178_v15 }
 0x625   : > { %v3775_v20 = vpack.c.bf16 %v3753_v13, %v3753_v13 }
 0x626   : > { %v3545_v1 = vpop.f32.mrf.mxu2 }
 0x627   : > { %3819 = vrot.lane.b32.xlu0 %v3775_v20, %s6567_s22  ;;  %3609 = vrot.lane.b32.xlu2 %v3565_v23, %s6567_s22  ;;  %v3566_v2 = vpack.c.bf16 %v3545_v1, %v3545_v1 }
 0x62b   : > { %v3180_v35 = vpop.permute.xlu1 %3179 }
 0x62c   : > { %v3755_v27 = vpop.f32.mrf.mxu3  ;;  %3212 = vst.msk [vmem:[#allocation5 + $0x3c] sm:$0xf] %vm2987_vm4, %v3180_v35 }
 0x62d   : > { %v3776_v5 = vpack.c.bf16 %v3755_v27, %v3755_v27 }
 0x62e   : > { %v3548_v50 = vpop.f32.mrf.mxu2 }
 0x62f   : > { %v3567_v33 = vpack.c.bf16 %v3548_v50, %v3548_v50  ;;  %3611 = vrot.lane.b32.xlu0 %v3566_v2, %s6567_s22 }
 0x631   : > { %3613 = vrot.lane.b32.xlu1 %v3567_v33, %s6567_s22  ;;  %v2970_v37 = vpop.permute.xlu0 %2969  ;;  %v3800_v62 = vpop.permute.xlu2 %3799 }
 0x632   : > { %3003 = vst.msk [vmem:[#allocation4 + $0x3c] sm:$0xf] %vm2987_vm4, %v2970_v37 }
 0x633   : > { %3845 = vst.msk [vmem:[#allocation5 + $0x8] sm:$0xf] %vm3633_vm5, %v3800_v62 }
 0x634   : > { %v3758_v10 = vpop.f32.mrf.mxu3 }
 0x635   : > { %v3777_v42 = vpack.c.bf16 %v3758_v10, %v3758_v10 }
 0x636   : > { %v3550_v48 = vpop.f32.mrf.mxu2 }
 0x637   : > { %v3568_v40 = vpack.c.bf16 %v3550_v48, %v3550_v48 }
 0x639   : > { %3821 = vrot.lane.b32.xlu1 %v3776_v5, %s6567_s22  ;;  %3615 = vrot.lane.b32.xlu2 %v3568_v40, %s6567_s22  ;;  %v3796_v52 = vpop.permute.xlu0 %3795  ;;  %v3592_v17 = vpop.permute.xlu2 %3591 }
 0x63a   : > { %3843 = vst.msk [vmem:[#allocation5] sm:$0xf] %vm3633_vm5, %v3796_v52 }
 0x63b   : > { %3637 = vst.msk [vmem:[#allocation4 + $0xc] sm:$0xf] %vm3633_vm5, %v3592_v17 }
 0x63c   : > { %v3760_v18 = vpop.f32.mrf.mxu3 }
 0x63d   : > { %v3778_v31 = vpack.c.bf16 %v3760_v18, %v3760_v18 }
 0x63f   : > { %3825 = vrot.lane.b32.xlu0 %v3778_v31, %s6567_s22 }
 0x641   : > { %3823 = vrot.lane.b32.xlu2 %v3777_v42, %s6567_s22  ;;  %v3798_v30 = vpop.permute.xlu1 %3797  ;;  %v3588_v43 = vpop.permute.xlu0 %3587 }
 0x642   : > { %3844 = vst.msk [vmem:[#allocation5 + $0x4] sm:$0xf] %vm3633_vm5, %v3798_v30 }
 0x643   : > { %3635 = vst.msk [vmem:[#allocation4 + $0x4] sm:$0xf] %vm3633_vm5, %v3588_v43 }
 0x649   : > { %v3806_v21 = vpop.permute.xlu2 %3805  ;;  %v3590_v60 = vpop.permute.xlu1 %3589 }
 0x64a   : > { %3848 = vst.msk [vmem:[#allocation5 + $0x14] sm:$0xf] %vm3633_vm5, %v3806_v21 }
 0x64b   : > { %3636 = vst.msk [vmem:[#allocation4 + $0x8] sm:$0xf] %vm3633_vm5, %v3590_v60 }
 0x651   : > { %v3802_v26 = vpop.permute.xlu0 %3801  ;;  %v3598_v53 = vpop.permute.xlu2 %3597 }
 0x652   : > { %3846 = vst.msk [vmem:[#allocation5 + $0xc] sm:$0xf] %vm3633_vm5, %v3802_v26 }
 0x653   : > { %3640 = vst.msk [vmem:[#allocation4 + $0x18] sm:$0xf] %vm3633_vm5, %v3598_v53 }
 0x659   : > { %v3804_v51 = vpop.permute.xlu1 %3803  ;;  %v3594_v47 = vpop.permute.xlu0 %3593 }
 0x65a   : > { %3847 = vst.msk [vmem:[#allocation5 + $0x10] sm:$0xf] %vm3633_vm5, %v3804_v51 }
 0x65b   : > { %3638 = vst.msk [vmem:[#allocation4 + $0x10] sm:$0xf] %vm3633_vm5, %v3594_v47 }
 0x661   : > { %v3596_v54 = vpop.permute.xlu1 %3595  ;;  %v3812_v11 = vpop.permute.xlu2 %3811 }
 0x662   : > { %3639 = vst.msk [vmem:[#allocation4 + $0x14] sm:$0xf] %vm3633_vm5, %v3596_v54 }
 0x663   : > { %3851 = vst.msk [vmem:[#allocation5 + $0x20] sm:$0xf] %vm3633_vm5, %v3812_v11 }
 0x669   : > { %v3808_v9 = vpop.permute.xlu0 %3807  ;;  %v3604_v32 = vpop.permute.xlu2 %3603 }
 0x66a   : > { %3849 = vst.msk [vmem:[#allocation5 + $0x18] sm:$0xf] %vm3633_vm5, %v3808_v9 }
 0x66b   : > { %3643 = vst.msk [vmem:[#allocation4 + $0x24] sm:$0xf] %vm3633_vm5, %v3604_v32 }
 0x671   : > { %v3810_v14 = vpop.permute.xlu1 %3809  ;;  %v3600_v46 = vpop.permute.xlu0 %3599 }
 0x672   : > { %3850 = vst.msk [vmem:[#allocation5 + $0x1c] sm:$0xf] %vm3633_vm5, %v3810_v14 }
 0x673   : > { %3641 = vst.msk [vmem:[#allocation4 + $0x1c] sm:$0xf] %vm3633_vm5, %v3600_v46 }
 0x679   : > { %v3818_v24 = vpop.permute.xlu2 %3817  ;;  %v3602_v63 = vpop.permute.xlu1 %3601 }
 0x67a   : > { %3854 = vst.msk [vmem:[#allocation5 + $0x2c] sm:$0xf] %vm3633_vm5, %v3818_v24 }
 0x67b   : > { %3642 = vst.msk [vmem:[#allocation4 + $0x20] sm:$0xf] %vm3633_vm5, %v3602_v63 }
 0x681   : > { %v3814_v19 = vpop.permute.xlu0 %3813  ;;  %v3610_v0 = vpop.permute.xlu2 %3609 }
 0x682   : > { %3852 = vst.msk [vmem:[#allocation5 + $0x24] sm:$0xf] %vm3633_vm5, %v3814_v19 }
 0x683   : > { %3646 = vst.msk [vmem:[#allocation4 + $0x30] sm:$0xf] %vm3633_vm5, %v3610_v0 }
 0x689   : > { %v3816_v6 = vpop.permute.xlu1 %3815  ;;  %v3606_v16 = vpop.permute.xlu0 %3605 }
 0x68a   : > { %3853 = vst.msk [vmem:[#allocation5 + $0x28] sm:$0xf] %vm3633_vm5, %v3816_v6 }
 0x68b   : > { %3644 = vst.msk [vmem:[#allocation4 + $0x28] sm:$0xf] %vm3633_vm5, %v3606_v16 }
 0x691   : > { %v3608_v38 = vpop.permute.xlu1 %3607 }
 0x692   : > { %3645 = vst.msk [vmem:[#allocation4 + $0x2c] sm:$0xf] %vm3633_vm5, %v3608_v38 }
 0x693   : > { %v3616_v36 = vpop.permute.xlu2 %3615 }
 0x694   : > { %3649 = vst.msk [vmem:[#allocation4 + $0x3c] sm:$0xf] %vm3633_vm5, %v3616_v36 }
 0x699   : > { %v3820_v3 = vpop.permute.xlu0 %3819 }
 0x69a   : > { %3855 = vst.msk [vmem:[#allocation5 + $0x30] sm:$0xf] %vm3633_vm5, %v3820_v3 }
 0x69b   : > { %v3824_v41 = vpop.permute.xlu2 %3823 }
 0x69c   : > { %3857 = vst.msk [vmem:[#allocation5 + $0x38] sm:$0xf] %vm3633_vm5, %v3824_v41 }
 0x6a1   : > { %v3612_v45 = vpop.permute.xlu0 %3611 }
 0x6a2   : > { %3647 = vst.msk [vmem:[#allocation4 + $0x34] sm:$0xf] %vm3633_vm5, %v3612_v45 }
 0x6a3   : > { %v3614_v44 = vpop.permute.xlu1 %3613 }
 0x6a4   : > { %3648 = vst.msk [vmem:[#allocation4 + $0x38] sm:$0xf] %vm3633_vm5, %v3614_v44 }
 0x6ab   : > { %v3822_v34 = vpop.permute.xlu1 %3821 }
 0x6ac   : > { %3856 = vst.msk [vmem:[#allocation5 + $0x34] sm:$0xf] %vm3633_vm5, %v3822_v34 }
 0x6b1   : > { %v3826_v8 = vpop.permute.xlu0 %3825 }
 0x6b2   : > { %3858 = vst.msk [vmem:[#allocation5 + $0x3c] sm:$0xf] %vm3633_vm5, %v3826_v8 }
 0x6b3 PF: > { %p5877_p4 = scmp.ne.s32.totalorder %s6541_s16, 1 }
 0x6b4   : > { %s8204_s2 = sld [smem:[#allocation20_spill]] (!%p5877_p4) }
 0x6b5   : > { %3862 = sbr.rel (%p5877_p4) target bundleno = 2683 (0xa7b), region = 96  ;;  %s8205_s18 = sld [smem:[#allocation22_spill]] (!%p5877_p4) }
 0x6ba   : > { %v3924_v25 = vld [vmem:[%s8169_s10 + $0x70] sm:$0xff]  ;;  %v7761_v61 = vld [vmem:[%s8204_s2 + $0x40] sm:$0xff]  ;;  %v6572_v49 = vmov 0   ;;  %vm4116_vm6 = vcmask 1043456   ;;  %v6279_v59 = vld [vmem:[%s8204_s2 + $0x34] sm:$0xf0] }
 0x6bb   : > { %6418 = vset.pattern.permute.xlu0 %v6572_v49  ;;  %v4071_v55 = vunpack.c.l.b16 %v7761_v61  ;;  %v4072_v28 = vunpack.c.h.b16 %v7761_v61  ;;  %6420 = vset.pattern.permute.xlu2 %v6572_v49  ;;  %v5936_v56 = vld [vmem:[%s8204_s2 + $0x30] sm:$0xf]  ;;  %v6278_v57 = vld [vmem:[%s8204_s2 + $0x34] sm:$0xf]  ;;  %v5938_v58 = vld [vmem:[%s8204_s2 + $0x38] sm:$0xf0]  ;;  %s8206_s28 = smov %s8205_s18 }
 0x6bc   : > { %3998 = vperm.xlu0 %6418, %v3924_v25   ;;  %6419 = vset.pattern.permute.xlu1 %v6572_v49  ;;  %v5937_v7 = vor.u32 %v6279_v59, %v5936_v56  ;;  %v5941_v39 = vor.u32 %v6278_v57, %v5938_v58  ;;  %v5928_v23 = vld [vmem:[%s8204_s2 + $0x20] sm:$0xf]  ;;  %v6277_v15 = vld [vmem:[%s8204_s2 + $0x24] sm:$0xf0]  ;;  %v6276_v13 = vld [vmem:[%s8204_s2 + $0x24] sm:$0xf] }
 0x6bd   : > { %v4081_v22 = vpack.c.b16 %v4071_v55, %v4071_v55  ;;  %v4082_v29 = vpack.c.b16 %v4072_v28, %v4072_v28  ;;  %v5930_v20 = vld [vmem:[%s8204_s2 + $0x28] sm:$0xf0]  ;;  %v3922_v1 = vld [vmem:[%s8169_s10 + $0x60] sm:$0xff]  ;;  %v3920_v35 = vld [vmem:[%s8169_s10 + $0x50] sm:$0xff]  ;;  %v5929_v2 = vor.u32 %v6277_v15, %v5928_v23  ;;  %vm4091_vm7 = vcmask 588800  }
 0x6be   : > { %v3925_v27 = vld [vmem:[%s8169_s10 + $0x78] sm:$0xff]  ;;  %3988 = vperm.xlu1 %6419, %v3922_v1   ;;  %3978 = vperm.xlu2 %6420, %v3920_v35   ;;  %v5933_v50 = vor.u32 %v6276_v13, %v5930_v20  ;;  %v5920_v33 = vld [vmem:[%s8204_s2 + $0x10] sm:$0xf]  ;;  %v6274_v62 = vld [vmem:[%s8204_s2 + $0x14] sm:$0xf]  ;;  %vm4386_vm0 = vcmask 1041408  }
 0x6bf   : > { %v4118_v4 = vsel %vm4116_vm6, %v4081_v22, 0  ;;  %v4121_v12 = vsel %vm4116_vm6, %v4082_v29, 0  ;;  %v6275_v37 = vld [vmem:[%s8204_s2 + $0x14] sm:$0xf0]  ;;  %v5922_v10 = vld [vmem:[%s8204_s2 + $0x18] sm:$0xf0] }
 0x6c0   : > { %4126 = vmatpush.bf16.msra.mxu0 %v4118_v4  ;;  %4175 = vmatpush.bf16.msra.mxu1 %v4121_v12  ;;  %v3923_v48 = vld [vmem:[%s8169_s10 + $0x68] sm:$0xff]  ;;  %v3921_v5 = vld [vmem:[%s8169_s10 + $0x58] sm:$0xff]  ;;  %v5921_v40 = vor.u32 %v6275_v37, %v5920_v33  ;;  %v5925_v52 = vor.u32 %v6274_v62, %v5922_v10  ;;  %v5912_v17 = vld [vmem:[%s8204_s2] sm:$0xf]  ;;  %vm4370_vm1 = vcmask 31744  }
 0x6c1   : > { %v6273_v18 = vld [vmem:[%s8204_s2 + $0x4] sm:$0xf0]  ;;  %v6272_v31 = vld [vmem:[%s8204_s2 + $0x4] sm:$0xf]  ;;  %v5914_v42 = vld [vmem:[%s8204_s2 + $0x8] sm:$0xf0] }
 0x6c2   : > { %v3918_v30 = vld [vmem:[%s8169_s10 + $0x40] sm:$0xff]  ;;  %v5913_v43 = vor.u32 %v6273_v18, %v5912_v17  ;;  %v5917_v21 = vor.u32 %v6272_v31, %v5914_v42  ;;  %v3919_v26 = vld [vmem:[%s8169_s10 + $0x48] sm:$0xff]  ;;  %v3916_v53 = vld [vmem:[%s8169_s10 + $0x30] sm:$0xff] }
 0x6c3   : > { %v6280_v60 = vld [vmem:[#allocation4] sm:$0xff]  ;;  %v3917_v51 = vld [vmem:[%s8169_s10 + $0x38] sm:$0xff]  ;;  %v3915_v47 = vld [vmem:[%s8169_s10 + $0x28] sm:$0xff] }
 0x6c4   : > { %4127 = vmatpush.bf16.msra.mxu0 %v5937_v7  ;;  %4176 = vmatpush.bf16.msra.mxu1 %v5941_v39  ;;  %v3914_v54 = vld [vmem:[%s8169_s10 + $0x20] sm:$0xff]  ;;  %v3912_v11 = vld [vmem:[%s8169_s10 + $0x10] sm:$0xff]  ;;  %v6281_v9 = vld [vmem:[#allocation4 + $0x8] sm:$0xff] }
 0x6c5   : > { %4003 = vperm.xlu0 %6418, %v3925_v27   ;;  %v3913_v32 = vld [vmem:[%s8169_s10 + $0x18] sm:$0xff]  ;;  %v3910_v14 = vld [vmem:[%s8169_s10] sm:$0xff]  ;;  %v3911_v46 = vld [vmem:[%s8169_s10 + $0x8] sm:$0xff] }
 0x6c6   : > { %3993 = vperm.xlu1 %6419, %v3923_v48   ;;  %3983 = vperm.xlu2 %6420, %v3921_v5   ;;  %v6282_v24 = vld [vmem:[#allocation4 + $0x10] sm:$0xff]  ;;  %v6283_v63 = vld [vmem:[#allocation4 + $0x18] sm:$0xff]  ;;  %v4958_v19 = vld [vmem:[%s8172_s13] sm:$0xff] }
 0x6c7   : > { %v4960_v0 = vld [vmem:[%s8172_s13 + $0x10] sm:$0xff]  ;;  %v4961_v6 = vld [vmem:[%s8172_s13 + $0x18] sm:$0xff]  ;;  %v4963_v16 = vld [vmem:[%s8172_s13 + $0x28] sm:$0xff] }
 0x6c8   : > { %4128 = vmatpush.bf16.msra.mxu0 %v5929_v2  ;;  %4177 = vmatpush.bf16.msra.mxu1 %v5933_v50  ;;  %v6284_v38 = vld [vmem:[#allocation4 + $0x20] sm:$0xff]  ;;  %v4964_v36 = vld [vmem:[%s8172_s13 + $0x30] sm:$0xff]  ;;  %v4967_v41 = vld [vmem:[%s8172_s13 + $0x48] sm:$0xff] }
 0x6c9   : > { %v4966_v3 = vld [vmem:[%s8172_s13 + $0x40] sm:$0xff]  ;;  %v6285_v45 = vld [vmem:[#allocation4 + $0x28] sm:$0xff]  ;;  %v4969_v44 = vld [vmem:[%s8172_s13 + $0x58] sm:$0xff] }
 0x6ca   : > { %v4970_v34 = vld [vmem:[%s8172_s13 + $0x60] sm:$0xff]  ;;  %v4972_v8 = vld [vmem:[%s8172_s13 + $0x70] sm:$0xff]  ;;  %v4959_v25 = vld [vmem:[%s8172_s13 + $0x8] sm:$0xff] }
 0x6cb   : > { %v4973_v49 = vld [vmem:[%s8172_s13 + $0x78] sm:$0xff]  ;;  %v6286_v55 = vld [vmem:[#allocation4 + $0x30] sm:$0xff]  ;;  %v4962_v28 = vld [vmem:[%s8172_s13 + $0x20] sm:$0xff] }
 0x6cc   : > { %4129 = vmatpush.bf16.msra.mxu0 %v5921_v40  ;;  %4178 = vmatpush.bf16.msra.mxu1 %v5925_v52  ;;  %v4965_v56 = vld [vmem:[%s8172_s13 + $0x38] sm:$0xff]  ;;  %v4968_v29 = vld [vmem:[%s8172_s13 + $0x50] sm:$0xff]  ;;  %v4971_v59 = vld [vmem:[%s8172_s13 + $0x68] sm:$0xff] }
 0x6cd   : > { %3968 = vperm.xlu0 %6418, %v3918_v30   ;;  %v6287_v22 = vld [vmem:[#allocation4 + $0x38] sm:$0xff] }
 0x6ce   : > { %3973 = vperm.xlu1 %6419, %v3919_v26   ;;  %3958 = vperm.xlu2 %6420, %v3916_v53  }
 0x6d0   : > { %4130 = vmatpush.bf16.msra.mxu0 %v5913_v43  ;;  %4179 = vmatpush.bf16.msra.mxu1 %v5917_v21 }
 0x6d3   : > { %5942 = vmatmul.msk.bf16.vlgmr.msra.gmra.mxu0 %vm4091_vm7, %v6280_v60  ;;  %5950 = vmatmul.msk.bf16.vlgmr.msra.gmra.mxu1 %vm4091_vm7, %v6280_v60 }
 0x6d5   : > { %3963 = vperm.xlu0 %6418, %v3917_v51  }
 0x6d6   : > { %3953 = vperm.xlu2 %6420, %v3915_v47   ;;  %3948 = vperm.xlu1 %6419, %v3914_v54  }
 0x6dd   : > { %3938 = vperm.xlu0 %6418, %v3912_v11  }
 0x6de   : > { %3943 = vperm.xlu1 %6419, %v3913_v32   ;;  %3928 = vperm.xlu2 %6420, %v3910_v14  }
 0x6e3   : > { %5943 = vmatmul.msk.bf16.gmra.mxu0 %vm4091_vm7, %v6281_v9  ;;  %5951 = vmatmul.msk.bf16.gmra.mxu1 %vm4091_vm7, %v6281_v9 }
 0x6e5   : > { %3933 = vperm.xlu0 %6418, %v3911_v46  }
 0x6e6   : > { %4976 = vperm.xlu1 %6419, %v4958_v19   ;;  %4981 = vperm.xlu2 %6420, %v4959_v25  }
 0x6ed   : > { %4986 = vperm.xlu0 %6418, %v4960_v0  }
 0x6ee   : > { %4991 = vperm.xlu1 %6419, %v4961_v6   ;;  %4996 = vperm.xlu2 %6420, %v4962_v28  }
 0x6f3   : > { %5944 = vmatmul.msk.bf16.gmra.mxu0 %vm4091_vm7, %v6282_v24  ;;  %5952 = vmatmul.msk.bf16.gmra.mxu1 %vm4091_vm7, %v6282_v24 }
 0x6f5   : > { %5001 = vperm.xlu0 %6418, %v4963_v16  }
 0x6f6   : > { %5006 = vperm.xlu1 %6419, %v4964_v36   ;;  %5011 = vperm.xlu2 %6420, %v4965_v56  }
 0x6fd   : > { %5016 = vperm.xlu0 %6418, %v4966_v3  }
 0x6fe   : > { %5021 = vperm.xlu1 %6419, %v4967_v41   ;;  %5026 = vperm.xlu2 %6420, %v4968_v29  }
 0x703   : > { %5945 = vmatmul.msk.bf16.gmra.mxu0 %vm4091_vm7, %v6283_v63  ;;  %5953 = vmatmul.msk.bf16.gmra.mxu1 %vm4091_vm7, %v6283_v63 }
 0x705   : > { %5031 = vperm.xlu0 %6418, %v4969_v44  }
 0x706   : > { %5036 = vperm.xlu1 %6419, %v4970_v34   ;;  %5041 = vperm.xlu2 %6420, %v4971_v59  }
 0x70d   : > { %5046 = vperm.xlu0 %6418, %v4972_v8  }
 0x70e   : > { %5051 = vperm.xlu1 %6419, %v4973_v49  }
 0x713   : > { %5946 = vmatmul.msk.bf16.gmra.mxu0 %vm4091_vm7, %v6284_v38  ;;  %5954 = vmatmul.msk.bf16.gmra.mxu1 %vm4091_vm7, %v6284_v38 }
 0x718   : > { %v3979_v21 = vpop.permute.xlu2 %3978 }
 0x720   : > { %v3984_v11 = vpop.permute.xlu2 %3983 }
 0x723   : > { %5947 = vmatmul.msk.bf16.gmra.mxu0 %vm4091_vm7, %v6285_v45  ;;  %5955 = vmatmul.msk.bf16.gmra.mxu1 %vm4091_vm7, %v6285_v45 }
 0x728   : > { %v3959_v34 = vpop.permute.xlu2 %3958 }
 0x72e   : > { %v3999_v18 = vpop.permute.xlu0 %3998 }
 0x730   : > { %v3989_v30 = vpop.permute.xlu1 %3988 }
 0x733   : > { %5948 = vmatmul.msk.bf16.gmra.mxu0 %vm4091_vm7, %v6286_v55  ;;  %5956 = vmatmul.msk.bf16.gmra.mxu1 %vm4091_vm7, %v6286_v55 }
 0x737   : > { %v4004_v43 = vpop.permute.xlu0 %4003 }
 0x738   : > { %v3994_v53 = vpop.permute.xlu1 %3993 }
 0x73f   : > { %v3969_v51 = vpop.permute.xlu0 %3968 }
 0x740   : > { %v3974_v9 = vpop.permute.xlu1 %3973 }
 0x743   : > { %5949 = vmatmul.msk.bf16.gmra.mxu0 %vm4091_vm7, %v6287_v22  ;;  %5957 = vmatmul.msk.bf16.gmra.mxu1 %vm4091_vm7, %v6287_v22 }
 0x747   : > { %v3964_v63 = vpop.permute.xlu0 %3963 }
 0x748   : > { %v3949_v22 = vpop.permute.xlu1 %3948 }
 0x750   : > { %v7924_v57 = vpop.f32.mrf.mxu0  ;;  %v7926_v58 = vpop.f32.mrf.mxu1 }
 0x758   : > { %v7928_v4 = vpop.f32.mrf.mxu0  ;;  %v7930_v12 = vpop.f32.mrf.mxu1 }
 0x760   : > { %v7932_v7 = vpop.f32.mrf.mxu0  ;;  %v7934_v39 = vpop.f32.mrf.mxu1 }
 0x768   : > { %v7936_v23 = vpop.f32.mrf.mxu0  ;;  %v7938_v15 = vpop.f32.mrf.mxu1 }
 0x770   : > { %v7940_v13 = vpop.f32.mrf.mxu0  ;;  %v7942_v20 = vpop.f32.mrf.mxu1 }
 0x778   : > { %v7944_v1 = vpop.f32.mrf.mxu0  ;;  %v7946_v35 = vpop.f32.mrf.mxu1 }
 0x780   : > { %v7948_v27 = vpop.f32.mrf.mxu0  ;;  %v7950_v2 = vpop.f32.mrf.mxu1 }
 0x788   : > { %v7952_v50 = vpop.f32.mrf.mxu0  ;;  %v7954_v33 = vpop.f32.mrf.mxu1 }
 0x790   : > { %v4152_v37 = vpop.f32.mrf.mxu0  ;;  %v4201_v62 = vpop.f32.mrf.mxu1 }
 0x798   : > { %v4154_v10 = vpop.f32.mrf.mxu0  ;;  %v4203_v48 = vpop.f32.mrf.mxu1 }
 0x7a0   : > { %v4157_v5 = vpop.f32.mrf.mxu0  ;;  %v4206_v40 = vpop.f32.mrf.mxu1 }
 0x7a1   : > { %v4158_v29 = vadd.f32 %v4157_v5, %v3979_v21  ;;  %v4207_v59 = vadd.f32 %v4206_v40, %v3979_v21  ;;  %v4150_v5 = vadd.f32 %v7952_v50, %v3964_v63  ;;  %v4199_v40 = vadd.f32 %v7954_v33, %v3964_v63  ;;  %v3944_v50 = vpop.permute.xlu1 %3943 }
 0x7a3   : > { %v4236_v33 = vmax.f32 %v4199_v40, 0.0 }
 0x7a8   : > { %v4159_v52 = vpop.f32.mrf.mxu0  ;;  %v4208_v17 = vpop.f32.mrf.mxu1 }
 0x7a9   : > { %v4160_v8 = vadd.f32 %v4159_v52, %v3984_v11  ;;  %v4209_v25 = vadd.f32 %v4208_v17, %v3984_v11  ;;  %v4153_v52 = vadd.f32 %v4152_v37, %v3969_v51  ;;  %v4202_v17 = vadd.f32 %v4201_v62, %v3969_v51 }
 0x7aa   : > { %v4242_v11 = vmax.f32 %v4207_v59, 0.0 }
 0x7ab   : > { %v4238_v37 = vmax.f32 %v4202_v17, 0.0 }
 0x7b0   : > { %v4162_v31 = vpop.f32.mrf.mxu0  ;;  %v4211_v42 = vpop.f32.mrf.mxu1 }
 0x7b1   : > { %v4163_v38 = vadd.f32 %v4162_v31, %v3989_v30  ;;  %v4212_v36 = vadd.f32 %v4211_v42, %v3989_v30  ;;  %v4155_v31 = vadd.f32 %v4154_v10, %v3974_v9  ;;  %v4204_v42 = vadd.f32 %v4203_v48, %v3974_v9  ;;  %v3954_v48 = vpop.permute.xlu2 %3953 }
 0x7b2   : > { %v4243_v30 = vmax.f32 %v4160_v8, 0.0  ;;  %v4148_v9 = vadd.f32 %v7948_v27, %v3959_v34  ;;  %v4145_v62 = vadd.f32 %v7944_v1, %v3954_v48  ;;  %v4194_v51 = vadd.f32 %v7946_v35, %v3954_v48 }
 0x7b3   : > { %v4239_v21 = vmax.f32 %v4155_v31, 0.0 }
 0x7b4   : > { %v4233_v27 = vmax.f32 %v4148_v9, 0.0  ;;  %v4232_v35 = vmax.f32 %v4194_v51, 0.0 }
 0x7b8   : > { %v4164_v60 = vpop.f32.mrf.mxu0  ;;  %v4213_v26 = vpop.f32.mrf.mxu1 }
 0x7b9   : > { %v4165_v19 = vadd.f32 %v4164_v60, %v3994_v53  ;;  %v4214_v0 = vadd.f32 %v4213_v26, %v3994_v53  ;;  %v4246_v60 = vmax.f32 %v4212_v36, 0.0  ;;  %v4189_v36 = vadd.f32 %v7938_v15, %v3944_v50 }
 0x7bb   : > { %v4247_v49 = vmax.f32 %v4165_v19, 0.0  ;;  %v4248_v55 = vmax.f32 %v4214_v0, 0.0  ;;  %v4235_v19 = vmax.f32 %v4150_v5, 0.0  ;;  %v4228_v15 = vmax.f32 %v4189_v36, 0.0 }
 0x7bd   : > { %v4267_v53 = vpack.c.bf16 %v4248_v55, %v4246_v60 }
 0x7c0   : > { %v4167_v47 = vpop.f32.mrf.mxu0  ;;  %v4216_v54 = vpop.f32.mrf.mxu1 }
 0x7c1   : > { %v4168_v32 = vadd.f32 %v4167_v47, %v3999_v18  ;;  %v4217_v14 = vadd.f32 %v4216_v54, %v3999_v18  ;;  %v4245_v18 = vmax.f32 %v4163_v38, 0.0  ;;  %v3939_v47 = vpop.permute.xlu0 %3938  ;;  %v4241_v54 = vmax.f32 %v4158_v29, 0.0 }
 0x7c3   : > { %v4249_v3 = vmax.f32 %v4168_v32, 0.0  ;;  %v4250_v41 = vmax.f32 %v4217_v14, 0.0  ;;  %v4266_v26 = vpack.c.bf16 %v4247_v49, %v4245_v18  ;;  %v4240_v32 = vmax.f32 %v4204_v42, 0.0 }
 0x7c4   : > { %v4264_v14 = vpack.c.bf16 %v4243_v30, %v4241_v54 }
 0x7c5   : > { %v4263_v0 = vpack.c.bf16 %v4240_v32, %v4238_v37 }
 0x7c8   : > { %v4169_v46 = vpop.f32.mrf.mxu0  ;;  %v4218_v24 = vpop.f32.mrf.mxu1 }
 0x7c9   : > { %v4170_v6 = vadd.f32 %v4169_v46, %v4004_v43  ;;  %v4219_v16 = vadd.f32 %v4218_v24, %v4004_v43  ;;  %v4244_v43 = vmax.f32 %v4209_v25, 0.0  ;;  %v4197_v46 = vadd.f32 %v7950_v2, %v3959_v34  ;;  %v3934_v1 = vpop.permute.xlu0 %3933 }
 0x7ca   : > { %v4237_v24 = vmax.f32 %v4153_v52, 0.0  ;;  %v4140_v2 = vadd.f32 %v7936_v23, %v3944_v50  ;;  %v4187_v34 = vadd.f32 %v7934_v39, %v3939_v47  ;;  %v4135_v25 = vadd.f32 %v7928_v4, %v3934_v1 }
 0x7cb   : > { %v4251_v45 = vmax.f32 %v4170_v6, 0.0  ;;  %v4252_v44 = vmax.f32 %v4219_v16, 0.0  ;;  %v4265_v10 = vpack.c.bf16 %v4244_v43, %v4242_v11  ;;  %v4143_v6 = vadd.f32 %v7940_v13, %v3949_v22 }
 0x7cc   : > { %v4262_v63 = vpack.c.bf16 %v4239_v21, %v4237_v24  ;;  %v4192_v16 = vadd.f32 %v7942_v20, %v3949_v22  ;;  %v4234_v38 = vmax.f32 %v4197_v46, 0.0  ;;  %v3929_v20 = vpop.permute.xlu2 %3928  ;;  %v4184_v23 = vadd.f32 %v7930_v12, %v3934_v1 }
 0x7cd   : > { %v4268_v28 = vpack.c.bf16 %v4251_v45, %v4249_v3  ;;  %v4269_v56 = vpack.c.bf16 %v4252_v44, %v4250_v41  ;;  %v4231_v3 = vmax.f32 %v4145_v62, 0.0  ;;  %v4260_v41 = vpack.c.bf16 %v4235_v19, %v4233_v27 }
 0x7ce   : > { %v4261_v45 = vpack.c.bf16 %v4236_v33, %v4234_v38  ;;  %v4138_v44 = vadd.f32 %v7932_v7, %v3939_v47  ;;  %v4229_v13 = vmax.f32 %v4143_v6, 0.0  ;;  %v4230_v8 = vmax.f32 %v4192_v16, 0.0 }
 0x7cf   : > { %4270 = vmatpush.bf16.msra.mxu2 %v4268_v28  ;;  %4283 = vmatpush.bf16.msra.mxu3 %v4269_v56  ;;  %v4227_v49 = vmax.f32 %v4140_v2, 0.0  ;;  %v4133_v56 = vadd.f32 %v7924_v57, %v3929_v20  ;;  %v4182_v22 = vadd.f32 %v7926_v58, %v3929_v20  ;;  %v4226_v29 = vmax.f32 %v4187_v34, 0.0  ;;  %v4253_v57 = vld [vmem:[%s8170_s11] sm:$0x3] }
 0x7d0   : > { %v4258_v55 = vpack.c.bf16 %v4231_v3, %v4229_v13  ;;  %v4259_v28 = vpack.c.bf16 %v4232_v35, %v4230_v8  ;;  %v4225_v7 = vmax.f32 %v4138_v44, 0.0  ;;  %v4223_v39 = vmax.f32 %v4135_v25, 0.0  ;;  %v6288_v3 = vld [vmem:[%s8205_s18] sm:$0xff]  ;;  %v6291_v44 = vld [vmem:[%s8206_s28 + $0x18] sm:$0xff] }
 0x7d1   : > { %v4224_v59 = vmax.f32 %v4184_v23, 0.0  ;;  %v4257_v60 = vpack.c.bf16 %v4228_v15, %v4226_v29  ;;  %v4221_v31 = vmax.f32 %v4133_v56, 0.0  ;;  %v4222_v4 = vmax.f32 %v4182_v22, 0.0  ;;  %v4346_v34 = vld [vmem:[%s8206_s28 + $0x20] sm:$0xf] }
 0x7d2   : > { %v4256_v18 = vpack.c.bf16 %v4227_v49, %v4225_v7  ;;  %v4364_v13 = vunpack.c.l.b16 %v4346_v34  ;;  %v6124_v49 = vld [vmem:[#allocation2 + $0x70] sm:$0xf]  ;;  %v6271_v15 = vld [vmem:[#allocation2 + $0x74] sm:$0xf0]  ;;  %v6126_v56 = vld [vmem:[#allocation2 + $0x78] sm:$0xf0] }
 0x7d3   : > { %4271 = vmatpush.bf16.msra.mxu2 %v4266_v26  ;;  %4284 = vmatpush.bf16.msra.mxu3 %v4267_v53  ;;  %v4254_v12 = vpack.c.bf16 %v4223_v39, %v4221_v31  ;;  %v4255_v42 = vpack.c.bf16 %v4224_v59, %v4222_v4  ;;  %v6268_v31 = vld [vmem:[#allocation2 + $0x64] sm:$0xf] }
 0x7d4   : > { %v4369_v8 = vpack.c.b16 %v4364_v13, %v4364_v13  ;;  %v6070_v13 = vld [vmem:[#allocation2 + $0x8] sm:$0xf0] }
 0x7d7   : > { %4272 = vmatpush.bf16.msra.mxu2 %v4264_v14  ;;  %4285 = vmatpush.bf16.msra.mxu3 %v4265_v10 }
 0x7db   : > { %4273 = vmatpush.bf16.msra.mxu2 %v4262_v63  ;;  %4286 = vmatpush.bf16.msra.mxu3 %v4263_v0 }
 0x7df   : > { %4274 = vmatpush.bf16.msra.mxu2 %v4260_v41  ;;  %4287 = vmatpush.bf16.msra.mxu3 %v4261_v45  ;;  %v6289_v41 = vld [vmem:[%s8206_s28 + $0x8] sm:$0xff]  ;;  %v6290_v45 = vld [vmem:[%s8206_s28 + $0x10] sm:$0xff] }
 0x7e3   : > { %4275 = vmatpush.bf16.msra.mxu2 %v4258_v55  ;;  %4288 = vmatpush.bf16.msra.mxu3 %v4259_v28  ;;  %v6270_v55 = vld [vmem:[#allocation2 + $0x74] sm:$0xf]  ;;  %v6125_v28 = vor.u32 %v6271_v15, %v6124_v49  ;;  %v6292_v49 = vld [vmem:[#allocation6] sm:$0xff]  ;;  %v8021_v15 = vld [vmem:[%s8204_s2 + $0x18] sm:$0xff] }
 0x7e4   : > { %v6129_v7 = vor.u32 %v6270_v55, %v6126_v56  ;;  %v3892_v56 = vld [vmem:[%s8204_s2 + $0x38] sm:$0xff] }
 0x7e5   : > { %4860 = vmatpush.bf16.msrb.mxu0 %v6125_v28  ;;  %v8026_v28 = vld [vmem:[%s8204_s2 + $0x20] sm:$0xff] }
 0x7e6   : > { %4909 = vmatpush.bf16.msrb.mxu1 %v6129_v7 }
 0x7e7   : > { %4276 = vmatpush.bf16.msra.mxu2 %v4256_v18  ;;  %4289 = vmatpush.bf16.msra.mxu3 %v4257_v60  ;;  %v6116_v18 = vld [vmem:[#allocation2 + $0x60] sm:$0xf]  ;;  %v6269_v60 = vld [vmem:[#allocation2 + $0x64] sm:$0xf0] }
 0x7e8   : > { %v6117_v4 = vor.u32 %v6269_v60, %v6116_v18 }
 0x7ea   : > { %4861 = vmatpush.bf16.msrb.mxu0 %v6117_v4  ;;  %v4485_v4 = vunpack.c.h.bf16 %v7761_v61 }
 0x7eb   : > { %4277 = vmatpush.bf16.msra.mxu2 %v4254_v12  ;;  %4290 = vmatpush.bf16.msra.mxu3 %v4255_v42  ;;  %v6118_v12 = vld [vmem:[#allocation2 + $0x68] sm:$0xf0] }
 0x7ee   : > { %4278 = vmatmul.bf16.vlgmr.msra.gmra.mxu2 %v4253_v57  ;;  %4291 = vmatmul.bf16.vlgmr.msra.gmra.mxu3 %v4253_v57  ;;  %v6121_v57 = vor.u32 %v6268_v31, %v6118_v12  ;;  %v4484_v31 = vunpack.c.l.bf16 %v7761_v61  ;;  %v4474_v12 = vunpack.c.l.bf16 %v8021_v15 }
 0x7f0   : > { %4910 = vmatpush.bf16.msrb.mxu1 %v6121_v57  ;;  %v3890_v57 = vld [vmem:[%s8204_s2 + $0x28] sm:$0xff] }
 0x871   : > { %v4279_v58 = vpop.f32.mrf.mxu2  ;;  %v4292_v30 = vpop.f32.mrf.mxu3 }
 0x872   : > { %v5958_v43 = vmul.f32 -1.442695, %v4279_v58  ;;  %v5959_v26 = vmul.f32 -1.442695, %v4292_v30 }
 0x874   : > { %6421 = vpow2.f32 %v5958_v43 }
 0x875   : > { %6423 = vpow2.f32 %v5959_v26  ;;  %v6108_v26 = vld [vmem:[#allocation2 + $0x50] sm:$0xf] }
 0x879   : > { %v4281_v53 = vpop.f32.mrf.mxu2  ;;  %v4294_v47 = vpop.f32.mrf.mxu3 }
 0x87a   : > { %v6422_v52 = vpop.eup %6421  ;;  %v6267_v53 = vld [vmem:[#allocation2 + $0x54] sm:$0xf0]  ;;  %v6266_v47 = vld [vmem:[#allocation2 + $0x54] sm:$0xf] }
 0x87b   : > { %v6424_v17 = vpop.eup %6423  ;;  %v4302_v54 = vadd.f32 1.0, %v6422_v52  ;;  %v6109_v52 = vor.u32 %v6267_v53, %v6108_v26  ;;  %v3891_v26 = vld [vmem:[%s8204_s2 + $0x30] sm:$0xff] }
 0x87c   : > { %v4303_v11 = vadd.f32 1.0, %v6424_v17  ;;  %v6110_v17 = vld [vmem:[#allocation2 + $0x58] sm:$0xf0] }
 0x87d   : > { %6425 = vrcp.f32 %v4302_v54  ;;  %v4315_v10 = vand.u32 2147483648, %v4302_v54  ;;  %v4313_v46 = vand.u32 2147483647, %v4302_v54  ;;  %vm4309_vm10 = vweird.f32 %v4302_v54  ;;  %4862 = vmatpush.bf16.msrb.mxu0 %v6109_v52 }
 0x87e   : > { %6427 = vrcp.f32 %v4303_v11  ;;  %v4330_v24 = vand.u32 2147483648, %v4303_v11  ;;  %v4328_v62 = vand.u32 2147483647, %v4303_v11  ;;  %vm4324_vm12 = vweird.f32 %v4303_v11 }
 0x87f   : > { %v4316_v50 = vor.u32 1.1754944e-38, %v4315_v10  ;;  %vm4314_vm13 = vcmp.eq.f32.partialorder %v4313_v46, 8.507059e+37  ;;  %v6263_v46 = vld [vmem:[#allocation2 + $0x34] sm:$0xf0]  ;;  %v4482_v52 = vunpack.c.l.bf16 %v3892_v56 }
 0x880   : > { %v4331_v63 = vor.u32 1.1754944e-38, %v4330_v24  ;;  %vm4329_vm15 = vcmp.eq.f32.partialorder %v4328_v62, 8.507059e+37  ;;  %v6262_v24 = vld [vmem:[#allocation2 + $0x34] sm:$0xf]  ;;  %v6094_v62 = vld [vmem:[#allocation2 + $0x38] sm:$0xf0] }
 0x883   : > { %v6426_v5 = vpop.eup %6425 }
 0x884   : > { %v6428_v40 = vpop.eup %6427  ;;  %v4305_v21 = vmul.f32 %v6426_v5, %v4302_v54  ;;  %vm4310_vm8 = vweird.f32 %v6426_v5  ;;  %v6113_v54 = vor.u32 %v6266_v47, %v6110_v17  ;;  %v4476_v47 = vunpack.c.l.bf16 %v8026_v28 }
 0x885   : > { %v4320_v32 = vmul.f32 %v6428_v40, %v4303_v11  ;;  %vm4325_vm9 = vweird.f32 %v6428_v40  ;;  %vm4311_vm11 = vmor %vm4309_vm10, %vm4310_vm8  ;;  %v6100_v11 = vld [vmem:[#allocation2 + $0x40] sm:$0xf] }
 0x886   : > { %v4306_v14 = vsub.f32 1.0, %v4305_v21  ;;  %vm4326_vm14 = vmor %vm4324_vm12, %vm4325_vm9  ;;  %4911 = vmatpush.bf16.msrb.mxu1 %v6113_v54 }
 0x887   : > { %v4321_v48 = vsub.f32 1.0, %v4320_v32  ;;  %v6102_v32 = vld [vmem:[#allocation2 + $0x48] sm:$0xf0] }
 0x888   : > { %v4307_v9 = vmul.f32 %v6426_v5, %v4306_v14 }
 0x889   : > { %v4322_v37 = vmul.f32 %v6428_v40, %v4321_v48 }
 0x88a   : > { %v4308_v51 = vadd.f32 %v6426_v5, %v4307_v9  ;;  %v6092_v9 = vld [vmem:[#allocation2 + $0x30] sm:$0xf] }
 0x88b   : > { %v4323_v19 = vadd.f32 %v6428_v40, %v4322_v37  ;;  %v6093_v37 = vor.u32 %v6263_v46, %v6092_v9 }
 0x88c   : > { %v4312_v33 = vsel %vm4311_vm11, %v6426_v5, %v4308_v51  ;;  %v6265_v5 = vld [vmem:[#allocation2 + $0x44] sm:$0xf0]  ;;  %v6097_v51 = vor.u32 %v6262_v24, %v6094_v62  ;;  %v4481_v24 = vunpack.c.h.bf16 %v3891_v26 }
 0x88d   : > { %v4317_v0 = vsel %vm4314_vm13, %v4316_v50, %v4312_v33  ;;  %v4327_v6 = vsel %vm4326_vm14, %v6428_v40, %v4323_v19  ;;  %v6264_v40 = vld [vmem:[#allocation2 + $0x44] sm:$0xf]  ;;  %v6101_v21 = vor.u32 %v6265_v5, %v6100_v11  ;;  %v6084_v50 = vld [vmem:[#allocation2 + $0x20] sm:$0xf]  ;;  %v6261_v19 = vld [vmem:[#allocation2 + $0x24] sm:$0xf0]  ;;  %v4483_v5 = vunpack.c.h.bf16 %v3892_v56 }
 0x88e   : > { %v4334_v16 = vadd.f32 1.0, %v4317_v0  ;;  %v4332_v27 = vsel %vm4329_vm15, %v4331_v63, %v4327_v6  ;;  %v6105_v10 = vor.u32 %v6264_v40, %v6102_v32  ;;  %v6260_v33 = vld [vmem:[#allocation2 + $0x24] sm:$0xf]  ;;  %v6085_v63 = vor.u32 %v6261_v19, %v6084_v50  ;;  %v6086_v0 = vld [vmem:[#allocation2 + $0x28] sm:$0xf0] }
 0x88f   : > { %v4335_v38 = vadd.f32 1.0, %v4332_v27  ;;  %4863 = vmatpush.bf16.msrb.mxu0 %v6101_v21  ;;  %v4478_v21 = vunpack.c.l.bf16 %v3890_v57  ;;  %v4480_v32 = vunpack.c.l.bf16 %v3891_v26  ;;  %v4479_v50 = vunpack.c.h.bf16 %v3890_v57 }
 0x890   : > { %v4336_v2 = vpack.c.bf16 %v4334_v16, %v4334_v16  ;;  %4912 = vmatpush.bf16.msrb.mxu1 %v6105_v10  ;;  %v6089_v16 = vor.u32 %v6260_v33, %v6086_v0 }
 0x891   : > { %v4337_v36 = vpack.c.bf16 %v4335_v38, %v4335_v38  ;;  %v6076_v38 = vld [vmem:[#allocation2 + $0x10] sm:$0xf] }
 0x892   : > { %v4388_v1 = vsel %vm4386_vm0, %v4336_v2, 0  ;;  %v6259_v2 = vld [vmem:[#allocation2 + $0x14] sm:$0xf0] }
 0x893   : > { %4400 = vmatpush.bf16.msrb.mxu2 %v4388_v1  ;;  %v4391_v35 = vsel %vm4386_vm0, %v4337_v36, 0  ;;  %4864 = vmatpush.bf16.msrb.mxu0 %v6093_v37  ;;  %v6258_v36 = vld [vmem:[#allocation2 + $0x14] sm:$0xf]  ;;  %v6077_v1 = vor.u32 %v6259_v2, %v6076_v38  ;;  %v6293_v2 = vld [vmem:[#allocation6 + $0x8] sm:$0xff] }
 0x894   : > { %4433 = vmatpush.bf16.msrb.mxu3 %v4391_v35  ;;  %4913 = vmatpush.bf16.msrb.mxu1 %v6097_v51 }
 0x896   : > { %5976 = vmatmul.msk.bf16.vlgmr.msrb.gmra.mxu2 %vm4370_vm1, %v6288_v3 }
 0x897   : > { %5981 = vmatmul.msk.bf16.vlgmr.msrb.gmra.mxu3 %vm4370_vm1, %v6288_v3  ;;  %4865 = vmatpush.bf16.msrb.mxu0 %v6085_v63  ;;  %v6078_v3 = vld [vmem:[#allocation2 + $0x18] sm:$0xf0] }
 0x898   : > { %4914 = vmatpush.bf16.msrb.mxu1 %v6089_v16  ;;  %v6081_v35 = vor.u32 %v6258_v36, %v6078_v3 }
 0x89b   : > { %4866 = vmatpush.bf16.msrb.mxu0 %v6077_v1 }
 0x89c   : > { %4915 = vmatpush.bf16.msrb.mxu1 %v6081_v35 }
 0x8a6   : > { %5977 = vmatmul.msk.bf16.gmra.mxu2 %vm4370_vm1, %v6289_v41 }
 0x8a7   : > { %5982 = vmatmul.msk.bf16.gmra.mxu3 %vm4370_vm1, %v6289_v41  ;;  %v6068_v41 = vld [vmem:[#allocation2] sm:$0xf] }
 0x8b6   : > { %5978 = vmatmul.msk.bf16.gmra.mxu2 %vm4370_vm1, %v6290_v45 }
 0x8b7   : > { %5983 = vmatmul.msk.bf16.gmra.mxu3 %vm4370_vm1, %v6290_v45  ;;  %v6257_v45 = vld [vmem:[#allocation2 + $0x4] sm:$0xf0] }
 0x8b8   : > { %v6069_v34 = vor.u32 %v6257_v45, %v6068_v41  ;;  %v3886_v45 = vld [vmem:[%s8204_s2 + $0x8] sm:$0xff] }
 0x8b9   : > { %v4470_v56 = vunpack.c.l.bf16 %v3886_v45 }
 0x8ba   : > { %4867 = vmatpush.bf16.msrb.mxu0 %v6069_v34 }
 0x8bd   : > { %4868 = vmatmul.bf16.vlgmr.msrb.gmra.mxu0 %v6292_v49 }
 0x8c6   : > { %5979 = vmatmul.msk.bf16.gmra.mxu2 %vm4370_vm1, %v6291_v44 }
 0x8c7   : > { %5984 = vmatmul.msk.bf16.gmra.mxu3 %vm4370_vm1, %v6291_v44  ;;  %v6256_v44 = vld [vmem:[#allocation2 + $0x4] sm:$0xf] }
 0x8cd   : > { %4873 = vmatmul.bf16.gmra.mxu0 %v6293_v2 }
 0x8d6   : > { %5980 = vmatmul.msk.bf16.gmra.mxu2 %vm4370_vm1, %v4369_v8 }
 0x8d7   : > { %5985 = vmatmul.msk.bf16.gmra.mxu3 %vm4370_vm1, %v4369_v8 }
 0x919   : > { %v4402_v20 = vpop.f32.mrf.mxu2 }
 0x91a   : > { %v4435_v25 = vpop.f32.mrf.mxu3 }
 0x91b   : > { %v8000_v23 = vpack.c.bf16 %v4435_v25, %v4402_v20  ;;  %v6073_v20 = vor.u32 %v6256_v44, %v6070_v13 }
 0x91d   : > { %4916 = vmatpush.bf16.msrb.mxu1 %v6073_v20 }
 0x920   : > { %4917 = vmatmul.bf16.vlgmr.msrb.gmra.mxu1 %v6292_v49 }
 0x921   : > { %v8002_v22 = vpop.f32.mrf.mxu2 }
 0x922   : > { %v8004_v29 = vpop.f32.mrf.mxu3 }
 0x929   : > { %v8006_v39 = vpop.f32.mrf.mxu2 }
 0x92a   : > { %v8008_v59 = vpop.f32.mrf.mxu3 }
 0x930   : > { %4922 = vmatmul.bf16.gmra.mxu1 %v6293_v2 }
 0x931   : > { %v8010_v42 = vpop.f32.mrf.mxu2 }
 0x932   : > { %v8012_v58 = vpop.f32.mrf.mxu3 }
 0x933   : > { %v4462_v51 = vpack.c.bf16 %v8012_v58, %v8010_v42  ;;  %v3887_v42 = vld [vmem:[%s8204_s2 + $0x10] sm:$0xff] }
 0x934   : > { %v4472_v20 = vunpack.c.l.bf16 %v3887_v42 }
 0x935   : > { %v4492_v35 = vunpack.c.l.bf16 %v4462_v51  ;;  %v4493_v41 = vunpack.c.h.bf16 %v4462_v51  ;;  %v6303_v51 = vld [vmem:[#allocation5 + $0x18] sm:$0xff] }
 0x939   : > { %v8014_v30 = vpop.f32.mrf.mxu2 }
 0x93a   : > { %v8016_v43 = vpop.f32.mrf.mxu3 }
 0x93b   : > { %v4463_v46 = vpack.c.bf16 %v8016_v43, %v8014_v30  ;;  %v4477_v30 = vunpack.c.h.bf16 %v8026_v28 }
 0x93d   : > { %v4494_v58 = vunpack.c.l.bf16 %v4463_v46  ;;  %v4495_v36 = vunpack.c.h.bf16 %v4463_v46  ;;  %v6294_v46 = vld [vmem:[#allocation6 + $0x10] sm:$0xff] }
 0x93e   : > { %4878 = vmatmul.bf16.gmra.mxu0 %v6294_v46 }
 0x93f   : > { %v4513_v28 = vmul.f32 %v4495_v36, %v4477_v30 }
 0x940   : > { %4927 = vmatmul.bf16.gmra.mxu1 %v6294_v46 }
 0x941   : > { %v4414_v14 = vpop.f32.mrf.mxu2 }
 0x942   : > { %v4447_v48 = vpop.f32.mrf.mxu3 }
 0x943   : > { %v4464_v11 = vpack.c.bf16 %v4447_v48, %v4414_v14 }
 0x945   : > { %v4496_v48 = vunpack.c.l.bf16 %v4464_v11  ;;  %v4497_v63 = vunpack.c.h.bf16 %v4464_v11 }
 0x947   : > { %v4514_v44 = vmul.f32 %v4496_v48, %v4478_v21  ;;  %v4515_v34 = vmul.f32 %v4497_v63, %v4479_v50  ;;  %v6297_v50 = vld [vmem:[#allocation6 + $0x28] sm:$0xff]  ;;  %v6299_v48 = vld [vmem:[#allocation6 + $0x38] sm:$0xff]  ;;  %v6306_v63 = vld [vmem:[#allocation5 + $0x30] sm:$0xff] }
 0x949   : > { %v4417_v6 = vpop.f32.mrf.mxu2  ;;  %v4527_v26 = vpack.c.bf16 %v4515_v34, %v4513_v28 }
 0x94a   : > { %v4450_v27 = vpop.f32.mrf.mxu3 }
 0x94b   : > { %v4465_v53 = vpack.c.bf16 %v4450_v27, %v4417_v6  ;;  %v4461_v27 = vpack.c.bf16 %v8008_v59, %v8006_v39  ;;  %v4460_v39 = vpack.c.bf16 %v8004_v29, %v8002_v22  ;;  %v4475_v59 = vunpack.c.h.bf16 %v8021_v15  ;;  %v3885_v22 = vld [vmem:[%s8204_s2] sm:$0xff] }
 0x94d   : > { %v4498_v37 = vunpack.c.l.bf16 %v4465_v53  ;;  %v4499_v62 = vunpack.c.h.bf16 %v4465_v53  ;;  %v4490_v29 = vunpack.c.l.bf16 %v4461_v27  ;;  %v4491_v49 = vunpack.c.h.bf16 %v4461_v27 }
 0x94e   : > { %v4468_v53 = vunpack.c.l.bf16 %v3885_v22 }
 0x94f   : > { %v4516_v1 = vmul.f32 %v4498_v37, %v4480_v32  ;;  %v4517_v3 = vmul.f32 %v4499_v62, %v4481_v24  ;;  %v6295_v24 = vld [vmem:[#allocation6 + $0x18] sm:$0xff]  ;;  %v6302_v37 = vld [vmem:[#allocation5 + $0x10] sm:$0xff]  ;;  %v6296_v62 = vld [vmem:[#allocation6 + $0x20] sm:$0xff] }
 0x950   : > { %4883 = vmatmul.bf16.gmra.mxu0 %v6295_v24  ;;  %4932 = vmatmul.bf16.gmra.mxu1 %v6295_v24 }
 0x951   : > { %v4419_v8 = vpop.f32.mrf.mxu2 }
 0x952   : > { %v4452_v25 = vpop.f32.mrf.mxu3 }
 0x953   : > { %v4466_v7 = vpack.c.bf16 %v4452_v25, %v4419_v8  ;;  %v4473_v25 = vunpack.c.h.bf16 %v3887_v42 }
 0x955   : > { %v4500_v40 = vunpack.c.l.bf16 %v4466_v7  ;;  %v4501_v61 = vunpack.c.h.bf16 %v4466_v7  ;;  %v4471_v7 = vunpack.c.h.bf16 %v3886_v45  ;;  %v4509_v11 = vmul.f32 %v4491_v49, %v4473_v25 }
 0x957   : > { %v4518_v0 = vmul.f32 %v4500_v40, %v4482_v52  ;;  %v4519_v6 = vmul.f32 %v4501_v61, %v4483_v5  ;;  %v4469_v52 = vunpack.c.h.bf16 %v3885_v22  ;;  %v4982_v22 = vpop.permute.xlu2 %4981 }
 0x959   : > { %v4422_v55 = vpop.f32.mrf.mxu2  ;;  %v4528_v13 = vpack.c.bf16 %v4518_v0, %v4516_v1  ;;  %v4529_v8 = vpack.c.bf16 %v4519_v6, %v4517_v3  ;;  %v4869_v0 = vpop.f32.mrf.mxu0 }
 0x95a   : > { %v4455_v18 = vpop.f32.mrf.mxu3 }
 0x95b   : > { %v4467_v60 = vpack.c.bf16 %v4455_v18, %v4422_v55  ;;  %v4512_v55 = vmul.f32 %v4494_v58, %v4476_v47  ;;  %v4488_v18 = vunpack.c.l.bf16 %v4460_v39  ;;  %v4508_v47 = vmul.f32 %v4490_v29, %v4472_v20 }
 0x95d   : > { %v4502_v17 = vunpack.c.l.bf16 %v4467_v60  ;;  %v4503_v54 = vunpack.c.h.bf16 %v4467_v60  ;;  %v4489_v60 = vunpack.c.h.bf16 %v4460_v39  ;;  %v4526_v57 = vpack.c.bf16 %v4514_v44, %v4512_v55  ;;  %v4977_v39 = vpop.permute.xlu1 %4976 }
 0x95e   : > { %v4506_v5 = vmul.f32 %v4488_v18, %v4470_v56 }
 0x95f   : > { %v4520_v10 = vmul.f32 %v4502_v17, %v4484_v31  ;;  %v4521_v9 = vmul.f32 %v4503_v54, %v4485_v4  ;;  %v4510_v31 = vmul.f32 %v4492_v35, %v4474_v12  ;;  %v4511_v4 = vmul.f32 %v4493_v41, %v4475_v59 }
 0x960   : > { %v4486_v17 = vunpack.c.l.bf16 %v8000_v23  ;;  %v4487_v54 = vunpack.c.h.bf16 %v8000_v23  ;;  %v4507_v40 = vmul.f32 %v4489_v60, %v4471_v7  ;;  %v6301_v23 = vld [vmem:[#allocation5 + $0x8] sm:$0xff]  ;;  %4888 = vmatmul.bf16.gmra.mxu0 %v6296_v62  ;;  %4937 = vmatmul.bf16.gmra.mxu1 %v6296_v62 }
 0x961   : > { %v4530_v19 = vpack.c.bf16 %v4520_v10, %v4520_v10  ;;  %v4531_v33 = vpack.c.bf16 %v4521_v9, %v4521_v9  ;;  %v4424_v14 = vpop.f32.mrf.mxu2  ;;  %v4524_v61 = vpack.c.bf16 %v4510_v31, %v4508_v47  ;;  %v4525_v21 = vpack.c.bf16 %v4511_v4, %v4509_v11  ;;  %v6300_v9 = vld [vmem:[#allocation5] sm:$0xff]  ;;  %v4871_v27 = vpop.f32.mrf.mxu0 }
 0x962   : > { %v4457_v16 = vpop.f32.mrf.mxu3  ;;  %v4504_v32 = vmul.f32 %v4486_v17, %v4468_v53  ;;  %v4505_v15 = vmul.f32 %v4487_v54, %v4469_v52  ;;  %v6305_v14 = vld [vmem:[#allocation5 + $0x28] sm:$0xff]  ;;  %v4987_v31 = vpop.permute.xlu0 %4986 }
 0x963   : > { %v4629_v43 = vsel %vm4116_vm6, %v4530_v19, 0  ;;  %v4632_v38 = vsel %vm4116_vm6, %v4531_v33, 0  ;;  %v6304_v19 = vld [vmem:[#allocation5 + $0x20] sm:$0xff]  ;;  %v6298_v33 = vld [vmem:[#allocation6 + $0x30] sm:$0xff]  ;;  %v6307_v16 = vld [vmem:[#allocation5 + $0x38] sm:$0xff] }
 0x964   : > { %4637 = vmatpush.bf16.msra.mxu2 %v4629_v43  ;;  %4686 = vmatpush.bf16.msra.mxu3 %v4632_v38  ;;  %v4522_v12 = vpack.c.bf16 %v4506_v5, %v4504_v32  ;;  %v4523_v10 = vpack.c.bf16 %v4507_v40, %v4505_v15 }
 0x965   : > { %v4992_v40 = vpop.permute.xlu1 %4991 }
 0x968   : > { %4638 = vmatpush.bf16.msra.mxu2 %v4528_v13  ;;  %4687 = vmatpush.bf16.msra.mxu3 %v4529_v8 }
 0x969   : > { %v4874_v43 = vpop.f32.mrf.mxu0 }
 0x96c   : > { %4639 = vmatpush.bf16.msra.mxu2 %v4526_v57  ;;  %4688 = vmatpush.bf16.msra.mxu3 %v4527_v26 }
 0x970   : > { %4640 = vmatpush.bf16.msra.mxu2 %v4524_v61  ;;  %4689 = vmatpush.bf16.msra.mxu3 %v4525_v21 }
 0x971   : > { %4893 = vmatmul.bf16.gmra.mxu0 %v6297_v50  ;;  %4942 = vmatmul.bf16.gmra.mxu1 %v6297_v50  ;;  %v4876_v2 = vpop.f32.mrf.mxu0 }
 0x974   : > { %4641 = vmatpush.bf16.msra.mxu2 %v4522_v12  ;;  %4690 = vmatpush.bf16.msra.mxu3 %v4523_v10 }
 0x977   : > { %6018 = vmatmul.msk.bf16.vlgmr.msra.gmra.mxu2 %vm4091_vm7, %v6300_v9  ;;  %6026 = vmatmul.msk.bf16.vlgmr.msra.gmra.mxu3 %vm4091_vm7, %v6300_v9 }
 0x981   : > { %4898 = vmatmul.bf16.gmra.mxu0 %v6298_v33  ;;  %4947 = vmatmul.bf16.gmra.mxu1 %v6298_v33 }
 0x987   : > { %6019 = vmatmul.msk.bf16.gmra.mxu2 %vm4091_vm7, %v6301_v23  ;;  %6027 = vmatmul.msk.bf16.gmra.mxu3 %vm4091_vm7, %v6301_v23 }
 0x991   : > { %4903 = vmatmul.bf16.gmra.mxu0 %v6299_v48  ;;  %4952 = vmatmul.bf16.gmra.mxu1 %v6299_v48 }
 0x997   : > { %6020 = vmatmul.msk.bf16.gmra.mxu2 %vm4091_vm7, %v6302_v37  ;;  %6028 = vmatmul.msk.bf16.gmra.mxu3 %vm4091_vm7, %v6302_v37  ;;  %v4997_v37 = vpop.permute.xlu2 %4996 }
 0x99d   : > { %v4918_v6 = vpop.f32.mrf.mxu1 }
 0x9a5   : > { %v4920_v30 = vpop.f32.mrf.mxu1 }
 0x9a7   : > { %6021 = vmatmul.msk.bf16.gmra.mxu2 %vm4091_vm7, %v6303_v51  ;;  %6029 = vmatmul.msk.bf16.gmra.mxu3 %vm4091_vm7, %v6303_v51 }
 0x9ad   : > { %v4923_v38 = vpop.f32.mrf.mxu1 }
 0x9b5   : > { %v4925_v42 = vpop.f32.mrf.mxu1 }
 0x9b7   : > { %6022 = vmatmul.msk.bf16.gmra.mxu2 %vm4091_vm7, %v6304_v19  ;;  %6030 = vmatmul.msk.bf16.gmra.mxu3 %vm4091_vm7, %v6304_v19 }
 0x9bb   : > { %v4879_v20 = vpop.f32.mrf.mxu0 }
 0x9bd   : > { %v4928_v25 = vpop.f32.mrf.mxu1 }
 0x9c3   : > { %v4881_v26 = vpop.f32.mrf.mxu0 }
 0x9c5   : > { %v4930_v53 = vpop.f32.mrf.mxu1 }
 0x9c7   : > { %6023 = vmatmul.msk.bf16.gmra.mxu2 %vm4091_vm7, %v6305_v14  ;;  %6031 = vmatmul.msk.bf16.gmra.mxu3 %vm4091_vm7, %v6305_v14 }
 0x9cd   : > { %v4884_v12 = vpop.f32.mrf.mxu0  ;;  %v4933_v10 = vpop.f32.mrf.mxu1 }
 0x9d5   : > { %v4886_v33 = vpop.f32.mrf.mxu0  ;;  %v4935_v14 = vpop.f32.mrf.mxu1 }
 0x9d7   : > { %6024 = vmatmul.msk.bf16.gmra.mxu2 %vm4091_vm7, %v6306_v63  ;;  %6032 = vmatmul.msk.bf16.gmra.mxu3 %vm4091_vm7, %v6306_v63 }
 0x9e7   : > { %6025 = vmatmul.msk.bf16.gmra.mxu2 %vm4091_vm7, %v6307_v16  ;;  %6033 = vmatmul.msk.bf16.gmra.mxu3 %vm4091_vm7, %v6307_v16  ;;  %v5002_v16 = vpop.permute.xlu0 %5001 }
 0x9fa   : > { %v4643_v58 = vpop.f32.mrf.mxu2  ;;  %v4692_v36 = vpop.f32.mrf.mxu3 }
 0x9fb   : > { %v4870_v1 = vadd.f32 %v4869_v0, %v4643_v58  ;;  %v4919_v3 = vadd.f32 %v4918_v6, %v4692_v36 }
 0x9fd   : > { %v5054_v59 = vadd.f32 %v4977_v39, %v4870_v1  ;;  %v5055_v35 = vadd.f32 %v4977_v39, %v4919_v3  ;;  %v4889_v1 = vpop.f32.mrf.mxu0  ;;  %v4938_v3 = vpop.f32.mrf.mxu1 }
 0x9fe   : > { %v5007_v39 = vpop.permute.xlu1 %5006 }
 0x9ff   : > { %v5086_v41 = vmax.f32 %v5054_v59, 0.0  ;;  %v5087_v45 = vmax.f32 %v5055_v35, 0.0 }
 0xa01   : > { %5118 = vst [vmem:[%s6740_s4] sm:$0xff] %v5086_v41 }
 0xa02   : > { %5119 = vst [vmem:[%s6740_s4 + $0x8] sm:$0xff] %v5087_v45  ;;  %v4645_v44 = vpop.f32.mrf.mxu2  ;;  %v4694_v34 = vpop.f32.mrf.mxu3 }
 0xa03   : > { %v4872_v13 = vadd.f32 %v4871_v27, %v4645_v44  ;;  %v4921_v8 = vadd.f32 %v4920_v30, %v4694_v34 }
 0xa05   : > { %v5056_v29 = vadd.f32 %v4982_v22, %v4872_v13  ;;  %v5057_v49 = vadd.f32 %v4982_v22, %v4921_v8 }
 0xa07   : > { %v5088_v55 = vmax.f32 %v5056_v29, 0.0  ;;  %v5089_v28 = vmax.f32 %v5057_v49, 0.0  ;;  %v4891_v29 = vpop.f32.mrf.mxu0  ;;  %v4940_v49 = vpop.f32.mrf.mxu1 }
 0xa09   : > { %5120 = vst [vmem:[%s6740_s4 + $0x10] sm:$0xff] %v5088_v55 }
 0xa0a   : > { %5121 = vst [vmem:[%s6740_s4 + $0x18] sm:$0xff] %v5089_v28  ;;  %v4648_v56 = vpop.f32.mrf.mxu2  ;;  %v4697_v7 = vpop.f32.mrf.mxu3 }
 0xa0b   : > { %v4875_v18 = vadd.f32 %v4874_v43, %v4648_v56  ;;  %v4924_v60 = vadd.f32 %v4923_v38, %v4697_v7 }
 0xa0d   : > { %v5058_v4 = vadd.f32 %v4987_v31, %v4875_v18  ;;  %v5059_v57 = vadd.f32 %v4987_v31, %v4924_v60  ;;  %v5017_v31 = vpop.permute.xlu0 %5016 }
 0xa0f   : > { %v5090_v52 = vmax.f32 %v5058_v4, 0.0  ;;  %v5091_v17 = vmax.f32 %v5059_v57, 0.0 }
 0xa11   : > { %5122 = vst [vmem:[%s6740_s4 + $0x20] sm:$0xff] %v5090_v52  ;;  %v4894_v52 = vpop.f32.mrf.mxu0 }
 0xa12   : > { %5123 = vst [vmem:[%s6740_s4 + $0x28] sm:$0xff] %v5091_v17  ;;  %v4650_v54 = vpop.f32.mrf.mxu2  ;;  %v4699_v47 = vpop.f32.mrf.mxu3 }
 0xa13   : > { %v4877_v11 = vadd.f32 %v4876_v2, %v4650_v54  ;;  %v4926_v5 = vadd.f32 %v4925_v42, %v4699_v47  ;;  %v4943_v17 = vpop.f32.mrf.mxu1 }
 0xa15   : > { %v5060_v61 = vadd.f32 %v4992_v40, %v4877_v11  ;;  %v5061_v21 = vadd.f32 %v4992_v40, %v4926_v5  ;;  %v5022_v40 = vpop.permute.xlu1 %5021 }
 0xa17   : > { %v5092_v32 = vmax.f32 %v5060_v61, 0.0  ;;  %v5093_v15 = vmax.f32 %v5061_v21, 0.0 }
 0xa19   : > { %5124 = vst [vmem:[%s6740_s4 + $0x30] sm:$0xff] %v5092_v32 }
 0xa1a   : > { %5125 = vst [vmem:[%s6740_s4 + $0x38] sm:$0xff] %v5093_v15  ;;  %v4653_v9 = vpop.f32.mrf.mxu2  ;;  %v4702_v46 = vpop.f32.mrf.mxu3 }
 0xa1b   : > { %v4880_v23 = vadd.f32 %v4879_v20, %v4653_v9  ;;  %v4929_v24 = vadd.f32 %v4928_v25, %v4702_v46  ;;  %v5012_v20 = vpop.permute.xlu2 %5011 }
 0xa1d   : > { %v5062_v62 = vadd.f32 %v4997_v37, %v4880_v23  ;;  %v5063_v51 = vadd.f32 %v4997_v37, %v4929_v24 }
 0xa1f   : > { %v5094_v50 = vmax.f32 %v5062_v62, 0.0  ;;  %v5095_v19 = vmax.f32 %v5063_v51, 0.0 }
 0xa21   : > { %5126 = vst [vmem:[%s6740_s4 + $0x40] sm:$0xff] %v5094_v50 }
 0xa22   : > { %5127 = vst [vmem:[%s6740_s4 + $0x48] sm:$0xff] %v5095_v19  ;;  %v4655_v48 = vpop.f32.mrf.mxu2  ;;  %v4704_v63 = vpop.f32.mrf.mxu3 }
 0xa23   : > { %v4882_v0 = vadd.f32 %v4881_v26, %v4655_v48  ;;  %v4931_v6 = vadd.f32 %v4930_v53, %v4704_v63  ;;  %v5027_v37 = vpop.permute.xlu2 %5026 }
 0xa25   : > { %v5064_v27 = vadd.f32 %v5002_v16, %v4882_v0  ;;  %v5065_v30 = vadd.f32 %v5002_v16, %v4931_v6  ;;  %v5032_v16 = vpop.permute.xlu0 %5031 }
 0xa27   : > { %v5096_v43 = vmax.f32 %v5064_v27, 0.0  ;;  %v5097_v38 = vmax.f32 %v5065_v30, 0.0 }
 0xa29   : > { %5128 = vst [vmem:[%s6740_s4 + $0x50] sm:$0xff] %v5096_v43 }
 0xa2a   : > { %5129 = vst [vmem:[%s6740_s4 + $0x58] sm:$0xff] %v5097_v38  ;;  %v4658_v2 = vpop.f32.mrf.mxu2  ;;  %v4707_v42 = vpop.f32.mrf.mxu3 }
 0xa2b   : > { %v4885_v58 = vadd.f32 %v4884_v12, %v4658_v2  ;;  %v4934_v36 = vadd.f32 %v4933_v10, %v4707_v42  ;;  %v4896_v12 = vpop.f32.mrf.mxu0  ;;  %v4945_v10 = vpop.f32.mrf.mxu1 }
 0xa2d   : > { %v5066_v59 = vadd.f32 %v5007_v39, %v4885_v58  ;;  %v5067_v35 = vadd.f32 %v5007_v39, %v4934_v36 }
 0xa2f   : > { %v5098_v41 = vmax.f32 %v5066_v59, 0.0  ;;  %v5099_v45 = vmax.f32 %v5067_v35, 0.0 }
 0xa31   : > { %5130 = vst [vmem:[%s6740_s4 + $0x60] sm:$0xff] %v5098_v41 }
 0xa32   : > { %5131 = vst [vmem:[%s6740_s4 + $0x68] sm:$0xff] %v5099_v45  ;;  %v4660_v44 = vpop.f32.mrf.mxu2  ;;  %v4709_v34 = vpop.f32.mrf.mxu3 }
 0xa33   : > { %v4887_v13 = vadd.f32 %v4886_v33, %v4660_v44  ;;  %v4936_v8 = vadd.f32 %v4935_v14, %v4709_v34  ;;  %v4899_v0 = vpop.f32.mrf.mxu0  ;;  %v4948_v6 = vpop.f32.mrf.mxu1 }
 0xa35   : > { %v5068_v25 = vadd.f32 %v5012_v20, %v4887_v13  ;;  %v5069_v22 = vadd.f32 %v5012_v20, %v4936_v8  ;;  %v5042_v20 = vpop.permute.xlu2 %5041 }
 0xa37   : > { %v5100_v55 = vmax.f32 %v5068_v25, 0.0  ;;  %v5101_v28 = vmax.f32 %v5069_v22, 0.0 }
 0xa39   : > { %5132 = vst [vmem:[%s6740_s4 + $0x70] sm:$0xff] %v5100_v55 }
 0xa3a   : > { %5133 = vst [vmem:[%s6740_s4 + $0x78] sm:$0xff] %v5101_v28  ;;  %v4663_v56 = vpop.f32.mrf.mxu2  ;;  %v4712_v7 = vpop.f32.mrf.mxu3 }
 0xa3b   : > { %v4890_v18 = vadd.f32 %v4889_v1, %v4663_v56  ;;  %v4939_v60 = vadd.f32 %v4938_v3, %v4712_v7  ;;  %v5037_v1 = vpop.permute.xlu1 %5036  ;;  %v4901_v59 = vpop.f32.mrf.mxu0 }
 0xa3c   : > { %v4950_v35 = vpop.f32.mrf.mxu1 }
 0xa3d   : > { %v5070_v4 = vadd.f32 %v5017_v31, %v4890_v18  ;;  %v5071_v57 = vadd.f32 %v5017_v31, %v4939_v60  ;;  %v5047_v31 = vpop.permute.xlu0 %5046 }
 0xa3f   : > { %v5102_v26 = vmax.f32 %v5070_v4, 0.0  ;;  %v5103_v53 = vmax.f32 %v5071_v57, 0.0 }
 0xa41   : > { %5134 = vst [vmem:[%s6740_s4 + $0x80] sm:$0xff] %v5102_v26 }
 0xa42   : > { %5135 = vst [vmem:[%s6740_s4 + $0x88] sm:$0xff] %v5103_v53  ;;  %v4665_v54 = vpop.f32.mrf.mxu2  ;;  %v4714_v47 = vpop.f32.mrf.mxu3 }
 0xa43   : > { %v4892_v11 = vadd.f32 %v4891_v29, %v4665_v54  ;;  %v4941_v5 = vadd.f32 %v4940_v49, %v4714_v47  ;;  %v4904_v55 = vpop.f32.mrf.mxu0 }
 0xa44   : > { %v4953_v28 = vpop.f32.mrf.mxu1 }
 0xa45   : > { %v5072_v61 = vadd.f32 %v5022_v40, %v4892_v11  ;;  %v5073_v21 = vadd.f32 %v5022_v40, %v4941_v5  ;;  %v5052_v40 = vpop.permute.xlu1 %5051 }
 0xa47   : > { %v5104_v32 = vmax.f32 %v5072_v61, 0.0  ;;  %v5105_v15 = vmax.f32 %v5073_v21, 0.0 }
 0xa49   : > { %5136 = vst [vmem:[%s6740_s4 + $0x90] sm:$0xff] %v5104_v32 }
 0xa4a   : > { %5137 = vst [vmem:[%s6740_s4 + $0x98] sm:$0xff] %v5105_v15  ;;  %v4668_v9 = vpop.f32.mrf.mxu2  ;;  %v4717_v46 = vpop.f32.mrf.mxu3 }
 0xa4b   : > { %v4895_v23 = vadd.f32 %v4894_v52, %v4668_v9  ;;  %v4944_v24 = vadd.f32 %v4943_v17, %v4717_v46  ;;  %v4906_v52 = vpop.f32.mrf.mxu0 }
 0xa4c   : > { %v4955_v17 = vpop.f32.mrf.mxu1 }
 0xa4d   : > { %v5074_v62 = vadd.f32 %v5027_v37, %v4895_v23  ;;  %v5075_v51 = vadd.f32 %v5027_v37, %v4944_v24 }
 0xa4f   : > { %v5106_v50 = vmax.f32 %v5074_v62, 0.0  ;;  %v5107_v19 = vmax.f32 %v5075_v51, 0.0 }
 0xa51   : > { %5138 = vst [vmem:[%s6740_s4 + $0xa0] sm:$0xff] %v5106_v50 }
 0xa52   : > { %5139 = vst [vmem:[%s6740_s4 + $0xa8] sm:$0xff] %v5107_v19  ;;  %v4670_v33 = vpop.f32.mrf.mxu2  ;;  %v4719_v14 = vpop.f32.mrf.mxu3 }
 0xa53   : > { %v4897_v48 = vadd.f32 %v4896_v12, %v4670_v33  ;;  %v4946_v63 = vadd.f32 %v4945_v10, %v4719_v14 }
 0xa55   : > { %v5076_v27 = vadd.f32 %v5032_v16, %v4897_v48  ;;  %v5077_v30 = vadd.f32 %v5032_v16, %v4946_v63 }
 0xa57   : > { %v5108_v43 = vmax.f32 %v5076_v27, 0.0  ;;  %v5109_v38 = vmax.f32 %v5077_v30, 0.0 }
 0xa59   : > { %5140 = vst [vmem:[%s6740_s4 + $0xb0] sm:$0xff] %v5108_v43 }
 0xa5a   : > { %5141 = vst [vmem:[%s6740_s4 + $0xb8] sm:$0xff] %v5109_v38  ;;  %v4673_v2 = vpop.f32.mrf.mxu2  ;;  %v4722_v42 = vpop.f32.mrf.mxu3 }
 0xa5b   : > { %v4900_v58 = vadd.f32 %v4899_v0, %v4673_v2  ;;  %v4949_v36 = vadd.f32 %v4948_v6, %v4722_v42 }
 0xa5d   : > { %v5078_v3 = vadd.f32 %v5037_v1, %v4900_v58  ;;  %v5079_v39 = vadd.f32 %v5037_v1, %v4949_v36 }
 0xa5f   : > { %v5110_v41 = vmax.f32 %v5078_v3, 0.0  ;;  %v5111_v45 = vmax.f32 %v5079_v39, 0.0 }
 0xa61   : > { %5142 = vst [vmem:[%s6740_s4 + $0xc0] sm:$0xff] %v5110_v41 }
 0xa62   : > { %5143 = vst [vmem:[%s6740_s4 + $0xc8] sm:$0xff] %v5111_v45  ;;  %v4675_v44 = vpop.f32.mrf.mxu2  ;;  %v4724_v34 = vpop.f32.mrf.mxu3 }
 0xa63   : > { %v4902_v13 = vadd.f32 %v4901_v59, %v4675_v44  ;;  %v4951_v8 = vadd.f32 %v4950_v35, %v4724_v34 }
 0xa65   : > { %v5080_v25 = vadd.f32 %v5042_v20, %v4902_v13  ;;  %v5081_v22 = vadd.f32 %v5042_v20, %v4951_v8 }
 0xa67   : > { %v5112_v29 = vmax.f32 %v5080_v25, 0.0  ;;  %v5113_v49 = vmax.f32 %v5081_v22, 0.0 }
 0xa69   : > { %5144 = vst [vmem:[%s6740_s4 + $0xd0] sm:$0xff] %v5112_v29 }
 0xa6a   : > { %5145 = vst [vmem:[%s6740_s4 + $0xd8] sm:$0xff] %v5113_v49  ;;  %v4678_v56 = vpop.f32.mrf.mxu2  ;;  %v4727_v7 = vpop.f32.mrf.mxu3 }
 0xa6b   : > { %v4905_v18 = vadd.f32 %v4904_v55, %v4678_v56  ;;  %v4954_v60 = vadd.f32 %v4953_v28, %v4727_v7 }
 0xa6d   : > { %v5082_v4 = vadd.f32 %v5047_v31, %v4905_v18  ;;  %v5083_v57 = vadd.f32 %v5047_v31, %v4954_v60 }
 0xa6f   : > { %v5114_v26 = vmax.f32 %v5082_v4, 0.0  ;;  %v5115_v53 = vmax.f32 %v5083_v57, 0.0 }
 0xa71   : > { %5146 = vst [vmem:[%s6740_s4 + $0xe0] sm:$0xff] %v5114_v26 }
 0xa72   : > { %5147 = vst [vmem:[%s6740_s4 + $0xe8] sm:$0xff] %v5115_v53  ;;  %v4680_v54 = vpop.f32.mrf.mxu2  ;;  %v4729_v47 = vpop.f32.mrf.mxu3 }
 0xa73   : > { %v4907_v11 = vadd.f32 %v4906_v52, %v4680_v54  ;;  %v4956_v5 = vadd.f32 %v4955_v17, %v4729_v47 }
 0xa75   : > { %v5084_v61 = vadd.f32 %v5052_v40, %v4907_v11  ;;  %v5085_v21 = vadd.f32 %v5052_v40, %v4956_v5 }
 0xa77   : > { %v5116_v32 = vmax.f32 %v5084_v61, 0.0  ;;  %v5117_v15 = vmax.f32 %v5085_v21, 0.0 }
 0xa79   : > { %5148 = vst [vmem:[%s6740_s4 + $0xf0] sm:$0xff] %v5116_v32 }
 0xa7a   : > { %5149 = vst [vmem:[%s6740_s4 + $0xf8] sm:$0xff] %v5117_v15 }
 0xa7b PF: > { %s6308_s22 = sshll.u32 %s6545_s17, 8  ;;  %s8208_s25 = sld [smem:[#allocation24_spill]] }
 0xa7c   : > { %s5166_s29 = sshll.u32 %s6740_s4, 4  ;;  %s8209_s18 = sand.u32 1, %s6533_s30   ;;  %s5167_s29 = int_to_ptr.vmem [resolvable:$true] %s5166_s29 }
 0xa7d   : > { %s5151_s21 = scalar_lea.sflag [#allocation8], %s8209_s18 }
 0xa81   : > { %s5165_s16 = scalar_lea.hbm %s8208_s25, %s6308_s22  ;;  %s6479_s17 = scalar_lea.hbm %s8208_s25, 512 }
 0xa82   : > { %s5168_s27 = sshll.u32 %s5165_s16, 4  ;;  %s5169_s27 = int_to_ptr.hbm [resolvable:$true] %s5168_s27 }
 0xa83   : > { %s6473_s23 = sshra.s32 %s5169_s27, 4  ;;  %s6474_s23 = int_to_ptr.hbm [resolvable:$true] %s6473_s23 }
 0xa84   : > { %s6475_s0 = scalar_lea.hbm %s6474_s23, 256  ;;  %p6480_p8 = scmp.lt.s32.totalorder %s6474_s23, %s8208_s25 }
 0xa85   : > { %p6476_p5 = scmp.ne.s32.totalorder %s6474_s23, %s6475_s0  ;;  %p6481_p10 = scmp.lt.s32.totalorder %s6479_s17, %s6475_s0 }
 0xa87   : > { %p6477_p6 = pnand %p6476_p5, %p6700_p3  ;;  %p6482_p11 = por %p6481_p10, %p6480_p8 }
 0xa89   : > { %p6478_p7 = pneg %p6477_p6 }
 0xa8b   : > { %p6483_p12 = pnand %p6482_p11, %p6478_p7 }
 0xa8d   : > { %6486 = shalt.err (!%p6483_p12)
}
 0xa8e   : > { %s6573_s4 = smov 256   ;;  %s6574_s22 = smov 16  }
 0xa8f   : > { %6313 = dma.vmem_to_hbm [thread:$0]  (%p6700_p3), %s5167_s29, 4096, %s5169_s27, %s5151_s21, %s6573_s4, %s6573_s4, %s6574_s22  }
 0xa90 PF: > { %s8210_s12 = sld [smem:[#allocation14_spill]] }
 0xa91   : > { %s8211_s16 = sld [smem:[#allocation12_spill]] }
 0xa96   : > { %p6325_p13 = scmp.ge.s32.totalorder %s8210_s12, 2 }
 0xa97   : > { %s5183_s1 = sand.u32 1, %s8211_s16  }
 0xa98   : > { %p6320_p0 = pnand %p6325_p13, %p6710_p9  ;;  %s5184_s2 = scalar_lea.sflag [#allocation8], %s5183_s1 }
 0xa9a   : > { %p6321_p1 = pneg %p6320_p0 }
 0xa9c   : > { %6524 = dma.done.wait (%p6321_p1), %s5184_s2, 4096  }
 0xa9d   : > { %6526 = vsyncadd (%p6321_p1), %s5184_s2, 4294963200  ;;  %s28_s0 = sadd.s32 1, %s8210_s12   ;;  %s8213_s16 = sld [smem:[#allocation13_spill]] }
 0xa9e   : > { %p25_p2 = scmp.ge.s32.totalorder %s28_s0, 6   ;;  %s8214_s18 = sld [smem:[#allocation15_spill]] }
 0xa9f   : > { %s8215_s29 = smov %s6533_s30  ;;  %s8216_s30 = smov %s6537_s15 }
 0xaa0   : > { %s8217_s15 = smov %s6726_s20  ;;  %s8218_s17 = smov %s6553_s19 }
 0xaa1   : > { %s8219_s19 = smov %s8226_s24  ;;  %s8220_s20 = smov %s28_s0 }
 0xaa2   :  { %27 = sbr.rel (!%p25_p2) target bundleno = 14 (0xe), region = 142 }
 0xaa7   :  { %5190 = vsyncpa [#allocation7], 1 }
 0xaa8   :  { %5192 = vsyncpa [#allocation7 + $0x1], 1 }
 0xaa9   :  { %5193 = vsyncpa [#allocation8], 1 }
 0xaaa   :  { %5195 = vsyncpa [#allocation8 + $0x1], 1 }

</bundles_post_ra>
